<compile_context>
chip_gen: v7x
topology: tpu7x:2x2x1
jax: 0.10.0
libtpu: 0.0.40
codegen_flags: <defaults>
</compile_context>

<pallas_src>
import functools

import jax
import jax.numpy as jnp
from jax.experimental import pallas as pl
from jax.experimental.pallas import tpu as pltpu

HIGHEST = jax.lax.Precision.HIGHEST


def _round_up(x, m):
  return (x + m - 1) // m * m


def _block_kernel(W, x_ref, mask_ref, w1_ref, sh1_ref, w2_ref, sh2_ref, o_ref,
                  patch1_ref, patch2_ref):
  """One group of images per grid step (lane index = img*H*W + y*W + x).

  Shapes (channels padded to a multiple of 8, Lg = images_per_group * H * W):
    x_ref    : (Cin, Lg)   f32   upsampled input, images concatenated on lanes
    mask_ref : (9, Lg)     f32   per-tap border masks (1 inside, 0 = zero pad)
    w1_ref   : (2*Cout, 9*Cin) bf16  [conv1*bn1_scale ; 1x1 shortcut @ tap 4]
    sh1_ref  : (Cout, 1)   f32   bn1 shift
    w2_ref   : (Cout, 9*Cout) bf16   conv2*bn2_scale
    sh2_ref  : (Cout, 1)   f32   bn2 shift
    o_ref    : (Cout, Lg)  f32
    patch1_ref, patch2_ref : bf16 VMEM im2col scratch (9*Cin, Lg)/(9*Cout, Lg)
  """
  Cout = sh1_ref.shape[0]
  taps = [(oy, ox) for oy in (-1, 0, 1) for ox in (-1, 0, 1)]

  def shifted_tap(src, t):
    # Value of `src` at spatial offset (oy, ox) relative to every output
    # pixel, out-of-image positions zeroed (== the conv's zero padding).  The
    # lane roll wraps across image/group boundaries only at masked positions.
    oy, ox = taps[t]
    d = oy * W + ox
    # Static-shift jnp.roll lowers to two lane slices + concat (no gather);
    # pltpu.roll (single XLU vrot) is a follow-up micro-optimization.
    v = src if d == 0 else jnp.roll(src, -d, axis=1)
    if t != 4:                                   # center tap needs no mask
      v = v * mask_ref[t:t + 1, :]               # f32 elementwise, bcast (1,L)
    return v

  def build_patch(src, patch_ref):
    # Write taps in pairs: 2*C (>=16) rows per store keeps the packed bf16
    # sublane tiles aligned -> full-width unmasked stores on 8 of 9 taps.
    C = src.shape[0]
    for p in range(4):
      pair = jnp.concatenate(
          [shifted_tap(src, 2 * p), shifted_tap(src, 2 * p + 1)], axis=0)
      patch_ref[2 * p * C:(2 * p + 2) * C, :] = pair.astype(patch_ref.dtype)
    patch_ref[8 * C:9 * C, :] = shifted_tap(src, 8).astype(patch_ref.dtype)

  # ---- conv1 (+ folded BN1 scale) and 1x1 shortcut in ONE matmul ------------
  build_patch(x_ref[...], patch1_ref)
  acc1 = jnp.dot(w1_ref[...], patch1_ref[...],
                 preferred_element_type=jnp.float32)          # (2*Cout, Lg)
  h1 = jnp.maximum(acc1[:Cout] + sh1_ref[...], 0.0)           # bn1 shift + relu
  ident = acc1[Cout:]                                         # shortcut branch

  # ---- conv2 (+ folded BN2 scale), residual add, relu -----------------------
  build_patch(h1, patch2_ref)
  h2 = jnp.dot(w2_ref[...], patch2_ref[...],
               preferred_element_type=jnp.float32)            # (Cout, Lg)
  o_ref[...] = jnp.maximum(h2 + sh2_ref[...] + ident, 0.0).astype(o_ref.dtype)


def conv_t_basic_block(x_nchw, params, stride, num_groups=1):
  """x_nchw: (N, Cin, Hin, Win) f32.  Returns (N, Cout, Hin*s, Win*s)."""
  w1, sc1, sh1, w2, sc2, sh2, wup = params
  N, Cin, Hin, Win = x_nchw.shape
  Cout = w1.shape[-1]
  H, W = Hin * stride, Win * stride
  HW = H * W
  assert N % num_groups == 0
  Lg = (N // num_groups) * HW                       # lanes per grid step
  Cin_p, Cout_p = _round_up(Cin, 8), _round_up(Cout, 8)

  # ---- exact nearest-neighbour upsample + lane-dense relayout (XLA glue) ----
  x_up = x_nchw
  if stride != 1:
    x_up = jnp.repeat(jnp.repeat(x_up, stride, axis=2), stride, axis=3)
  x_cl = jnp.transpose(x_up, (1, 0, 2, 3)).reshape(Cin, N * HW)
  x_cl = jnp.pad(x_cl, ((0, Cin_p - Cin), (0, 0)))            # (Cin_p, N*HW)

  # ---- fold BN scales into conv weights, pad channels, cast to bf16 ---------
  # Weight rows = out channel; columns = (tap, ci), matching im2col row order.
  def pack3x3(w_hwio, scale, cin, cin_p, cout, cout_p):
    w = w_hwio * scale[None, None, None, :]
    w = jnp.transpose(w, (3, 0, 1, 2))                        # (Cout,3,3,Cin)
    w = jnp.pad(w, ((0, cout_p - cout), (0, 0), (0, 0), (0, cin_p - cin)))
    return w.reshape(cout_p, 9 * cin_p)

  w1m = pack3x3(w1, sc1, Cin, Cin_p, Cout, Cout_p)
  w2m = pack3x3(w2, sc2, Cout, Cout_p, Cout, Cout_p).astype(jnp.bfloat16)
  # 1x1 shortcut folded into conv1 as extra output rows reading only the
  # (unmasked) center-tap columns.  No BN on the shortcut (matches the module).
  wupm = jnp.pad(wup.T, ((0, Cout_p - Cout), (0, Cin_p - Cin)))
  upblk = jnp.zeros((Cout_p, 9, Cin_p), jnp.float32).at[:, 4, :].set(wupm)
  w1full = jnp.concatenate(
      [w1m, upblk.reshape(Cout_p, 9 * Cin_p)], axis=0).astype(jnp.bfloat16)
  sh1c = jnp.pad(sh1, (0, Cout_p - Cout)).reshape(Cout_p, 1)
  sh2c = jnp.pad(sh2, (0, Cout_p - Cout)).reshape(Cout_p, 1)

  # ---- per-tap border masks (depend only on position within one image) ------
  ys = jnp.arange(Lg, dtype=jnp.int32) % HW // W
  xs = jnp.arange(Lg, dtype=jnp.int32) % W
  masks = []
  for oy in (-1, 0, 1):
    for ox in (-1, 0, 1):
      ok = ((ys + oy >= 0) & (ys + oy <= H - 1) &
            (xs + ox >= 0) & (xs + ox <= W - 1))
      masks.append(ok)
  mask9 = jnp.stack(masks).astype(jnp.float32)                # (9, Lg)

  out = pl.pallas_call(
      functools.partial(_block_kernel, W),
      out_shape=jax.ShapeDtypeStruct((Cout_p, N * HW), jnp.float32),
      grid=(num_groups,),
      in_specs=[
          pl.BlockSpec((Cin_p, Lg), lambda g: (0, g)),
          pl.BlockSpec((9, Lg), lambda g: (0, 0)),
          pl.BlockSpec((2 * Cout_p, 9 * Cin_p), lambda g: (0, 0)),
          pl.BlockSpec((Cout_p, 1), lambda g: (0, 0)),
          pl.BlockSpec((Cout_p, 9 * Cout_p), lambda g: (0, 0)),
          pl.BlockSpec((Cout_p, 1), lambda g: (0, 0)),
      ],
      out_specs=pl.BlockSpec((Cout_p, Lg), lambda g: (0, g)),
      scratch_shapes=[
          pltpu.VMEM((9 * Cin_p, Lg), jnp.bfloat16),    # im2col patch, conv1
          pltpu.VMEM((9 * Cout_p, Lg), jnp.bfloat16),   # im2col patch, conv2
      ],
      compiler_params=pltpu.CompilerParams(
          dimension_semantics=("parallel",)),    # group axis -> v7x 2 TCs
  )(x_cl, mask9, w1full, sh1c, w2m, sh2c)

  out = out[:Cout].reshape(Cout, N, H, W)
  return jnp.transpose(out, (1, 0, 2, 3))


def make_params(key, inplanes, planes):
  """Deterministic synthetic parameters (shapes from the module __init__)."""
  ks = jax.random.split(key, 11)
  eps = 1e-5
  # conv weights stored HWIO (channels-last matmul / lax.conv convention).
  w1 = jax.random.normal(ks[0], (3, 3, inplanes, planes), jnp.float32) * 0.1
  w2 = jax.random.normal(ks[1], (3, 3, planes, planes), jnp.float32) * 0.1
  wup = jax.random.normal(ks[2], (inplanes, planes), jnp.float32) * 0.1
  # BatchNorm (eval mode) params / running stats, folded into scale & shift.
  g1 = 1.0 + 0.1 * jax.random.normal(ks[3], (planes,), jnp.float32)
  b1 = 0.1 * jax.random.normal(ks[4], (planes,), jnp.float32)
  m1 = 0.1 * jax.random.normal(ks[5], (planes,), jnp.float32)
  v1 = jax.random.uniform(ks[6], (planes,), jnp.float32, 0.5, 1.5)
  g2 = 1.0 + 0.1 * jax.random.normal(ks[7], (planes,), jnp.float32)
  b2 = 0.1 * jax.random.normal(ks[8], (planes,), jnp.float32)
  m2 = 0.1 * jax.random.normal(ks[9], (planes,), jnp.float32)
  v2 = jax.random.uniform(ks[10], (planes,), jnp.float32, 0.5, 1.5)
  sc1 = g1 / jnp.sqrt(v1 + eps)
  sh1 = b1 - m1 * sc1
  sc2 = g2 / jnp.sqrt(v2 + eps)
  sh2 = b2 - m2 * sc2
  return (w1, sc1, sh1, w2, sc2, sh2, wup)


def reference_forward(x_nchw, params, stride):
  """Pure-JAX reference (eval-mode BN), kept at HIGHEST precision."""
  w1, sc1, sh1, w2, sc2, sh2, wup = params
  x = jnp.transpose(x_nchw, (0, 2, 3, 1))
  if stride != 1:
    x = jnp.repeat(jnp.repeat(x, stride, axis=1), stride, axis=2)

  def conv3x3(a, w):
    return jax.lax.conv_general_dilated(
        a, w, (1, 1), 'SAME',
        dimension_numbers=('NHWC', 'HWIO', 'NHWC'),
        precision=HIGHEST)

  out = conv3x3(x, w1) * sc1 + sh1
  out = jnp.maximum(out, 0.0)
  out = conv3x3(out, w2) * sc2 + sh2
  ident = jnp.einsum('nhwc,co->nhwo', x, wup, precision=HIGHEST)
  out = jnp.maximum(out + ident, 0.0)
  return jnp.transpose(out, (0, 3, 1, 2))


if __name__ == "__main__":
  inplanes, planes, stride = 4, 8, 2
  N, Hin, Win = 2, 16, 16

  key = jax.random.PRNGKey(0)
  kx, kp = jax.random.split(key)
  x = jax.random.normal(kx, (N, inplanes, Hin, Win), jnp.float32)
  params = make_params(kp, inplanes, planes)

  fwd = jax.jit(functools.partial(conv_t_basic_block, stride=stride))
  out = jax.block_until_ready(fwd(x, params))

  ref = reference_forward(x, params, stride)
  assert out.shape == (N, planes, Hin * stride, Win * stride), out.shape
  # Kernel: bf16 im2col patches / folded weights with f32 MXU accumulation;
  # reference: f32 HIGHEST.  Tolerance sized for bf16-class products over
  # K=36/72 reductions (same rounding structure that passed in rev 2).
  max_err = float(jnp.max(jnp.abs(out - ref)))
  assert jnp.allclose(out, ref, rtol=2e-2, atol=2e-2), max_err

  print("KERNEL_OK")
</pallas_src>

<mosaic_0001>
module attributes {stable_mosaic.version = 11 : i64} {
  func.func @_block_kernel(%arg0: i32, %arg1: memref<8x2048xf32, #tpu.memory_space<vmem>>, %arg2: memref<9x2048xf32, #tpu.memory_space<vmem>>, %arg3: memref<16x72xbf16, #tpu.memory_space<vmem>>, %arg4: memref<8x1xf32, #tpu.memory_space<vmem>>, %arg5: memref<8x72xbf16, #tpu.memory_space<vmem>>, %arg6: memref<8x1xf32, #tpu.memory_space<vmem>>, %arg7: memref<8x2048xf32, #tpu.memory_space<vmem>>, %arg8: memref<72x2048xbf16, #tpu.memory_space<vmem>>, %arg9: memref<72x2048xbf16, #tpu.memory_space<vmem>>) attributes {dimension_semantics = [#tpu.dimension_semantics<parallel>], iteration_bounds = array<i64: 1>, scalar_prefetch = 0 : i64, scratch_operands = 2 : i64, tpu.core_type = #tpu.core_type<tc>, window_params = [{transform_indices = @transform_0, window_bounds = array<i64: 8, 2048>}, {pipeline_mode = #tpu.pipeline_mode<synchronous>, transform_indices = @transform_1, window_bounds = array<i64: 9, 2048>}, {pipeline_mode = #tpu.pipeline_mode<synchronous>, transform_indices = @transform_2, window_bounds = array<i64: 16, 72>}, {pipeline_mode = #tpu.pipeline_mode<synchronous>, transform_indices = @transform_3, window_bounds = array<i64: 8, 1>}, {pipeline_mode = #tpu.pipeline_mode<synchronous>, transform_indices = @transform_4, window_bounds = array<i64: 8, 72>}, {pipeline_mode = #tpu.pipeline_mode<synchronous>, transform_indices = @transform_5, window_bounds = array<i64: 8, 1>}, {transform_indices = @transform_6, window_bounds = array<i64: 8, 2048>}]} {
    %c0 = arith.constant 0 : index
    %c0_0 = arith.constant 0 : index
    %0 = vector.load %arg1[%c0, %c0_0] : memref<8x2048xf32, #tpu.memory_space<vmem>>, vector<8x2048xf32>
    %1 = vector.extract_strided_slice %0 {offsets = [0, 2015], sizes = [8, 33], strides = [1, 1]} : vector<8x2048xf32> to vector<8x33xf32>
    %2 = vector.extract_strided_slice %0 {offsets = [0, 0], sizes = [8, 2015], strides = [1, 1]} : vector<8x2048xf32> to vector<8x2015xf32>
    %3 = tpu.concatenate %1, %2 in 1 : vector<8x33xf32>, vector<8x2015xf32> -> vector<8x2048xf32>
    %c0_1 = arith.constant 0 : index
    %c0_2 = arith.constant 0 : index
    %4 = vector.load %arg2[%c0_1, %c0_2] : memref<9x2048xf32, #tpu.memory_space<vmem>>, vector<1x2048xf32>
    %5 = vector.broadcast %4 : vector<1x2048xf32> to vector<8x2048xf32>
    %6 = arith.mulf %3, %5 : vector<8x2048xf32>
    %7 = vector.extract_strided_slice %0 {offsets = [0, 2016], sizes = [8, 32], strides = [1, 1]} : vector<8x2048xf32> to vector<8x32xf32>
    %8 = vector.extract_strided_slice %0 {offsets = [0, 0], sizes = [8, 2016], strides = [1, 1]} : vector<8x2048xf32> to vector<8x2016xf32>
    %9 = tpu.concatenate %7, %8 in 1 : vector<8x32xf32>, vector<8x2016xf32> -> vector<8x2048xf32>
    %c1 = arith.constant 1 : index
    %c0_3 = arith.constant 0 : index
    %10 = vector.load %arg2[%c1, %c0_3] : memref<9x2048xf32, #tpu.memory_space<vmem>>, vector<1x2048xf32>
    %11 = vector.broadcast %10 : vector<1x2048xf32> to vector<8x2048xf32>
    %12 = arith.mulf %9, %11 : vector<8x2048xf32>
    %13 = tpu.concatenate %6, %12 in 0 : vector<8x2048xf32>, vector<8x2048xf32> -> vector<16x2048xf32>
    %14 = arith.truncf %13 : vector<16x2048xf32> to vector<16x2048xbf16>
    %c0_4 = arith.constant 0 : index
    %c0_5 = arith.constant 0 : index
    %15 = vector.load %arg8[%c0_4, %c0_5] : memref<72x2048xbf16, #tpu.memory_space<vmem>>, vector<16x2048xbf16>
    tpu.vector_store %arg8[%c0_4, %c0_5], %14 {strides = array<i32>} : memref<72x2048xbf16, #tpu.memory_space<vmem>>, vector<16x2048xbf16>,
    %16 = vector.extract_strided_slice %0 {offsets = [0, 2017], sizes = [8, 31], strides = [1, 1]} : vector<8x2048xf32> to vector<8x31xf32>
    %17 = vector.extract_strided_slice %0 {offsets = [0, 0], sizes = [8, 2017], strides = [1, 1]} : vector<8x2048xf32> to vector<8x2017xf32>
    %18 = tpu.concatenate %16, %17 in 1 : vector<8x31xf32>, vector<8x2017xf32> -> vector<8x2048xf32>
    %c2 = arith.constant 2 : index
    %c0_6 = arith.constant 0 : index
    %19 = vector.load %arg2[%c2, %c0_6] : memref<9x2048xf32, #tpu.memory_space<vmem>>, vector<1x2048xf32>
    %20 = vector.broadcast %19 : vector<1x2048xf32> to vector<8x2048xf32>
    %21 = arith.mulf %18, %20 : vector<8x2048xf32>
    %22 = vector.extract_strided_slice %0 {offsets = [0, 2047], sizes = [8, 1], strides = [1, 1]} : vector<8x2048xf32> to vector<8x1xf32>
    %23 = vector.extract_strided_slice %0 {offsets = [0, 0], sizes = [8, 2047], strides = [1, 1]} : vector<8x2048xf32> to vector<8x2047xf32>
    %24 = tpu.concatenate %22, %23 in 1 : vector<8x1xf32>, vector<8x2047xf32> -> vector<8x2048xf32>
    %c3 = arith.constant 3 : index
    %c0_7 = arith.constant 0 : index
    %25 = vector.load %arg2[%c3, %c0_7] : memref<9x2048xf32, #tpu.memory_space<vmem>>, vector<1x2048xf32>
    %26 = vector.broadcast %25 : vector<1x2048xf32> to vector<8x2048xf32>
    %27 = arith.mulf %24, %26 : vector<8x2048xf32>
    %28 = tpu.concatenate %21, %27 in 0 : vector<8x2048xf32>, vector<8x2048xf32> -> vector<16x2048xf32>
    %29 = arith.truncf %28 : vector<16x2048xf32> to vector<16x2048xbf16>
    %c16 = arith.constant 16 : index
    %c0_8 = arith.constant 0 : index
    %30 = vector.load %arg8[%c16, %c0_8] : memref<72x2048xbf16, #tpu.memory_space<vmem>>, vector<16x2048xbf16>
    tpu.vector_store %arg8[%c16, %c0_8], %29 {strides = array<i32>} : memref<72x2048xbf16, #tpu.memory_space<vmem>>, vector<16x2048xbf16>,
    %31 = vector.extract_strided_slice %0 {offsets = [0, 1], sizes = [8, 2047], strides = [1, 1]} : vector<8x2048xf32> to vector<8x2047xf32>
    %32 = vector.extract_strided_slice %0 {offsets = [0, 0], sizes = [8, 1], strides = [1, 1]} : vector<8x2048xf32> to vector<8x1xf32>
    %33 = tpu.concatenate %31, %32 in 1 : vector<8x2047xf32>, vector<8x1xf32> -> vector<8x2048xf32>
    %c5 = arith.constant 5 : index
    %c0_9 = arith.constant 0 : index
    %34 = vector.load %arg2[%c5, %c0_9] : memref<9x2048xf32, #tpu.memory_space<vmem>>, vector<1x2048xf32>
    %35 = vector.broadcast %34 : vector<1x2048xf32> to vector<8x2048xf32>
    %36 = arith.mulf %33, %35 : vector<8x2048xf32>
    %37 = tpu.concatenate %0, %36 in 0 : vector<8x2048xf32>, vector<8x2048xf32> -> vector<16x2048xf32>
    %38 = arith.truncf %37 : vector<16x2048xf32> to vector<16x2048xbf16>
    %c32 = arith.constant 32 : index
    %c0_10 = arith.constant 0 : index
    %39 = vector.load %arg8[%c32, %c0_10] : memref<72x2048xbf16, #tpu.memory_space<vmem>>, vector<16x2048xbf16>
    tpu.vector_store %arg8[%c32, %c0_10], %38 {strides = array<i32>} : memref<72x2048xbf16, #tpu.memory_space<vmem>>, vector<16x2048xbf16>,
    %40 = vector.extract_strided_slice %0 {offsets = [0, 31], sizes = [8, 2017], strides = [1, 1]} : vector<8x2048xf32> to vector<8x2017xf32>
    %41 = vector.extract_strided_slice %0 {offsets = [0, 0], sizes = [8, 31], strides = [1, 1]} : vector<8x2048xf32> to vector<8x31xf32>
    %42 = tpu.concatenate %40, %41 in 1 : vector<8x2017xf32>, vector<8x31xf32> -> vector<8x2048xf32>
    %c6 = arith.constant 6 : index
    %c0_11 = arith.constant 0 : index
    %43 = vector.load %arg2[%c6, %c0_11] : memref<9x2048xf32, #tpu.memory_space<vmem>>, vector<1x2048xf32>
    %44 = vector.broadcast %43 : vector<1x2048xf32> to vector<8x2048xf32>
    %45 = arith.mulf %42, %44 : vector<8x2048xf32>
    %46 = vector.extract_strided_slice %0 {offsets = [0, 32], sizes = [8, 2016], strides = [1, 1]} : vector<8x2048xf32> to vector<8x2016xf32>
    %47 = vector.extract_strided_slice %0 {offsets = [0, 0], sizes = [8, 32], strides = [1, 1]} : vector<8x2048xf32> to vector<8x32xf32>
    %48 = tpu.concatenate %46, %47 in 1 : vector<8x2016xf32>, vector<8x32xf32> -> vector<8x2048xf32>
    %c7 = arith.constant 7 : index
    %c0_12 = arith.constant 0 : index
    %49 = vector.load %arg2[%c7, %c0_12] : memref<9x2048xf32, #tpu.memory_space<vmem>>, vector<1x2048xf32>
    %50 = vector.broadcast %49 : vector<1x2048xf32> to vector<8x2048xf32>
    %51 = arith.mulf %48, %50 : vector<8x2048xf32>
    %52 = tpu.concatenate %45, %51 in 0 : vector<8x2048xf32>, vector<8x2048xf32> -> vector<16x2048xf32>
    %53 = arith.truncf %52 : vector<16x2048xf32> to vector<16x2048xbf16>
    %c48 = arith.constant 48 : index
    %c0_13 = arith.constant 0 : index
    %54 = vector.load %arg8[%c48, %c0_13] : memref<72x2048xbf16, #tpu.memory_space<vmem>>, vector<16x2048xbf16>
    tpu.vector_store %arg8[%c48, %c0_13], %53 {strides = array<i32>} : memref<72x2048xbf16, #tpu.memory_space<vmem>>, vector<16x2048xbf16>,
    %55 = vector.extract_strided_slice %0 {offsets = [0, 33], sizes = [8, 2015], strides = [1, 1]} : vector<8x2048xf32> to vector<8x2015xf32>
    %56 = vector.extract_strided_slice %0 {offsets = [0, 0], sizes = [8, 33], strides = [1, 1]} : vector<8x2048xf32> to vector<8x33xf32>
    %57 = tpu.concatenate %55, %56 in 1 : vector<8x2015xf32>, vector<8x33xf32> -> vector<8x2048xf32>
    %c8 = arith.constant 8 : index
    %c0_14 = arith.constant 0 : index
    %58 = vector.load %arg2[%c8, %c0_14] : memref<9x2048xf32, #tpu.memory_space<vmem>>, vector<1x2048xf32>
    %59 = vector.broadcast %58 : vector<1x2048xf32> to vector<8x2048xf32>
    %60 = arith.mulf %57, %59 : vector<8x2048xf32>
    %61 = arith.truncf %60 : vector<8x2048xf32> to vector<8x2048xbf16>
    %c64 = arith.constant 64 : index
    %c0_15 = arith.constant 0 : index
    %62 = vector.load %arg8[%c64, %c0_15] : memref<72x2048xbf16, #tpu.memory_space<vmem>>, vector<8x2048xbf16>
    tpu.vector_store %arg8[%c64, %c0_15], %61 {strides = array<i32>} : memref<72x2048xbf16, #tpu.memory_space<vmem>>, vector<8x2048xbf16>,
    %c0_16 = arith.constant 0 : index
    %c0_17 = arith.constant 0 : index
    %63 = vector.load %arg3[%c0_16, %c0_17] : memref<16x72xbf16, #tpu.memory_space<vmem>>, vector<16x72xbf16>
    %c0_18 = arith.constant 0 : index
    %c0_19 = arith.constant 0 : index
    %64 = vector.load %arg8[%c0_18, %c0_19] : memref<72x2048xbf16, #tpu.memory_space<vmem>>, vector<72x2048xbf16>
    %cst = arith.constant dense<0.000000e+00> : vector<16x2048xf32>
    %65 = tpu.matmul %63, %64, %cst {dimension_numbers = #tpu.dot_dimension_numbers<[1], [0], [0], [1], [0, 0, 1, 1], [], []>} : vector<16x72xbf16>, vector<72x2048xbf16>, vector<16x2048xf32> -> vector<16x2048xf32>
    %66 = vector.extract_strided_slice %65 {offsets = [0, 0], sizes = [8, 2048], strides = [1, 1]} : vector<16x2048xf32> to vector<8x2048xf32>
    %c0_20 = arith.constant 0 : index
    %c0_21 = arith.constant 0 : index
    %67 = vector.load %arg4[%c0_20, %c0_21] : memref<8x1xf32, #tpu.memory_space<vmem>>, vector<8x1xf32>
    %68 = vector.broadcast %67 : vector<8x1xf32> to vector<8x2048xf32>
    %69 = arith.addf %66, %68 : vector<8x2048xf32>
    %cst_22 = arith.constant 0.000000e+00 : f32
    %70 = vector.broadcast %cst_22 : f32 to vector<8x2048xf32>
    %71 = arith.maximumf %69, %70 : vector<8x2048xf32>
    %72 = vector.extract_strided_slice %65 {offsets = [8, 0], sizes = [8, 2048], strides = [1, 1]} : vector<16x2048xf32> to vector<8x2048xf32>
    %73 = vector.extract_strided_slice %71 {offsets = [0, 2015], sizes = [8, 33], strides = [1, 1]} : vector<8x2048xf32> to vector<8x33xf32>
    %74 = vector.extract_strided_slice %71 {offsets = [0, 0], sizes = [8, 2015], strides = [1, 1]} : vector<8x2048xf32> to vector<8x2015xf32>
    %75 = tpu.concatenate %73, %74 in 1 : vector<8x33xf32>, vector<8x2015xf32> -> vector<8x2048xf32>
    %c0_23 = arith.constant 0 : index
    %c0_24 = arith.constant 0 : index
    %76 = vector.load %arg2[%c0_23, %c0_24] : memref<9x2048xf32, #tpu.memory_space<vmem>>, vector<1x2048xf32>
    %77 = vector.broadcast %76 : vector<1x2048xf32> to vector<8x2048xf32>
    %78 = arith.mulf %75, %77 : vector<8x2048xf32>
    %79 = vector.extract_strided_slice %71 {offsets = [0, 2016], sizes = [8, 32], strides = [1, 1]} : vector<8x2048xf32> to vector<8x32xf32>
    %80 = vector.extract_strided_slice %71 {offsets = [0, 0], sizes = [8, 2016], strides = [1, 1]} : vector<8x2048xf32> to vector<8x2016xf32>
    %81 = tpu.concatenate %79, %80 in 1 : vector<8x32xf32>, vector<8x2016xf32> -> vector<8x2048xf32>
    %c1_25 = arith.constant 1 : index
    %c0_26 = arith.constant 0 : index
    %82 = vector.load %arg2[%c1_25, %c0_26] : memref<9x2048xf32, #tpu.memory_space<vmem>>, vector<1x2048xf32>
    %83 = vector.broadcast %82 : vector<1x2048xf32> to vector<8x2048xf32>
    %84 = arith.mulf %81, %83 : vector<8x2048xf32>
    %85 = tpu.concatenate %78, %84 in 0 : vector<8x2048xf32>, vector<8x2048xf32> -> vector<16x2048xf32>
    %86 = arith.truncf %85 : vector<16x2048xf32> to vector<16x2048xbf16>
    %c0_27 = arith.constant 0 : index
    %c0_28 = arith.constant 0 : index
    %87 = vector.load %arg9[%c0_27, %c0_28] : memref<72x2048xbf16, #tpu.memory_space<vmem>>, vector<16x2048xbf16>
    tpu.vector_store %arg9[%c0_27, %c0_28], %86 {strides = array<i32>} : memref<72x2048xbf16, #tpu.memory_space<vmem>>, vector<16x2048xbf16>,
    %88 = vector.extract_strided_slice %71 {offsets = [0, 2017], sizes = [8, 31], strides = [1, 1]} : vector<8x2048xf32> to vector<8x31xf32>
    %89 = vector.extract_strided_slice %71 {offsets = [0, 0], sizes = [8, 2017], strides = [1, 1]} : vector<8x2048xf32> to vector<8x2017xf32>
    %90 = tpu.concatenate %88, %89 in 1 : vector<8x31xf32>, vector<8x2017xf32> -> vector<8x2048xf32>
    %c2_29 = arith.constant 2 : index
    %c0_30 = arith.constant 0 : index
    %91 = vector.load %arg2[%c2_29, %c0_30] : memref<9x2048xf32, #tpu.memory_space<vmem>>, vector<1x2048xf32>
    %92 = vector.broadcast %91 : vector<1x2048xf32> to vector<8x2048xf32>
    %93 = arith.mulf %90, %92 : vector<8x2048xf32>
    %94 = vector.extract_strided_slice %71 {offsets = [0, 2047], sizes = [8, 1], strides = [1, 1]} : vector<8x2048xf32> to vector<8x1xf32>
    %95 = vector.extract_strided_slice %71 {offsets = [0, 0], sizes = [8, 2047], strides = [1, 1]} : vector<8x2048xf32> to vector<8x2047xf32>
    %96 = tpu.concatenate %94, %95 in 1 : vector<8x1xf32>, vector<8x2047xf32> -> vector<8x2048xf32>
    %c3_31 = arith.constant 3 : index
    %c0_32 = arith.constant 0 : index
    %97 = vector.load %arg2[%c3_31, %c0_32] : memref<9x2048xf32, #tpu.memory_space<vmem>>, vector<1x2048xf32>
    %98 = vector.broadcast %97 : vector<1x2048xf32> to vector<8x2048xf32>
    %99 = arith.mulf %96, %98 : vector<8x2048xf32>
    %100 = tpu.concatenate %93, %99 in 0 : vector<8x2048xf32>, vector<8x2048xf32> -> vector<16x2048xf32>
    %101 = arith.truncf %100 : vector<16x2048xf32> to vector<16x2048xbf16>
    %c16_33 = arith.constant 16 : index
    %c0_34 = arith.constant 0 : index
    %102 = vector.load %arg9[%c16_33, %c0_34] : memref<72x2048xbf16, #tpu.memory_space<vmem>>, vector<16x2048xbf16>
    tpu.vector_store %arg9[%c16_33, %c0_34], %101 {strides = array<i32>} : memref<72x2048xbf16, #tpu.memory_space<vmem>>, vector<16x2048xbf16>,
    %103 = vector.extract_strided_slice %71 {offsets = [0, 1], sizes = [8, 2047], strides = [1, 1]} : vector<8x2048xf32> to vector<8x2047xf32>
    %104 = vector.extract_strided_slice %71 {offsets = [0, 0], sizes = [8, 1], strides = [1, 1]} : vector<8x2048xf32> to vector<8x1xf32>
    %105 = tpu.concatenate %103, %104 in 1 : vector<8x2047xf32>, vector<8x1xf32> -> vector<8x2048xf32>
    %c5_35 = arith.constant 5 : index
    %c0_36 = arith.constant 0 : index
    %106 = vector.load %arg2[%c5_35, %c0_36] : memref<9x2048xf32, #tpu.memory_space<vmem>>, vector<1x2048xf32>
    %107 = vector.broadcast %106 : vector<1x2048xf32> to vector<8x2048xf32>
    %108 = arith.mulf %105, %107 : vector<8x2048xf32>
    %109 = tpu.concatenate %71, %108 in 0 : vector<8x2048xf32>, vector<8x2048xf32> -> vector<16x2048xf32>
    %110 = arith.truncf %109 : vector<16x2048xf32> to vector<16x2048xbf16>
    %c32_37 = arith.constant 32 : index
    %c0_38 = arith.constant 0 : index
    %111 = vector.load %arg9[%c32_37, %c0_38] : memref<72x2048xbf16, #tpu.memory_space<vmem>>, vector<16x2048xbf16>
    tpu.vector_store %arg9[%c32_37, %c0_38], %110 {strides = array<i32>} : memref<72x2048xbf16, #tpu.memory_space<vmem>>, vector<16x2048xbf16>,
    %112 = vector.extract_strided_slice %71 {offsets = [0, 31], sizes = [8, 2017], strides = [1, 1]} : vector<8x2048xf32> to vector<8x2017xf32>
    %113 = vector.extract_strided_slice %71 {offsets = [0, 0], sizes = [8, 31], strides = [1, 1]} : vector<8x2048xf32> to vector<8x31xf32>
    %114 = tpu.concatenate %112, %113 in 1 : vector<8x2017xf32>, vector<8x31xf32> -> vector<8x2048xf32>
    %c6_39 = arith.constant 6 : index
    %c0_40 = arith.constant 0 : index
    %115 = vector.load %arg2[%c6_39, %c0_40] : memref<9x2048xf32, #tpu.memory_space<vmem>>, vector<1x2048xf32>
    %116 = vector.broadcast %115 : vector<1x2048xf32> to vector<8x2048xf32>
    %117 = arith.mulf %114, %116 : vector<8x2048xf32>
    %118 = vector.extract_strided_slice %71 {offsets = [0, 32], sizes = [8, 2016], strides = [1, 1]} : vector<8x2048xf32> to vector<8x2016xf32>
    %119 = vector.extract_strided_slice %71 {offsets = [0, 0], sizes = [8, 32], strides = [1, 1]} : vector<8x2048xf32> to vector<8x32xf32>
    %120 = tpu.concatenate %118, %119 in 1 : vector<8x2016xf32>, vector<8x32xf32> -> vector<8x2048xf32>
    %c7_41 = arith.constant 7 : index
    %c0_42 = arith.constant 0 : index
    %121 = vector.load %arg2[%c7_41, %c0_42] : memref<9x2048xf32, #tpu.memory_space<vmem>>, vector<1x2048xf32>
    %122 = vector.broadcast %121 : vector<1x2048xf32> to vector<8x2048xf32>
    %123 = arith.mulf %120, %122 : vector<8x2048xf32>
    %124 = tpu.concatenate %117, %123 in 0 : vector<8x2048xf32>, vector<8x2048xf32> -> vector<16x2048xf32>
    %125 = arith.truncf %124 : vector<16x2048xf32> to vector<16x2048xbf16>
    %c48_43 = arith.constant 48 : index
    %c0_44 = arith.constant 0 : index
    %126 = vector.load %arg9[%c48_43, %c0_44] : memref<72x2048xbf16, #tpu.memory_space<vmem>>, vector<16x2048xbf16>
    tpu.vector_store %arg9[%c48_43, %c0_44], %125 {strides = array<i32>} : memref<72x2048xbf16, #tpu.memory_space<vmem>>, vector<16x2048xbf16>,
    %127 = vector.extract_strided_slice %71 {offsets = [0, 33], sizes = [8, 2015], strides = [1, 1]} : vector<8x2048xf32> to vector<8x2015xf32>
    %128 = vector.extract_strided_slice %71 {offsets = [0, 0], sizes = [8, 33], strides = [1, 1]} : vector<8x2048xf32> to vector<8x33xf32>
    %129 = tpu.concatenate %127, %128 in 1 : vector<8x2015xf32>, vector<8x33xf32> -> vector<8x2048xf32>
    %c8_45 = arith.constant 8 : index
    %c0_46 = arith.constant 0 : index
    %130 = vector.load %arg2[%c8_45, %c0_46] : memref<9x2048xf32, #tpu.memory_space<vmem>>, vector<1x2048xf32>
    %131 = vector.broadcast %130 : vector<1x2048xf32> to vector<8x2048xf32>
    %132 = arith.mulf %129, %131 : vector<8x2048xf32>
    %133 = arith.truncf %132 : vector<8x2048xf32> to vector<8x2048xbf16>
    %c64_47 = arith.constant 64 : index
    %c0_48 = arith.constant 0 : index
    %134 = vector.load %arg9[%c64_47, %c0_48] : memref<72x2048xbf16, #tpu.memory_space<vmem>>, vector<8x2048xbf16>
    tpu.vector_store %arg9[%c64_47, %c0_48], %133 {strides = array<i32>} : memref<72x2048xbf16, #tpu.memory_space<vmem>>, vector<8x2048xbf16>,
    %c0_49 = arith.constant 0 : index
    %c0_50 = arith.constant 0 : index
    %135 = vector.load %arg5[%c0_49, %c0_50] : memref<8x72xbf16, #tpu.memory_space<vmem>>, vector<8x72xbf16>
    %c0_51 = arith.constant 0 : index
    %c0_52 = arith.constant 0 : index
    %136 = vector.load %arg9[%c0_51, %c0_52] : memref<72x2048xbf16, #tpu.memory_space<vmem>>, vector<72x2048xbf16>
    %cst_53 = arith.constant dense<0.000000e+00> : vector<8x2048xf32>
    %137 = tpu.matmul %135, %136, %cst_53 {dimension_numbers = #tpu.dot_dimension_numbers<[1], [0], [0], [1], [0, 0, 1, 1], [], []>} : vector<8x72xbf16>, vector<72x2048xbf16>, vector<8x2048xf32> -> vector<8x2048xf32>
    %c0_54 = arith.constant 0 : index
    %c0_55 = arith.constant 0 : index
    %138 = vector.load %arg6[%c0_54, %c0_55] : memref<8x1xf32, #tpu.memory_space<vmem>>, vector<8x1xf32>
    %139 = vector.broadcast %138 : vector<8x1xf32> to vector<8x2048xf32>
    %140 = arith.addf %137, %139 : vector<8x2048xf32>
    %141 = arith.addf %140, %72 : vector<8x2048xf32>
    %cst_56 = arith.constant 0.000000e+00 : f32
    %142 = vector.broadcast %cst_56 : f32 to vector<8x2048xf32>
    %143 = arith.maximumf %141, %142 : vector<8x2048xf32>
    %c0_57 = arith.constant 0 : index
    %c0_58 = arith.constant 0 : index
    %144 = vector.load %arg7[%c0_57, %c0_58] : memref<8x2048xf32, #tpu.memory_space<vmem>>, vector<8x2048xf32>
    tpu.vector_store %arg7[%c0_57, %c0_58], %143 {strides = array<i32>} : memref<8x2048xf32, #tpu.memory_space<vmem>>, vector<8x2048xf32>,
    return
  }
  func.func @transform_0(%arg0: i32) -> (i32, i32) {
    %c0_i32 = arith.constant 0 : i32
    %c0_i32_0 = arith.constant 0 : i32
    return %c0_i32, %arg0 : i32, i32
  }
  func.func @transform_1(%arg0: i32) -> (i32, i32) {
    %c0_i32 = arith.constant 0 : i32
    %c0_i32_0 = arith.constant 0 : i32
    %c0_i32_1 = arith.constant 0 : i32
    return %c0_i32, %c0_i32_0 : i32, i32
  }
  func.func @transform_2(%arg0: i32) -> (i32, i32) {
    %c0_i32 = arith.constant 0 : i32
    %c0_i32_0 = arith.constant 0 : i32
    %c0_i32_1 = arith.constant 0 : i32
    return %c0_i32, %c0_i32_0 : i32, i32
  }
  func.func @transform_3(%arg0: i32) -> (i32, i32) {
    %c0_i32 = arith.constant 0 : i32
    %c0_i32_0 = arith.constant 0 : i32
    %c0_i32_1 = arith.constant 0 : i32
    return %c0_i32, %c0_i32_0 : i32, i32
  }
  func.func @transform_4(%arg0: i32) -> (i32, i32) {
    %c0_i32 = arith.constant 0 : i32
    %c0_i32_0 = arith.constant 0 : i32
    %c0_i32_1 = arith.constant 0 : i32
    return %c0_i32, %c0_i32_0 : i32, i32
  }
  func.func @transform_5(%arg0: i32) -> (i32, i32) {
    %c0_i32 = arith.constant 0 : i32
    %c0_i32_0 = arith.constant 0 : i32
    %c0_i32_1 = arith.constant 0 : i32
    return %c0_i32, %c0_i32_0 : i32, i32
  }
  func.func @transform_6(%arg0: i32) -> (i32, i32) {
    %c0_i32 = arith.constant 0 : i32
    %c0_i32_0 = arith.constant 0 : i32
    return %c0_i32, %arg0 : i32, i32
  }
}

</mosaic_0001>

<bundles_post_ra>
// kernel: conv_t_basic_block.1
= control target key start
LH: loop header
LB: loop body
LE: loop exit
PB: predicated region body
PF: predicated region fallthrough
CT: control target
= control target key end

     0   :  { %s6305_s23 = smov 32   ;;  %s6306_s24 = smov 33   ;;  %v8997_v6 = vmov 0   ;;  %v131_v12 = vlaneseq  ;;  %vm260_vm0 = vcmask 261120   ;;  %vm89_vm1 = vcmask 269312   ;;  %s8990_s0 = inlined_call_operand.vmem [shape: f32[8,2048], index: 0, kind: input, shape index: {}]   ;;  %s8991_s2 = inlined_call_operand.vmem [shape: bf16[16,72], index: 2, kind: input, shape index: {}]   ;;  %s8992_s1 = inlined_call_operand.vmem [shape: f32[9,2048], index: 1, kind: input, shape index: {}]   ;;  %s8993_s3 = inlined_call_operand.vmem [shape: f32[8,1], index: 3, kind: input, shape index: {}]   ;;  %s8994_s4 = inlined_call_operand.vmem [shape: bf16[8,72], index: 4, kind: input, shape index: {}]   ;;  %s8995_s5 = inlined_call_operand.vmem [shape: f32[8,1], index: 5, kind: input, shape index: {}]   ;;  %s8996_s6 = inlined_call_operand.vmem [shape: f32[8,2048], index: 6, kind: output, shape index: {}]  }
   0x1   :  { %v6352_v0 = vld [vmem:[%s8990_s0 + $0x10] sm:$0xff]  ;;  %v6361_v1 = vld [vmem:[%s8990_s0 + $0x18] sm:$0xff]  ;;  %v6370_v2 = vld [vmem:[%s8990_s0 + $0x8] sm:$0xff]  ;;  %s6307_s29 = smov 31   ;;  %s6308_s30 = smov 1   ;;  %2518 = vmatprep.mubr.bf16.mxu1 %v8997_v6  ;;  %2475 = vmatprep.mubr.bf16.mxu0 %v8997_v6  ;;  %vm544_vm2 = vcmask 252928  }
   0x2   :  { %234 = vrot.lane.b32.xlu1 %v6352_v0, %s6305_s23  ;;  %63 = vrot.lane.b32.xlu0 %v6352_v0, %s6306_s24  ;;  %v6391_v3 = vld [vmem:[%s8990_s0 + $0x20] sm:$0xff]  ;;  %s6309_s9 = smov 127   ;;  %s6310_s10 = smov 97   ;;  %v6420_v4 = vld [vmem:[%s8990_s0 + $0x38] sm:$0xff]  ;;  %v6515_v13 = vshrl.u32 %v131_v12, 7  ;;  %vm716_vm3 = vcmask 7168  }
   0x3   :  { %s6311_s11 = smov 96   ;;  %s6312_s12 = smov 95   ;;  %v6425_v5 = vld [vmem:[%s8990_s0 + $0x30] sm:$0xff]  ;;  %6293 = vset.pattern.permute.xlu0 %v8997_v6  ;;  %v6441_v7 = vld [vmem:[%s8990_s0 + $0x28] sm:$0xff]  ;;  %v6462_v8 = vld [vmem:[%s8990_s0 + $0x40] sm:$0xff]  ;;  %vm999_vm4 = vcmask 1039360  }
   0x4   :  { %v6491_v9 = vld [vmem:[%s8990_s0 + $0x58] sm:$0xff]  ;;  %v6496_v10 = vld [vmem:[%s8990_s0 + $0x50] sm:$0xff]  ;;  %v6509_v11 = vld [vmem:[%s8990_s0 + $0x48] sm:$0xff]  ;;  %v6540_v19 = vsub.s32 3, %v6515_v13  ;;  %v6545_v23 = vsub.s32 2, %v6515_v13  ;;  %vm1283_vm5 = vcmask 793600  }
   0x5   :  { %v122_v14 = vld [vmem:[%s8992_s1] ss:$8 sm:$0xf]  ;;  %v5585_v16 = vld [vmem:[%s8992_s1 + $0x1] ss:$8 sm:$0xf] }
   0x6   :  { %236 = vrot.lane.b32.xlu1 %v6361_v1, %s6305_s23  ;;  %65 = vrot.lane.b32.xlu0 %v6361_v1, %s6306_s24  ;;  %v123_v15 = vld [vmem:[%s8992_s1] ss:$8 sm:$0xf0]  ;;  %v5586_v17 = vld [vmem:[%s8992_s1 + $0x1] ss:$8 sm:$0xf0] }
   0x7   :  { %v6537_v18 = vor.u32 %v123_v15, %v122_v14  ;;  %v6542_v20 = vor.u32 %v5586_v17, %v5585_v16  ;;  %v6558_v26 = vld [vmem:[%s8990_s0] sm:$0xff]  ;;  %v6612_v49 = vld [vmem:[%s8990_s0 + $0x78] sm:$0xff]  ;;  %vm1455_vm6 = vcmask 785408   ;;  %vm1739_vm7 = vcmask 777216  }
   0x8   :  { %v6571_v31 = vld [vmem:[%s8990_s0 + $0x60] sm:$0xff]  ;;  %vm2394_vm8 = vcmask 1043456   ;;  %vm2390_vm9 = vcmask 588800  }
   0x9   :  { %v146_v24 = vrot.slane %v6537_v18, %v6540_v19  ;;  %v318_v25 = vrot.slane %v6542_v20, %v6540_v19  ;;  %v142_v32 = vrot.slane %v6537_v18, %v6545_v23  ;;  %v5605_v35 = vld [vmem:[%s8992_s1 + $0x2] ss:$8 sm:$0xf]  ;;  %v314_v37 = vrot.slane %v6542_v20, %v6545_v23  ;;  %v5609_v38 = vld [vmem:[%s8992_s1 + $0x3] ss:$8 sm:$0xf] }
   0xa   :  { %232 = vrot.lane.b32.xlu1 %v6370_v2, %s6305_s23  ;;  %61 = vrot.lane.b32.xlu0 %v6370_v2, %s6306_s24  ;;  %v5606_v36 = vld [vmem:[%s8992_s1 + $0x2] ss:$8 sm:$0xf0]  ;;  %v5610_v39 = vld [vmem:[%s8992_s1 + $0x3] ss:$8 sm:$0xf0] }
   0xb   :  { %v6601_v45 = vor.u32 %v5606_v36, %v5605_v35  ;;  %v6605_v48 = vor.u32 %v5610_v39, %v5609_v38  ;;  %v5629_v56 = vld [vmem:[%s8992_s1 + $0x5] ss:$8 sm:$0xf]  ;;  %v5650_v38 = vld [vmem:[%s8992_s1 + $0x6] ss:$8 sm:$0xf0] }
   0xc   :  { %v5630_v57 = vld [vmem:[%s8992_s1 + $0x5] ss:$8 sm:$0xf0]  ;;  %v5653_v39 = vld [vmem:[%s8992_s1 + $0x7] ss:$8 sm:$0xf] }
   0xd   :  { %v602_v53 = vrot.slane %v6601_v45, %v6540_v19  ;;  %v774_v54 = vrot.slane %v6605_v48, %v6540_v19  ;;  %v598_v61 = vrot.slane %v6601_v45, %v6545_v23  ;;  %v770_v12 = vrot.slane %v6605_v48, %v6545_v23 }
   0xe   :  { %520 = vrot.lane.b32.xlu1 %v6361_v1, %s6307_s29  ;;  %518 = vrot.lane.b32.xlu0 %v6352_v0, %s6307_s29  ;;  %v6642_v14 = vor.u32 %v5630_v57, %v5629_v56 }
  0x10   :  { %v1054_v36 = vrot.slane %v6642_v14, %v6545_v23 }
  0x12   :  { %692 = vrot.lane.b32.xlu1 %v6361_v1, %s6308_s30  ;;  %690 = vrot.lane.b32.xlu0 %v6352_v0, %s6308_s30 }
  0x16   :  { %688 = vrot.lane.b32.xlu1 %v6370_v2, %s6308_s30  ;;  %516 = vrot.lane.b32.xlu0 %v6370_v2, %s6307_s29 }
  0x1a   :  { %975 = vrot.lane.b32.xlu1 %v6391_v3, %s6309_s9  ;;  %973 = vrot.lane.b32.xlu0 %v6361_v1, %s6309_s9 }
  0x1e   :  { %1257 = vrot.lane.b32.xlu1 %v6361_v1, %s6310_s10  ;;  %971 = vrot.lane.b32.xlu0 %v6352_v0, %s6309_s9 }
  0x22   :  { %1429 = vrot.lane.b32.xlu1 %v6361_v1, %s6311_s11  ;;  %1259 = vrot.lane.b32.xlu0 %v6391_v3, %s6310_s10 }
  0x26   :  { %1255 = vrot.lane.b32.xlu1 %v6352_v0, %s6310_s10  ;;  %1431 = vrot.lane.b32.xlu0 %v6391_v3, %s6311_s11 }
  0x2a   :  { %1711 = vrot.lane.b32.xlu1 %v6352_v0, %s6312_s12  ;;  %1427 = vrot.lane.b32.xlu0 %v6352_v0, %s6311_s11 }
  0x2e   :  { %1715 = vrot.lane.b32.xlu1 %v6391_v3, %s6312_s12  ;;  %1713 = vrot.lane.b32.xlu0 %v6361_v1, %s6312_s12 }
  0x32   :  { %73 = vrot.lane.b32.xlu1 %v6420_v4, %s6306_s24  ;;  %71 = vrot.lane.b32.xlu0 %v6425_v5, %s6306_s24 }
  0x36   :  { %244 = vrot.lane.b32.xlu1 %v6420_v4, %s6305_s23  ;;  %242 = vrot.lane.b32.xlu0 %v6425_v5, %s6305_s23 }
  0x3a   :  { %240 = vrot.lane.b32.xlu1 %v6441_v7, %s6305_s23  ;;  %69 = vrot.lane.b32.xlu0 %v6441_v7, %s6306_s24 }
  0x3e   :  { %528 = vrot.lane.b32.xlu1 %v6420_v4, %s6307_s29  ;;  %526 = vrot.lane.b32.xlu0 %v6425_v5, %s6307_s29 }
  0x42   :  { %700 = vrot.lane.b32.xlu1 %v6420_v4, %s6308_s30  ;;  %698 = vrot.lane.b32.xlu0 %v6425_v5, %s6308_s30 }
  0x46   :  { %696 = vrot.lane.b32.xlu1 %v6441_v7, %s6308_s30  ;;  %524 = vrot.lane.b32.xlu0 %v6441_v7, %s6307_s29 }
  0x4a   :  { %983 = vrot.lane.b32.xlu1 %v6462_v8, %s6309_s9  ;;  %981 = vrot.lane.b32.xlu0 %v6420_v4, %s6309_s9 }
  0x4e   :  { %1265 = vrot.lane.b32.xlu1 %v6420_v4, %s6310_s10  ;;  %979 = vrot.lane.b32.xlu0 %v6425_v5, %s6309_s9 }
  0x52   :  { %1437 = vrot.lane.b32.xlu1 %v6420_v4, %s6311_s11  ;;  %1267 = vrot.lane.b32.xlu0 %v6462_v8, %s6310_s10 }
  0x56   :  { %1263 = vrot.lane.b32.xlu1 %v6425_v5, %s6310_s10  ;;  %1439 = vrot.lane.b32.xlu0 %v6462_v8, %s6311_s11 }
  0x5a   :  { %1719 = vrot.lane.b32.xlu1 %v6425_v5, %s6312_s12  ;;  %1435 = vrot.lane.b32.xlu0 %v6425_v5, %s6311_s11 }
  0x5e   :  { %1723 = vrot.lane.b32.xlu1 %v6462_v8, %s6312_s12  ;;  %1721 = vrot.lane.b32.xlu0 %v6420_v4, %s6312_s12 }
  0x62   :  { %81 = vrot.lane.b32.xlu1 %v6491_v9, %s6306_s24  ;;  %79 = vrot.lane.b32.xlu0 %v6496_v10, %s6306_s24 }
  0x66   :  { %252 = vrot.lane.b32.xlu1 %v6491_v9, %s6305_s23  ;;  %250 = vrot.lane.b32.xlu0 %v6496_v10, %s6305_s23 }
  0x6a   :  { %248 = vrot.lane.b32.xlu1 %v6509_v11, %s6305_s23  ;;  %77 = vrot.lane.b32.xlu0 %v6509_v11, %s6306_s24 }
  0x6e   :  { %536 = vrot.lane.b32.xlu1 %v6491_v9, %s6307_s29  ;;  %534 = vrot.lane.b32.xlu0 %v6496_v10, %s6307_s29 }
  0x72   :  { %708 = vrot.lane.b32.xlu1 %v6491_v9, %s6308_s30  ;;  %706 = vrot.lane.b32.xlu0 %v6496_v10, %s6308_s30 }
  0x74   :  { %v235_v21 = vpop.permute.xlu1 %234  ;;  %v64_v22 = vpop.permute.xlu0 %63 }
  0x76   :  { %704 = vrot.lane.b32.xlu1 %v6509_v11, %s6308_s30  ;;  %532 = vrot.lane.b32.xlu0 %v6509_v11, %s6307_s29 }
  0x78   :  { %v6560_v27 = vpop.permute.xlu1 %236  ;;  %v6562_v28 = vpop.permute.xlu0 %65 }
  0x79   :  { %v92_v29 = vsel %vm89_vm1, %v64_v22, %v6562_v28  ;;  %v263_v30 = vsel %vm260_vm0, %v235_v21, %v6560_v27 }
  0x7a   :  { %230 = vrot.lane.b32.xlu1 %v6558_v26, %s6305_s23  ;;  %59 = vrot.lane.b32.xlu0 %v6558_v26, %s6306_s24  ;;  %v214_v33 = vmul.f32 %v146_v24, %v92_v29  ;;  %v386_v34 = vmul.f32 %v318_v25, %v263_v30  ;;  %v1058_v29 = vrot.slane %v6642_v14, %v6540_v19 }
  0x7c   :  { %v6593_v40 = vpop.permute.xlu1 %232  ;;  %v6595_v41 = vpop.permute.xlu0 %61  ;;  %v6127_v42 = vpack.c.bf16 %v386_v34, %v214_v33 }
  0x7d   :  { %v262_v43 = vsel %vm260_vm0, %v6593_v40, %v235_v21  ;;  %v91_v44 = vsel %vm89_vm1, %v6595_v41, %v64_v22 }
  0x7e   :  { %2486 = vmatprep.subr.bf16.mxu1 %v6127_v42  ;;  %991 = vrot.lane.b32.xlu1 %v6571_v31, %s6309_s9  ;;  %v213_v46 = vmul.f32 %v142_v32, %v91_v44  ;;  %v385_v47 = vmul.f32 %v314_v37, %v262_v43  ;;  %v5649_v37 = vld [vmem:[%s8992_s1 + $0x6] ss:$8 sm:$0xf]  ;;  %v5654_v42 = vld [vmem:[%s8992_s1 + $0x7] ss:$8 sm:$0xf0] }
  0x7f   :  { %989 = vrot.lane.b32.xlu0 %v6491_v9, %s6309_s9 }
  0x80   :  { %v6614_v50 = vpop.permute.xlu1 %520  ;;  %v519_v51 = vpop.permute.xlu0 %518  ;;  %v6126_v52 = vpack.c.bf16 %v385_v47, %v213_v46 }
  0x81   :  { %v547_v55 = vsel %vm544_vm2, %v519_v51, %v6614_v50 }
  0x82   :  { %2487 = vmatpush1.bf16.msra.mxu1 %v6126_v52  ;;  %227 = vrot.lane.b32.xlu1 %v6612_v49, %s6305_s23  ;;  %v670_v62 = vmul.f32 %v602_v53, %v547_v55  ;;  %v6689_v52 = vor.u32 %v5650_v38, %v5649_v37  ;;  %v6691_v53 = vor.u32 %v5654_v42, %v5653_v39 }
  0x83   :  { %41 = vrot.lane.b32.xlu0 %v6612_v49, %s6306_s24 }
  0x84   :  { %v6632_v58 = vpop.permute.xlu1 %692  ;;  %v691_v59 = vpop.permute.xlu0 %690  ;;  %v1342_v56 = vrot.slane %v6689_v52, %v6540_v19  ;;  %v1514_v57 = vrot.slane %v6691_v53, %v6540_v19 }
  0x85   :  { %v719_v60 = vsel %vm716_vm3, %v691_v59, %v6632_v58 }
  0x86   :  { %v842_v63 = vmul.f32 %v774_v54, %v719_v60  ;;  %514 = vrot.lane.b32.xlu1 %v6558_v26, %s6307_s29  ;;  %v5674_v60 = vld [vmem:[%s8992_s1 + $0x80] ss:$8 sm:$0xf0] }
  0x87   :  { %987 = vrot.lane.b32.xlu0 %v6496_v10, %s6309_s9 }
  0x88   :  { %v6646_v15 = vpop.permute.xlu1 %688  ;;  %v6648_v16 = vpop.permute.xlu0 %516  ;;  %v6143_v17 = vpack.c.bf16 %v842_v63, %v670_v62 }
  0x89   :  { %v718_v21 = vsel %vm716_vm3, %v6646_v15, %v691_v59  ;;  %v546_v22 = vsel %vm544_vm2, %v6648_v16, %v519_v51  ;;  %v5673_v59 = vld [vmem:[%s8992_s1 + $0x80] ss:$8 sm:$0xf] }
  0x8a   :  { %v841_v24 = vmul.f32 %v770_v12, %v718_v21  ;;  %v669_v25 = vmul.f32 %v598_v61, %v546_v22  ;;  %2488 = vmatprep.subr.bf16.mxu1 %v6143_v17  ;;  %1273 = vrot.lane.b32.xlu1 %v6491_v9, %s6310_s10  ;;  %v6720_v12 = vor.u32 %v5674_v60, %v5673_v59 }
  0x8b   :  { %686 = vrot.lane.b32.xlu0 %v6558_v26, %s6308_s30  ;;  %v1338_v21 = vrot.slane %v6689_v52, %v6545_v23 }
  0x8c   :  { %v6660_v30 = vpop.permute.xlu1 %975  ;;  %v974_v32 = vpop.permute.xlu0 %973  ;;  %v6142_v33 = vpack.c.bf16 %v841_v24, %v669_v25  ;;  %v1510_v24 = vrot.slane %v6691_v53, %v6545_v23  ;;  %v1794_v38 = vrot.slane %v6720_v12, %v6545_v23 }
  0x8d   :  { %9077 = vst [vmem:[#allocation4_spill] sm:$0xff] %v6660_v30  ;;  %v1003_v34 = vsel %vm999_vm4, %v974_v32, %v6660_v30 }
  0x8e   :  { %v1126_v35 = vmul.f32 %v1058_v29, %v1003_v34  ;;  %2489 = vmatpush1.bf16.msra.mxu1 %v6142_v33  ;;  %1445 = vrot.lane.b32.xlu1 %v6491_v9, %s6311_s11 }
  0x8f   :  { %1275 = vrot.lane.b32.xlu0 %v6571_v31, %s6310_s10 }
  0x90   :  { %v1258_v43 = vpop.permute.xlu1 %1257  ;;  %v6682_v44 = vpop.permute.xlu0 %971  ;;  %v6159_v46 = vpack.c.bf16 %v1126_v35, %v6361_v1  ;;  %v1798_v35 = vrot.slane %v6720_v12, %v6540_v19 }
  0x91   :  { %v1002_v47 = vsel %vm999_vm4, %v6682_v44, %v974_v32 }
  0x92   :  { %v1125_v51 = vmul.f32 %v1054_v36, %v1002_v47  ;;  %2490 = vmatprep.subr.bf16.mxu1 %v6159_v46  ;;  %511 = vrot.lane.b32.xlu1 %v6612_v49, %s6307_s29 }
  0x93   :  { %1447 = vrot.lane.b32.xlu0 %v6571_v31, %s6311_s11 }
  0x94   :  { %v1430_v54 = vpop.permute.xlu1 %1429  ;;  %v6695_v55 = vpop.permute.xlu0 %1259  ;;  %v6158_v1 = vpack.c.bf16 %v1125_v51, %v6352_v0 }
  0x95   :  { %9078 = vst [vmem:[#allocation5_spill] sm:$0xff] %v6695_v55  ;;  %v1287_v0 = vsel %vm1283_vm5, %v1258_v43, %v6695_v55 }
  0x96   :  { %2491 = vmatpush1.bf16.msra.mxu1 %v6158_v1  ;;  %1271 = vrot.lane.b32.xlu1 %v6496_v10, %s6310_s10  ;;  %v1410_v17 = vmul.f32 %v1342_v56, %v1287_v0  ;;  %v6762_v56 = vld [vmem:[%s8990_s0 + $0x70] sm:$0xff] }
  0x97   :  { %683 = vrot.lane.b32.xlu0 %v6612_v49, %s6308_s30 }
  0x98   :  { %v6714_v61 = vpop.permute.xlu1 %1255  ;;  %v6716_v62 = vpop.permute.xlu0 %1431 }
  0x99   :  { %9079 = vst [vmem:[#allocation6_spill] sm:$0xff] %v6716_v62  ;;  %v1459_v63 = vsel %vm1455_vm6, %v1430_v54, %v6716_v62  ;;  %v1286_v25 = vsel %vm1283_vm5, %v6714_v61, %v1258_v43 }
  0x9a   :  { %v1582_v22 = vmul.f32 %v1514_v57, %v1459_v63  ;;  %969 = vrot.lane.b32.xlu1 %v6370_v2, %s6309_s9  ;;  %v1409_v36 = vmul.f32 %v1338_v21, %v1286_v25  ;;  %v6767_v63 = vsub.s32 6, %v6515_v13 }
  0x9b   :  { %1443 = vrot.lane.b32.xlu0 %v6496_v10, %s6311_s11 }
  0x9c   :  { %v6732_v29 = vpop.permute.xlu1 %1711  ;;  %v6734_v32 = vpop.permute.xlu0 %1427  ;;  %v6175_v33 = vpack.c.bf16 %v1582_v22, %v1410_v17  ;;  %9083 = vst [vmem:[#allocation10_spill] sm:$0xff] %v6767_v63 }
  0x9d   :  { %v1458_v34 = vsel %vm1455_vm6, %v6734_v32, %v1430_v54  ;;  %v6755_v54 = vsub.s32 7, %v6515_v13 }
  0x9e   :  { %v1581_v37 = vmul.f32 %v1510_v24, %v1458_v34  ;;  %2492 = vmatprep.subr.bf16.mxu1 %v6175_v33  ;;  %1729 = vrot.lane.b32.xlu1 %v6491_v9, %s6312_s12  ;;  %v6780_v24 = vld [vmem:[%s8991_s2] sm:$0xff]  }
  0x9f   :  { %1727 = vrot.lane.b32.xlu0 %v6496_v10, %s6312_s12  ;;  %9081 = vst [vmem:[#allocation8_spill] sm:$0xff] %v6755_v54  ;;  %v162_v17 = vrot.slane %v6537_v18, %v6755_v54  ;;  %v334_v22 = vrot.slane %v6542_v20, %v6755_v54 }
  0xa0   :  { %v6746_v39 = vpop.permute.xlu1 %1715  ;;  %v1714_v42 = vpop.permute.xlu0 %1713  ;;  %v6174_v43 = vpack.c.bf16 %v1581_v37, %v1409_v36  ;;  %v330_v36 = vrot.slane %v6542_v20, %v6767_v63 }
  0xa1   :  { %9080 = vst [vmem:[#allocation7_spill] sm:$0xff] %v6746_v39  ;;  %v1742_v46 = vsel %vm1739_vm7, %v6732_v29, %v1714_v42  ;;  %v1743_v47 = vsel %vm1739_vm7, %v1714_v42, %v6746_v39  ;;  %v158_v42 = vrot.slane %v6537_v18, %v6767_v63 }
  0xa2   :  { %v1866_v51 = vmul.f32 %v1798_v35, %v1743_v47  ;;  %2493 = vmatpush1.bf16.msra.mxu1 %v6174_v43  ;;  %967 = vrot.lane.b32.xlu1 %v6558_v26, %s6309_s9  ;;  %v1865_v1 = vmul.f32 %v1794_v38, %v1742_v46  ;;  %v6803_v43 = vld [vmem:[%s8990_s0 + $0x68] sm:$0xff] }
  0xa3   :  { %1731 = vrot.lane.b32.xlu0 %v6571_v31, %s6312_s12 }
  0xa4   :  { %v6191_v57 = vpack.c.bf16 %v1866_v51, %v1866_v51  ;;  %v6764_v59 = vpop.permute.xlu1 %73  ;;  %v72_v60 = vpop.permute.xlu0 %71  ;;  %v6190_v0 = vpack.c.bf16 %v1865_v1, %v1865_v1 }
  0xa5   :  { %9082 = vst [vmem:[#allocation9_spill] sm:$0xff] %v6764_v59  ;;  %v96_v25 = vsel %vm89_vm1, %v72_v60, %v6764_v59 }
  0xa6   :  { %5768 = vmatprep.subr.msk.bf16.mxu1 %vm2394_vm8, %v6191_v57  ;;  %258 = vrot.lane.b32.xlu1 %v6762_v56, %s6305_s23  ;;  %v2402_v21 = vsel %vm2394_vm8, %v6190_v0, 0  ;;  %v218_v37 = vmul.f32 %v162_v17, %v96_v25 }
  0xa7   :  { %87 = vrot.lane.b32.xlu0 %v6762_v56, %s6306_s24  ;;  %2495 = vmatpush1.bf16.msra.mxu1 %v2402_v21 }
  0xa8   :  { %v6786_v33 = vpop.permute.xlu1 %244  ;;  %v243_v34 = vpop.permute.xlu0 %242 }
  0xa9   :  { %9084 = vst [vmem:[#allocation11_spill] sm:$0xff] %v6786_v33  ;;  %v267_v35 = vsel %vm260_vm0, %v243_v34, %v6786_v33 }
  0xaa   :  { %v390_v38 = vmul.f32 %v334_v22, %v267_v35  ;;  %1425 = vrot.lane.b32.xlu1 %v6370_v2, %s6311_s11  ;;  %5769 = vmatmul.mubr.msk.bf16.vlgmr.msra.gmra.mrb[0].mxu1 %vm2390_vm9, %v6780_v24  ;;  %v618_v35 = vrot.slane %v6601_v45, %v6755_v54 }
  0xab   :  { %1253 = vrot.lane.b32.xlu0 %v6370_v2, %s6310_s10  ;;  %2604 = vmatprep.mubr.bf16.mxu1 %v8997_v6  ;;  %v1074_v6 = vrot.slane %v6642_v14, %v6755_v54 }
  0xac   :  { %v6806_v46 = vpop.permute.xlu1 %240  ;;  %v6808_v47 = vpop.permute.xlu0 %69  ;;  %v6131_v51 = vpack.c.bf16 %v390_v38, %v218_v37 }
  0xad   :  { %v266_v1 = vsel %vm260_vm0, %v6806_v46, %v243_v34  ;;  %v95_v57 = vsel %vm89_vm1, %v6808_v47, %v72_v60  ;;  %v790_v60 = vrot.slane %v6605_v48, %v6755_v54 }
  0xae   :  { %v389_v0 = vmul.f32 %v330_v36, %v266_v1  ;;  %v217_v17 = vmul.f32 %v158_v42, %v95_v57  ;;  %2572 = vmatprep.subr.bf16.mxu1 %v6131_v51  ;;  %256 = vrot.lane.b32.xlu1 %v6803_v43, %s6305_s23  ;;  %v786_v1 = vrot.slane %v6605_v48, %v6767_v63 }
  0xaf   :  { %85 = vrot.lane.b32.xlu0 %v6803_v43, %s6306_s24  ;;  %v614_v57 = vrot.slane %v6601_v45, %v6767_v63 }
  0xb0   :  { %v6130_v21 = vpack.c.bf16 %v389_v0, %v217_v17  ;;  %v6818_v22 = vpop.permute.xlu1 %528  ;;  %v527_v25 = vpop.permute.xlu0 %526 }
  0xb1   :  { %9085 = vst [vmem:[#allocation12_spill] sm:$0xff] %v6818_v22  ;;  %v551_v34 = vsel %vm544_vm2, %v527_v25, %v6818_v22 }
  0xb2   :  { %2573 = vmatpush1.bf16.msra.mxu1 %v6130_v21  ;;  %1423 = vrot.lane.b32.xlu1 %v6558_v26, %s6311_s11  ;;  %v674_v42 = vmul.f32 %v618_v35, %v551_v34 }
  0xb3   :  { %1251 = vrot.lane.b32.xlu0 %v6558_v26, %s6310_s10 }
  0xb4   :  { %v6830_v36 = vpop.permute.xlu1 %700  ;;  %v699_v37 = vpop.permute.xlu0 %698 }
  0xb5   :  { %9086 = vst [vmem:[#allocation13_spill] sm:$0xff] %v6830_v36  ;;  %v723_v38 = vsel %vm716_vm3, %v699_v37, %v6830_v36 }
  0xb6   :  { %v846_v51 = vmul.f32 %v790_v60, %v723_v38  ;;  %714 = vrot.lane.b32.xlu1 %v6762_v56, %s6308_s30 }
  0xb7   :  { %542 = vrot.lane.b32.xlu0 %v6762_v56, %s6307_s29 }
  0xb8   :  { %v6842_v0 = vpop.permute.xlu1 %696  ;;  %v6844_v17 = vpop.permute.xlu0 %524  ;;  %v6147_v21 = vpack.c.bf16 %v846_v51, %v674_v42 }
  0xb9   :  { %v722_v35 = vsel %vm716_vm3, %v6842_v0, %v699_v37  ;;  %v550_v60 = vsel %vm544_vm2, %v6844_v17, %v527_v25 }
  0xba   :  { %v845_v34 = vmul.f32 %v786_v1, %v722_v35  ;;  %v673_v38 = vmul.f32 %v614_v57, %v550_v60  ;;  %2574 = vmatprep.subr.bf16.mxu1 %v6147_v21  ;;  %1709 = vrot.lane.b32.xlu1 %v6370_v2, %s6312_s12  ;;  %v1070_v2 = vrot.slane %v6642_v14, %v6767_v63 }
  0xbb   :  { %1707 = vrot.lane.b32.xlu0 %v6558_v26, %s6312_s12 }
  0xbc   :  { %v6146_v22 = vpack.c.bf16 %v845_v34, %v673_v38  ;;  %v6856_v42 = vpop.permute.xlu1 %983  ;;  %v982_v51 = vpop.permute.xlu0 %981  ;;  %v1358_v38 = vrot.slane %v6689_v52, %v6755_v54 }
  0xbd   :  { %9087 = vst [vmem:[#allocation14_spill] sm:$0xff] %v6856_v42  ;;  %v1007_v37 = vsel %vm999_vm4, %v982_v51, %v6856_v42 }
  0xbe   :  { %v1130_v25 = vmul.f32 %v1074_v6, %v1007_v37  ;;  %2575 = vmatpush1.bf16.msra.mxu1 %v6146_v22  ;;  %712 = vrot.lane.b32.xlu1 %v6803_v43, %s6308_s30 }
  0xbf   :  { %540 = vrot.lane.b32.xlu0 %v6803_v43, %s6307_s29 }
  0xc0   :  { %v1266_v1 = vpop.permute.xlu1 %1265  ;;  %v6866_v57 = vpop.permute.xlu0 %979  ;;  %v6163_v21 = vpack.c.bf16 %v1130_v25, %v6420_v4  ;;  %v1530_v4 = vrot.slane %v6691_v53, %v6755_v54 }
  0xc1   :  { %9088 = vst [vmem:[#allocation15_spill] sm:$0xff] %v6866_v57  ;;  %v1006_v35 = vsel %vm999_vm4, %v6866_v57, %v982_v51 }
  0xc2   :  { %v1129_v60 = vmul.f32 %v1070_v2, %v1006_v35  ;;  %2576 = vmatprep.subr.bf16.mxu1 %v6163_v21  ;;  %238 = vrot.lane.b32.xlu1 %v6391_v3, %s6305_s23  ;;  %v1354_v21 = vrot.slane %v6689_v52, %v6767_v63 }
  0xc3   :  { %67 = vrot.lane.b32.xlu0 %v6391_v3, %s6306_s24 }
  0xc4   :  { %v6162_v6 = vpack.c.bf16 %v1129_v60, %v6425_v5  ;;  %v1438_v22 = vpop.permute.xlu1 %1437  ;;  %v6876_v34 = vpop.permute.xlu0 %1267  ;;  %v1526_v60 = vrot.slane %v6691_v53, %v6767_v63 }
  0xc5   :  { %9089 = vst [vmem:[#allocation16_spill] sm:$0xff] %v6876_v34  ;;  %v1291_v51 = vsel %vm1283_vm5, %v1266_v1, %v6876_v34 }
  0xc6   :  { %2577 = vmatpush1.bf16.msra.mxu1 %v6162_v6  ;;  %995 = vrot.lane.b32.xlu1 %v6762_v56, %s6309_s9  ;;  %v1414_v2 = vmul.f32 %v1358_v38, %v1291_v51  ;;  %v1810_v51 = vrot.slane %v6720_v12, %v6767_v63 }
  0xc7   :  { %997 = vrot.lane.b32.xlu0 %v6612_v49, %s6309_s9 }
  0xc8   :  { %v6888_v5 = vpop.permute.xlu1 %1263  ;;  %v6890_v37 = vpop.permute.xlu0 %1439 }
  0xc9   :  { %9090 = vst [vmem:[#allocation17_spill] sm:$0xff] %v6888_v5  ;;  %9091 = vst [vmem:[#allocation18_spill] sm:$0xff] %v6890_v37  ;;  %v1463_v25 = vsel %vm1455_vm6, %v1438_v22, %v6890_v37  ;;  %v1290_v6 = vsel %vm1283_vm5, %v6888_v5, %v1266_v1  ;;  %v5583_v1 = vld [vmem:[%s8992_s1 + $0x40] ss:$8 sm:$0xf] }
  0xca   :  { %v1586_v35 = vmul.f32 %v1530_v4, %v1463_v25  ;;  %694 = vrot.lane.b32.xlu1 %v6391_v3, %s6308_s30  ;;  %v1413_v25 = vmul.f32 %v1354_v21, %v1290_v6  ;;  %v5588_v21 = vld [vmem:[%s8992_s1 + $0x41] ss:$8 sm:$0xf0] }
  0xcb   :  { %522 = vrot.lane.b32.xlu0 %v6391_v3, %s6307_s29  ;;  %v1814_v3 = vrot.slane %v6720_v12, %v6755_v54 }
  0xcc   :  { %v6904_v34 = vpop.permute.xlu1 %1719  ;;  %v6906_v37 = vpop.permute.xlu0 %1435  ;;  %v6179_v38 = vpack.c.bf16 %v1586_v35, %v1414_v2  ;;  %v5587_v2 = vld [vmem:[%s8992_s1 + $0x41] ss:$8 sm:$0xf] }
  0xcd   :  { %9092 = vst [vmem:[#allocation19_spill] sm:$0xff] %v6904_v34  ;;  %9093 = vst [vmem:[#allocation20_spill] sm:$0xff] %v6906_v37  ;;  %v1462_v4 = vsel %vm1455_vm6, %v6906_v37, %v1438_v22  ;;  %v5584_v22 = vld [vmem:[%s8992_s1 + $0x40] ss:$8 sm:$0xf0]  ;;  %v6940_v37 = vor.u32 %v5588_v21, %v5587_v2 }
  0xce   :  { %v1585_v42 = vmul.f32 %v1526_v60, %v1462_v4  ;;  %2578 = vmatprep.subr.bf16.mxu1 %v6179_v38  ;;  %1453 = vrot.lane.b32.xlu1 %v6612_v49, %s6311_s11  ;;  %v6936_v36 = vor.u32 %v5584_v22, %v5583_v1 }
  0xcf   :  { %1281 = vrot.lane.b32.xlu0 %v6612_v49, %s6310_s10  ;;  %v346_v21 = vrot.slane %v6940_v37, %v6545_v23 }
  0xd0   :  { %v6178_v35 = vpack.c.bf16 %v1585_v42, %v1413_v25  ;;  %v6930_v60 = vpop.permute.xlu1 %1723  ;;  %v1722_v6 = vpop.permute.xlu0 %1721  ;;  %v178_v1 = vrot.slane %v6936_v36, %v6540_v19 }
  0xd1   :  { %9094 = vst [vmem:[#allocation21_spill] sm:$0xff] %v6930_v60  ;;  %v1746_v38 = vsel %vm1739_vm7, %v6904_v34, %v1722_v6  ;;  %v1747_v4 = vsel %vm1739_vm7, %v1722_v6, %v6930_v60 }
  0xd2   :  { %v1869_v59 = vmul.f32 %v1810_v51, %v1746_v38  ;;  %v1870_v33 = vmul.f32 %v1814_v3, %v1747_v4  ;;  %2579 = vmatpush1.bf16.msra.mxu1 %v6178_v35  ;;  %1451 = vrot.lane.b32.xlu1 %v6762_v56, %s6311_s11  ;;  %v350_v3 = vrot.slane %v6940_v37, %v6540_v19  ;;  %v5607_v4 = vld [vmem:[%s8992_s1 + $0x42] ss:$8 sm:$0xf] }
  0xd3   :  { %1279 = vrot.lane.b32.xlu0 %v6762_v56, %s6310_s10  ;;  %v174_v38 = vrot.slane %v6936_v36, %v6545_v23 }
  0xd4   :  { %v6194_v42 = vpack.c.bf16 %v1869_v59, %v1869_v59  ;;  %v6195_v25 = vpack.c.bf16 %v1870_v33, %v1870_v33  ;;  %v6944_v62 = vpop.permute.xlu1 %81  ;;  %v80_v34 = vpop.permute.xlu0 %79 }
  0xd5   :  { %9095 = vst [vmem:[#allocation22_spill] sm:$0xff] %v6944_v62  ;;  %v100_v59 = vsel %vm89_vm1, %v80_v34, %v6944_v62 }
  0xd6   :  { %5772 = vmatprep.subr.msk.bf16.mxu1 %vm2394_vm8, %v6195_v25  ;;  %1735 = vrot.lane.b32.xlu1 %v6762_v56, %s6312_s12  ;;  %v2414_v51 = vsel %vm2394_vm8, %v6194_v42, 0  ;;  %v222_v35 = vmul.f32 %v178_v1, %v100_v59  ;;  %v5608_v42 = vld [vmem:[%s8992_s1 + $0x42] ss:$8 sm:$0xf0] }
  0xd7   :  { %977 = vrot.lane.b32.xlu0 %v6441_v7, %s6309_s9  ;;  %2581 = vmatpush1.bf16.msra.mxu1 %v2414_v51  ;;  %v5611_v25 = vld [vmem:[%s8992_s1 + $0x43] ss:$8 sm:$0xf]  ;;  %v9097_v51 = vmov 0  }
  0xd8   :  { %v6958_v33 = vpop.permute.xlu1 %252  ;;  %v251_v22 = vpop.permute.xlu0 %250  ;;  %v5612_v1 = vld [vmem:[%s8992_s1 + $0x43] ss:$8 sm:$0xf0] }
  0xd9   :  { %9096 = vst [vmem:[#allocation23_spill] sm:$0xff] %v6958_v33  ;;  %v271_v2 = vsel %vm260_vm0, %v251_v22, %v6958_v33  ;;  %v6993_v33 = vor.u32 %v5608_v42, %v5607_v4  ;;  %v6997_v5 = vor.u32 %v5612_v1, %v5611_v25 }
  0xda   :  { %v394_v6 = vmul.f32 %v350_v3, %v271_v2  ;;  %1261 = vrot.lane.b32.xlu1 %v6441_v7, %s6310_s10  ;;  %5773 = vmatmul.mubr.msk.bf16.vlgmr.msra.gmra.mrb[4].mxu1 %vm2390_vm9, %v6780_v24 }
  0xdb   :  { %1737 = vrot.lane.b32.xlu0 %v6612_v49, %s6312_s12  ;;  %2690 = vmatprep.mubr.bf16.mxu1 %v9097_v51  ;;  %v802_v25 = vrot.slane %v6997_v5, %v6545_v23  ;;  %v630_v1 = vrot.slane %v6993_v33, %v6545_v23 }
  0xdc   :  { %v6985_v3 = vpop.permute.xlu1 %248  ;;  %v6987_v59 = vpop.permute.xlu0 %77  ;;  %v6135_v2 = vpack.c.bf16 %v394_v6, %v222_v35 }
  0xdd   :  { %9098 = vst [vmem:[#allocation24_spill] sm:$0xff] %v6985_v3  ;;  %9099 = vst [vmem:[#allocation25_spill] sm:$0xff] %v6987_v59  ;;  %v270_v62 = vsel %vm260_vm0, %v6985_v3, %v251_v22  ;;  %v99_v49 = vsel %vm89_vm1, %v6987_v59, %v80_v34  ;;  %v634_v34 = vrot.slane %v6993_v33, %v6540_v19 }
  0xde   :  { %v393_v60 = vmul.f32 %v346_v21, %v270_v62  ;;  %v221_v39 = vmul.f32 %v174_v38, %v99_v49  ;;  %2658 = vmatprep.subr.bf16.mxu1 %v6135_v2  ;;  %1717 = vrot.lane.b32.xlu1 %v6441_v7, %s6312_s12  ;;  %v806_v62 = vrot.slane %v6997_v5, %v6540_v19  ;;  %v7018_v38 = vsub.s32 1, %v6515_v13 }
  0xdf   :  { %1433 = vrot.lane.b32.xlu0 %v6441_v7, %s6311_s11 }
  0xe0   :  { %v6134_v35 = vpack.c.bf16 %v393_v60, %v221_v39  ;;  %v7001_v6 = vpop.permute.xlu1 %536  ;;  %v535_v22 = vpop.permute.xlu0 %534 }
  0xe1   :  { %9100 = vst [vmem:[#allocation26_spill] sm:$0xff] %v7001_v6  ;;  %v555_v21 = vsel %vm544_vm2, %v535_v22, %v7001_v6 }
  0xe2   :  { %2659 = vmatpush1.bf16.msra.mxu1 %v6134_v35  ;;  %246 = vrot.lane.b32.xlu1 %v6462_v8, %s6305_s23  ;;  %v678_v4 = vmul.f32 %v634_v34, %v555_v21  ;;  %v5631_v34 = vld [vmem:[%s8992_s1 + $0x45] ss:$8 sm:$0xf] }
  0xe3   :  { %75 = vrot.lane.b32.xlu0 %v6462_v8, %s6306_s24 }
  0xe4   :  { %v7013_v7 = vpop.permute.xlu1 %708  ;;  %v707_v39 = vpop.permute.xlu0 %706 }
  0xe5   :  { %9101 = vst [vmem:[#allocation27_spill] sm:$0xff] %v7013_v7  ;;  %v727_v60 = vsel %vm716_vm3, %v707_v39, %v7013_v7 }
  0xe6   :  { %v850_v42 = vmul.f32 %v806_v62, %v727_v60  ;;  %702 = vrot.lane.b32.xlu1 %v6462_v8, %s6308_s30  ;;  %v5632_v62 = vld [vmem:[%s8992_s1 + $0x45] ss:$8 sm:$0xf0] }
  0xe7   :  { %530 = vrot.lane.b32.xlu0 %v6462_v8, %s6307_s29  ;;  %v138_v8 = vrot.slane %v6537_v18, %v7018_v38 }
  0xe8   :  { %v7028_v2 = vpop.permute.xlu1 %704  ;;  %v7030_v49 = vpop.permute.xlu0 %532  ;;  %v6151_v35 = vpack.c.bf16 %v850_v42, %v678_v4  ;;  %v310_v4 = vrot.slane %v6542_v20, %v7018_v38  ;;  %v7050_v42 = vor.u32 %v5632_v62, %v5631_v34 }
  0xe9   :  { %9102 = vst [vmem:[#allocation28_spill] sm:$0xff] %v7028_v2  ;;  %9103 = vst [vmem:[#allocation29_spill] sm:$0xff] %v7030_v49  ;;  %v726_v21 = vsel %vm716_vm3, %v7028_v2, %v707_v39  ;;  %v554_v60 = vsel %vm544_vm2, %v7030_v49, %v535_v22 }
  0xea   :  { %v849_v6 = vmul.f32 %v802_v25, %v726_v21  ;;  %v677_v7 = vmul.f32 %v630_v1, %v554_v60  ;;  %2660 = vmatprep.subr.bf16.mxu1 %v6151_v35  ;;  %1269 = vrot.lane.b32.xlu1 %v6509_v11, %s6310_s10  ;;  %v7059_v21 = vsub.s32 0, %v6515_v13 }
  0xeb   :  { %985 = vrot.lane.b32.xlu0 %v6509_v11, %s6309_s9 }
  0xec   :  { %v6150_v39 = vpack.c.bf16 %v849_v6, %v677_v7  ;;  %v231_v2 = vpop.permute.xlu1 %230  ;;  %v60_v22 = vpop.permute.xlu0 %59  ;;  %v1090_v6 = vrot.slane %v7050_v42, %v6540_v19 }
  0xed   :  { %v90_v49 = vsel %vm89_vm1, %v60_v22, %v6595_v41  ;;  %v261_v25 = vsel %vm260_vm0, %v231_v2, %v6593_v40 }
  0xee   :  { %2661 = vmatpush1.bf16.msra.mxu1 %v6150_v39  ;;  %1725 = vrot.lane.b32.xlu1 %v6509_v11, %s6312_s12  ;;  %v212_v1 = vmul.f32 %v138_v8, %v90_v49  ;;  %v384_v35 = vmul.f32 %v310_v4, %v261_v25  ;;  %v306_v49 = vrot.slane %v6542_v20, %v7059_v21 }
  0xef   :  { %1441 = vrot.lane.b32.xlu0 %v6509_v11, %s6311_s11  ;;  %v134_v11 = vrot.slane %v6537_v18, %v7059_v21 }
  0xf0   :  { %v7065_v7 = vpop.permute.xlu1 %991  ;;  %v6125_v41 = vpack.c.bf16 %v384_v35, %v212_v1  ;;  %v1086_v35 = vrot.slane %v7050_v42, %v6545_v23 }
  0xf1   :  { %9104 = vst [vmem:[#allocation30_spill] sm:$0xff] %v7065_v7  ;;  %v990_v34 = vpop.permute.xlu0 %989 }
  0xf2   :  { %v1011_v40 = vsel %vm999_vm4, %v990_v34, %v7065_v7  ;;  %254 = vrot.lane.b32.xlu1 %v6571_v31, %s6305_s23  ;;  %2443 = vmatprep.subr.bf16.mxu0 %v6125_v41 }
  0xf3   :  { %v1134_v62 = vmul.f32 %v1090_v6, %v1011_v40  ;;  %83 = vrot.lane.b32.xlu0 %v6571_v31, %s6306_s24 }
  0xf4   :  { %v7077_v60 = vpop.permute.xlu1 %227 }
  0xf5   :  { %v292_v8 = vsel %vm260_vm0, %v7077_v60, %v231_v2  ;;  %v7081_v4 = vpop.permute.xlu0 %41  ;;  %v6167_v39 = vpack.c.bf16 %v1134_v62, %v6491_v9  ;;  %v5651_v62 = vld [vmem:[%s8992_s1 + $0x46] ss:$8 sm:$0xf] }
  0xf6   :  { %v121_v25 = vsel %vm89_vm1, %v7081_v4, %v60_v22  ;;  %710 = vrot.lane.b32.xlu1 %v6571_v31, %s6308_s30  ;;  %v383_v1 = vmul.f32 %v306_v49, %v292_v8  ;;  %v594_v22 = vrot.slane %v6601_v45, %v7018_v38 }
  0xf7   :  { %538 = vrot.lane.b32.xlu0 %v6571_v31, %s6307_s29  ;;  %2662 = vmatprep.subr.bf16.mxu1 %v6167_v39  ;;  %v211_v6 = vmul.f32 %v134_v11, %v121_v25  ;;  %v766_v31 = vrot.slane %v6605_v48, %v7018_v38  ;;  %v5655_v39 = vld [vmem:[%s8992_s1 + $0x47] ss:$8 sm:$0xf] }
  0xf8   :  { %v515_v2 = vpop.permute.xlu1 %514  ;;  %v5656_v25 = vld [vmem:[%s8992_s1 + $0x47] ss:$8 sm:$0xf0] }
  0xf9   :  { %v7092_v41 = vpop.permute.xlu0 %987  ;;  %v6124_v40 = vpack.c.bf16 %v383_v1, %v211_v6  ;;  %v545_v11 = vsel %vm544_vm2, %v515_v2, %v6648_v16  ;;  %v7127_v7 = vor.u32 %v5656_v25, %v5655_v39  ;;  %v590_v39 = vrot.slane %v6601_v45, %v7059_v21 }
  0xfa   :  { %9105 = vst [vmem:[#allocation31_spill] sm:$0xff] %v7092_v41  ;;  %v1010_v9 = vsel %vm999_vm4, %v7092_v41, %v990_v34  ;;  %1277 = vrot.lane.b32.xlu1 %v6803_v43, %s6310_s10  ;;  %v5652_v34 = vld [vmem:[%s8992_s1 + $0x46] ss:$8 sm:$0xf0]  ;;  %v668_v16 = vmul.f32 %v594_v22, %v545_v11 }
  0xfb   :  { %v1133_v49 = vmul.f32 %v1086_v35, %v1010_v9  ;;  %993 = vrot.lane.b32.xlu0 %v6803_v43, %s6309_s9  ;;  %2444 = vmatpush1.bf16.msra.mxu0 %v6124_v40  ;;  %v7123_v40 = vor.u32 %v5652_v34, %v5651_v62  ;;  %v2787_v62 = vld [vmem:[%s8993_s3] sm:$0xff] }
  0xfc   :  { %v1274_v8 = vpop.permute.xlu1 %1273 }
  0xfd   :  { %v6166_v1 = vpack.c.bf16 %v1133_v49, %v6496_v10  ;;  %v687_v35 = vpop.permute.xlu0 %686  ;;  %v1546_v49 = vrot.slane %v7127_v7, %v6540_v19 }
  0xfe   :  { %v717_v6 = vsel %vm716_vm3, %v687_v35, %v6646_v15  ;;  %1733 = vrot.lane.b32.xlu1 %v6803_v43, %s6312_s12  ;;  %v1374_v15 = vrot.slane %v7123_v40, %v6540_v19 }
  0xff   :  { %v840_v9 = vmul.f32 %v766_v31, %v717_v6  ;;  %1449 = vrot.lane.b32.xlu0 %v6803_v43, %s6311_s11  ;;  %2663 = vmatpush1.bf16.msra.mxu1 %v6166_v1  ;;  %v762_v1 = vrot.slane %v6605_v48, %v7059_v21 }
 0x100   :  { %v1446_v41 = vpop.permute.xlu1 %1445 }
 0x101   :  { %v7129_v59 = vpop.permute.xlu0 %1275  ;;  %v6141_v10 = vpack.c.bf16 %v840_v9, %v668_v16  ;;  %v5675_v9 = vld [vmem:[%s8992_s1 + $0xc0] ss:$8 sm:$0xf] }
 0x102   :  { %9106 = vst [vmem:[#allocation32_spill] sm:$0xff] %v7129_v59  ;;  %v1295_v22 = vsel %vm1283_vm5, %v1274_v8, %v7129_v59 }
 0x103   :  { %2445 = vmatprep.subr.bf16.mxu0 %v6141_v10  ;;  %2790 = vperm.xlu0 %6293, %v2787_v62   ;;  %v1418_v11 = vmul.f32 %v1374_v15, %v1295_v22  ;;  %v5676_v10 = vld [vmem:[%s8992_s1 + $0xc0] ss:$8 sm:$0xf0] }
 0x104   :  { %v7137_v31 = vpop.permute.xlu1 %511  ;;  %v7170_v3 = vor.u32 %v5676_v10, %v5675_v9 }
 0x105   :  { %v7139_v43 = vpop.permute.xlu0 %1447  ;;  %v576_v6 = vsel %vm544_vm2, %v7137_v31, %v515_v2  ;;  %v1050_v2 = vrot.slane %v6642_v14, %v7018_v38 }
 0x106   :  { %9107 = vst [vmem:[#allocation33_spill] sm:$0xff] %v7139_v43  ;;  %v1467_v34 = vsel %vm1455_vm6, %v1446_v41, %v7139_v43  ;;  %v1542_v43 = vrot.slane %v7127_v7, %v6545_v23  ;;  %v1826_v9 = vrot.slane %v7170_v3, %v6545_v23 }
 0x107   :  { %v1590_v25 = vmul.f32 %v1546_v49, %v1467_v34  ;;  %v1370_v49 = vrot.slane %v7123_v40, %v6545_v23  ;;  %v667_v34 = vmul.f32 %v590_v39, %v576_v6 }
 0x108   :  { %v7152_v16 = vpop.permute.xlu1 %1271 }
 0x109   :  { %v7160_v15 = vpop.permute.xlu0 %683  ;;  %v6183_v22 = vpack.c.bf16 %v1590_v25, %v1418_v11  ;;  %v1294_v11 = vsel %vm1283_vm5, %v7152_v16, %v1274_v8  ;;  %v6295_v8 = vld [vmem:[%s8990_s0 + $0x8] sm:$0xff] }
 0x10a   :  { %v748_v62 = vsel %vm716_vm3, %v7160_v15, %v687_v35 }
 0x10b   :  { %v839_v59 = vmul.f32 %v762_v1, %v748_v62  ;;  %2664 = vmatprep.subr.bf16.mxu1 %v6183_v22  ;;  %v1417_v1 = vmul.f32 %v1370_v49, %v1294_v11 }
 0x10c   :  { %v970_v25 = vpop.permute.xlu1 %969 }
 0x10d   :  { %v1001_v55 = vsel %vm999_vm4, %v970_v25, %v6682_v44  ;;  %v7176_v57 = vpop.permute.xlu0 %1443  ;;  %v6140_v35 = vpack.c.bf16 %v839_v59, %v667_v34  ;;  %v1046_v59 = vrot.slane %v6642_v14, %v7059_v21 }
 0x10e   :  { %v1124_v30 = vmul.f32 %v1050_v2, %v1001_v55  ;;  %v1466_v39 = vsel %vm1455_vm6, %v7176_v57, %v1446_v41 }
 0x10f   :  { %v1589_v6 = vmul.f32 %v1542_v43, %v1466_v39  ;;  %2446 = vmatpush1.bf16.msra.mxu0 %v6140_v35  ;;  %v1830_v43 = vrot.slane %v7170_v3, %v6540_v19  ;;  %v366_v35 = vrot.slane %v6940_v37, %v6755_v54 }
 0x110   :  { %v1730_v10 = vpop.permute.xlu1 %1729  ;;  %v6157_v22 = vpack.c.bf16 %v1124_v30, %v6295_v8 }
 0x111   :  { %v6182_v44 = vpack.c.bf16 %v1589_v6, %v1417_v1  ;;  %v7185_v62 = vpop.permute.xlu0 %1727  ;;  %v194_v6 = vrot.slane %v6936_v36, %v6755_v54 }
 0x112   :  { %v1750_v55 = vsel %vm1739_vm7, %v7185_v62, %v1730_v10  ;;  %2447 = vmatprep.subr.bf16.mxu0 %v6157_v22 }
 0x113   :  { %v1873_v41 = vmul.f32 %v1826_v9, %v1750_v55  ;;  %2665 = vmatpush1.bf16.msra.mxu1 %v6182_v44 }
 0x114   :  { %v7193_v49 = vpop.permute.xlu1 %967 }
 0x115   :  { %v1000_v30 = vsel %vm999_vm4, %v7193_v49, %v970_v25  ;;  %v7197_v2 = vpop.permute.xlu0 %1731  ;;  %v6198_v39 = vpack.c.bf16 %v1873_v41, %v1873_v41 }
 0x116   :  { %v1123_v34 = vmul.f32 %v1046_v59, %v1000_v30  ;;  %v1751_v11 = vsel %vm1739_vm7, %v1730_v10, %v7197_v2  ;;  %v1506_v59 = vrot.slane %v6691_v53, %v7018_v38 }
 0x117   :  { %v1874_v1 = vmul.f32 %v1830_v43, %v1751_v11  ;;  %v2426_v43 = vsel %vm2394_vm8, %v6198_v39, 0  ;;  %v190_v39 = vrot.slane %v6936_v36, %v6767_v63 }
 0x118   :  { %v259_v9 = vpop.permute.xlu1 %258  ;;  %v6156_v8 = vpack.c.bf16 %v1123_v34, %v6558_v26  ;;  %v1334_v26 = vrot.slane %v6689_v52, %v7018_v38 }
 0x119   :  { %v6199_v22 = vpack.c.bf16 %v1874_v1, %v1874_v1  ;;  %v275_v25 = vsel %vm260_vm0, %v259_v9, %v7077_v60  ;;  %v88_v44 = vpop.permute.xlu0 %87  ;;  %v362_v1 = vrot.slane %v6940_v37, %v6767_v63 }
 0x11a   :  { %v398_v55 = vmul.f32 %v366_v35, %v275_v25  ;;  %v104_v10 = vsel %vm89_vm1, %v88_v44, %v7081_v4  ;;  %2448 = vmatpush1.bf16.msra.mxu0 %v6156_v8 }
 0x11b   :  { %v226_v41 = vmul.f32 %v194_v6, %v104_v10  ;;  %5776 = vmatprep.subr.msk.bf16.mxu1 %vm2394_vm8, %v6199_v22  ;;  %v1502_v10 = vrot.slane %v6691_v53, %v7059_v21 }
 0x11c   :  { %2667 = vmatpush1.bf16.msra.mxu1 %v2426_v43  ;;  %v1426_v30 = vpop.permute.xlu1 %1425 }
 0x11d   :  { %v1457_v60 = vsel %vm1455_vm6, %v1426_v30, %v6734_v32  ;;  %v1254_v34 = vpop.permute.xlu0 %1253  ;;  %v6139_v11 = vpack.c.bf16 %v398_v55, %v226_v41  ;;  %v1330_v41 = vrot.slane %v6689_v52, %v7059_v21 }
 0x11e   :  { %v1580_v4 = vmul.f32 %v1506_v59, %v1457_v60  ;;  %v1285_v35 = vsel %vm1283_vm5, %v1254_v34, %v6714_v61 }
 0x11f   :  { %v1408_v6 = vmul.f32 %v1334_v26, %v1285_v35  ;;  %2744 = vmatprep.subr.bf16.mxu1 %v6139_v11  ;;  %5777 = vmatmul.mubr.msk.bf16.vlgmr.msra.gmra.mrb[8].mxu1 %vm2390_vm9, %v6780_v24 }
 0x120   :  { %v7226_v8 = vpop.permute.xlu1 %256  ;;  %2776 = vmatprep.mubr.bf16.mxu1 %v9097_v51 }
 0x121   :  { %v274_v32 = vsel %vm260_vm0, %v7226_v8, %v259_v9  ;;  %v7231_v22 = vpop.permute.xlu0 %85  ;;  %v6173_v61 = vpack.c.bf16 %v1580_v4, %v1408_v6  ;;  %v822_v4 = vrot.slane %v6997_v5, %v6755_v54 }
 0x122   :  { %v397_v25 = vmul.f32 %v362_v1, %v274_v32  ;;  %v103_v55 = vsel %vm89_vm1, %v7231_v22, %v88_v44  ;;  %v650_v1 = vrot.slane %v6993_v33, %v6755_v54 }
 0x123   :  { %v225_v59 = vmul.f32 %v190_v39, %v103_v55  ;;  %2449 = vmatprep.subr.bf16.mxu0 %v6173_v61 }
 0x124   :  { %v7239_v43 = vpop.permute.xlu1 %1423 }
 0x125   :  { %v6138_v26 = vpack.c.bf16 %v397_v25, %v225_v59  ;;  %v1456_v9 = vsel %vm1455_vm6, %v7239_v43, %v1426_v30  ;;  %v7243_v60 = vpop.permute.xlu0 %1251 }
 0x126   :  { %v1579_v11 = vmul.f32 %v1502_v10, %v1456_v9  ;;  %v1284_v44 = vsel %vm1283_vm5, %v7243_v60, %v1254_v34  ;;  %v1790_v34 = vrot.slane %v6720_v12, %v7018_v38  ;;  %v1786_v10 = vrot.slane %v6720_v12, %v7059_v21 }
 0x127   :  { %v1407_v35 = vmul.f32 %v1330_v41, %v1284_v44  ;;  %2745 = vmatpush1.bf16.msra.mxu1 %v6138_v26  ;;  %v818_v9 = vrot.slane %v6997_v5, %v6767_v63  ;;  %v7268_v44 = vsub.s32 4, %v6515_v13 }
 0x128   :  { %v715_v6 = vpop.permute.xlu1 %714 }
 0x129   :  { %v731_v39 = vsel %vm716_vm3, %v715_v6, %v7160_v15  ;;  %v543_v32 = vpop.permute.xlu0 %542  ;;  %v6172_v30 = vpack.c.bf16 %v1579_v11, %v1407_v35 }
 0x12a   :  { %v854_v61 = vmul.f32 %v822_v4, %v731_v39  ;;  %v559_v25 = vsel %vm544_vm2, %v543_v32, %v7137_v31  ;;  %v7271_v4 = vsub.s32 5, %v6515_v13  ;;  %v322_v13 = vrot.slane %v6542_v20, %v7268_v44 }
 0x12b   :  { %v682_v55 = vmul.f32 %v650_v1, %v559_v25  ;;  %2450 = vmatpush1.bf16.msra.mxu0 %v6172_v30 }
 0x12c   :  { %v1710_v59 = vpop.permute.xlu1 %1709 }
 0x12d   :  { %v1741_v41 = vsel %vm1739_vm7, %v1710_v59, %v6732_v29  ;;  %v7261_v26 = vpop.permute.xlu0 %1707  ;;  %v6155_v15 = vpack.c.bf16 %v854_v61, %v682_v55  ;;  %v646_v29 = vrot.slane %v6993_v33, %v6767_v63 }
 0x12e   :  { %v1864_v11 = vmul.f32 %v1790_v34, %v1741_v41  ;;  %v1740_v31 = vsel %vm1739_vm7, %v7261_v26, %v1710_v59 }
 0x12f   :  { %2746 = vmatprep.subr.bf16.mxu1 %v6155_v15  ;;  %v1863_v35 = vmul.f32 %v1786_v10, %v1740_v31  ;;  %v326_v10 = vrot.slane %v6542_v20, %v7271_v4  ;;  %v154_v15 = vrot.slane %v6537_v18, %v7271_v4  ;;  %v1102_v20 = vrot.slane %v7050_v42, %v6767_v63 }
 0x130   :  { %v6189_v1 = vpack.c.bf16 %v1864_v11, %v1864_v11  ;;  %v7275_v39 = vpop.permute.xlu1 %712 }
 0x131   :  { %v730_v30 = vsel %vm716_vm3, %v7275_v39, %v715_v6  ;;  %v7279_v61 = vpop.permute.xlu0 %540  ;;  %v6188_v25 = vpack.c.bf16 %v1863_v35, %v1863_v35  ;;  %v150_v6 = vrot.slane %v6537_v18, %v7268_v44 }
 0x132   :  { %v853_v34 = vmul.f32 %v818_v9, %v730_v30  ;;  %v558_v55 = vsel %vm544_vm2, %v7279_v61, %v543_v32  ;;  %5766 = vmatprep.subr.msk.bf16.mxu0 %vm2394_vm8, %v6189_v1 }
 0x133   :  { %v681_v59 = vmul.f32 %v646_v29, %v558_v55  ;;  %v2396_v41 = vsel %vm2394_vm8, %v6188_v25, 0 }
 0x134   :  { %2452 = vmatpush1.bf16.msra.mxu0 %v2396_v41  ;;  %v239_v9 = vpop.permute.xlu1 %238 }
 0x135   :  { %v6154_v32 = vpack.c.bf16 %v853_v34, %v681_v59  ;;  %v264_v11 = vsel %vm260_vm0, %v6560_v27, %v239_v9  ;;  %v265_v31 = vsel %vm260_vm0, %v239_v9, %v6806_v46  ;;  %v68_v35 = vpop.permute.xlu0 %67  ;;  %v1106_v27 = vrot.slane %v7050_v42, %v6755_v54 }
 0x136   :  { %v387_v29 = vmul.f32 %v322_v13, %v264_v11  ;;  %v388_v1 = vmul.f32 %v326_v10, %v265_v31  ;;  %v93_v30 = vsel %vm89_vm1, %v6562_v28, %v68_v35  ;;  %v94_v18 = vsel %vm89_vm1, %v68_v35, %v6808_v47 }
 0x137   :  { %v215_v25 = vmul.f32 %v150_v6, %v93_v30  ;;  %v216_v34 = vmul.f32 %v154_v15, %v94_v18  ;;  %5767 = vmatmul.mubr.msk.bf16.vlgmr.msra.gmra.mrb[0].mxu0 %vm2390_vm9, %v6780_v24  ;;  %2747 = vmatpush1.bf16.msra.mxu1 %v6154_v32  ;;  %v778_v24 = vrot.slane %v6605_v48, %v7268_v44 }
 0x138   :  { %v7307_v46 = vpop.permute.xlu1 %995  ;;  %2561 = vmatprep.mubr.bf16.mxu0 %v9097_v51  ;;  %v782_v59 = vrot.slane %v6605_v48, %v7271_v4  ;;  %v606_v15 = vrot.slane %v6601_v45, %v7268_v44  ;;  %v610_v9 = vrot.slane %v6601_v45, %v7271_v4 }
 0x139   :  { %v6128_v55 = vpack.c.bf16 %v387_v29, %v215_v25  ;;  %v998_v13 = vpop.permute.xlu0 %997  ;;  %v6129_v10 = vpack.c.bf16 %v388_v1, %v216_v34 }
 0x13a   :  { %v1014_v28 = vsel %vm999_vm4, %v7307_v46, %v998_v13  ;;  %v1032_v47 = vsel %vm999_vm4, %v998_v13, %v7193_v49  ;;  %v1562_v49 = vrot.slane %v7127_v7, %v6755_v54 }
 0x13b   :  { %v1137_v41 = vmul.f32 %v1102_v20, %v1014_v28  ;;  %v1138_v6 = vmul.f32 %v1106_v27, %v1032_v47  ;;  %2529 = vmatprep.subr.bf16.mxu0 %v6129_v10  ;;  %v6296_v20 = vld [vmem:[%s8990_s0 + $0x78] sm:$0xff]  ;;  %v1386_v47 = vrot.slane %v7123_v40, %v6767_v63 }
 0x13c   :  { %2530 = vmatpush1.bf16.msra.mxu0 %v6128_v55  ;;  %v695_v32 = vpop.permute.xlu1 %694 }
 0x13d   :  { %v6170_v11 = vpack.c.bf16 %v1137_v41, %v6762_v56  ;;  %v720_v31 = vsel %vm716_vm3, %v6632_v58, %v695_v32  ;;  %v721_v48 = vsel %vm716_vm3, %v695_v32, %v6842_v0  ;;  %v523_v35 = vpop.permute.xlu0 %522  ;;  %v6171_v29 = vpack.c.bf16 %v1138_v6, %v6296_v20  ;;  %v9109_v20 = vld [vmem:[#allocation15_spill] sm:$0xff] }
 0x13e   :  { %v843_v45 = vmul.f32 %v778_v24, %v720_v31  ;;  %v844_v1 = vmul.f32 %v782_v59, %v721_v48  ;;  %v548_v30 = vsel %vm544_vm2, %v6614_v50, %v523_v35  ;;  %v549_v56 = vsel %vm544_vm2, %v523_v35, %v6844_v17  ;;  %v9108_v48 = vld [vmem:[#allocation4_spill] sm:$0xff] }
 0x13f   :  { %v671_v18 = vmul.f32 %v606_v15, %v548_v30  ;;  %v672_v25 = vmul.f32 %v610_v9, %v549_v56  ;;  %2748 = vmatprep.subr.bf16.mxu1 %v6171_v29  ;;  %v1390_v58 = vrot.slane %v7123_v40, %v6755_v54  ;;  %v1558_v17 = vrot.slane %v7127_v7, %v6767_v63 }
 0x140   :  { %v1454_v0 = vpop.permute.xlu1 %1453  ;;  %2749 = vmatpush1.bf16.msra.mxu1 %v6170_v11  ;;  %v1062_v9 = vrot.slane %v6642_v14, %v7268_v44  ;;  %v1066_v32 = vrot.slane %v6642_v14, %v7271_v4  ;;  %v1842_v30 = vrot.slane %v7170_v3, %v6767_v63  ;;  %v1846_v56 = vrot.slane %v7170_v3, %v6755_v54 }
 0x141   :  { %v6144_v34 = vpack.c.bf16 %v843_v45, %v671_v18  ;;  %v1488_v27 = vsel %vm1455_vm6, %v1454_v0, %v7239_v43  ;;  %v1282_v55 = vpop.permute.xlu0 %1281  ;;  %v6145_v13 = vpack.c.bf16 %v844_v1, %v672_v25  ;;  %v1346_v14 = vrot.slane %v6689_v52, %v7268_v44  ;;  %v6297_v25 = vld [vmem:[%s8990_s0 + $0x20] sm:$0xff] }
 0x142   :  { %v1594_v10 = vmul.f32 %v1562_v49, %v1488_v27  ;;  %v1316_v50 = vsel %vm1283_vm5, %v1282_v55, %v7243_v60 }
 0x143   :  { %v1422_v28 = vmul.f32 %v1390_v58, %v1316_v50  ;;  %2531 = vmatprep.subr.bf16.mxu0 %v6145_v13  ;;  %v6298_v13 = vld [vmem:[%s8990_s0 + $0x28] sm:$0xff] }
 0x144   :  { %2532 = vmatpush1.bf16.msra.mxu0 %v6144_v34  ;;  %v7346_v24 = vpop.permute.xlu1 %1451  ;;  %v9110_v34 = vld [vmem:[#allocation5_spill] sm:$0xff] }
 0x145   :  { %v1470_v43 = vsel %vm1455_vm6, %v7346_v24, %v1454_v0  ;;  %v7350_v59 = vpop.permute.xlu0 %1279  ;;  %v6187_v41 = vpack.c.bf16 %v1594_v10, %v1422_v28  ;;  %v1350_v0 = vrot.slane %v6689_v52, %v7271_v4  ;;  %v1802_v28 = vrot.slane %v6720_v12, %v7268_v44 }
 0x146   :  { %v1593_v6 = vmul.f32 %v1558_v17, %v1470_v43  ;;  %v1298_v60 = vsel %vm1283_vm5, %v7350_v59, %v1282_v55  ;;  %v1806_v52 = vrot.slane %v6720_v12, %v7271_v4  ;;  %v170_v12 = vrot.slane %v6936_v36, %v7018_v38 }
 0x147   :  { %v1421_v15 = vmul.f32 %v1386_v47, %v1298_v60  ;;  %2750 = vmatprep.subr.bf16.mxu1 %v6187_v41  ;;  %v1518_v41 = vrot.slane %v6691_v53, %v7268_v44  ;;  %v9111_v60 = vld [vmem:[#allocation17_spill] sm:$0xff] }
 0x148   :  { %v7358_v49 = vpop.permute.xlu1 %1735 }
 0x149   :  { %v6186_v11 = vpack.c.bf16 %v1593_v6, %v1421_v15  ;;  %v978_v31 = vpop.permute.xlu0 %977  ;;  %v1522_v6 = vrot.slane %v6691_v53, %v7271_v4 }
 0x14a   :  { %v1004_v35 = vsel %vm999_vm4, %v9108_v48, %v978_v31  ;;  %v1005_v29 = vsel %vm999_vm4, %v978_v31, %v9109_v20  ;;  %v9112_v48 = vld [vmem:[#allocation7_spill] sm:$0xff] }
 0x14b   :  { %v1127_v45 = vmul.f32 %v1062_v9, %v1004_v35  ;;  %v1128_v1 = vmul.f32 %v1066_v32, %v1005_v29  ;;  %2751 = vmatpush1.bf16.msra.mxu1 %v6186_v11  ;;  %v342_v32 = vrot.slane %v6940_v37, %v7018_v38  ;;  %v9113_v20 = vld [vmem:[#allocation19_spill] sm:$0xff] }
 0x14c   :  { %v1262_v18 = vpop.permute.xlu1 %1261 }
 0x14d   :  { %v6160_v58 = vpack.c.bf16 %v1127_v45, %v6297_v25  ;;  %v1288_v27 = vsel %vm1283_vm5, %v9110_v34, %v1262_v18  ;;  %v1738_v55 = vpop.permute.xlu0 %1737  ;;  %v6161_v10 = vpack.c.bf16 %v1128_v1, %v6298_v13  ;;  %v1289_v15 = vsel %vm1283_vm5, %v1262_v18, %v9111_v60  ;;  %v9117_v60 = vld [vmem:[#allocation11_spill] sm:$0xff] }
 0x14e   :  { %v1754_v50 = vsel %vm1739_vm7, %v7358_v49, %v1738_v55  ;;  %v1772_v17 = vsel %vm1739_vm7, %v1738_v55, %v7261_v26  ;;  %v1411_v9 = vmul.f32 %v1346_v14, %v1288_v27  ;;  %v9115_v14 = vld [vmem:[#allocation20_spill] sm:$0xff]  ;;  %v1412_v25 = vmul.f32 %v1350_v0, %v1289_v15 }
 0x14f   :  { %v1877_v47 = vmul.f32 %v1842_v30, %v1754_v50  ;;  %v1878_v43 = vmul.f32 %v1846_v56, %v1772_v17  ;;  %2533 = vmatprep.subr.bf16.mxu0 %v6161_v10  ;;  %v9114_v30 = vld [vmem:[#allocation6_spill] sm:$0xff]  ;;  %v338_v55 = vrot.slane %v6940_v37, %v7059_v21  ;;  %v166_v10 = vrot.slane %v6936_v36, %v7059_v21 }
 0x150   :  { %2534 = vmatpush1.bf16.msra.mxu0 %v6160_v58  ;;  %v1718_v26 = vpop.permute.xlu1 %1717  ;;  %v798_v50 = vrot.slane %v6997_v5, %v7018_v38 }
 0x151   :  { %v6202_v11 = vpack.c.bf16 %v1877_v47, %v1877_v47  ;;  %v6203_v31 = vpack.c.bf16 %v1878_v43, %v1878_v43  ;;  %v1744_v35 = vsel %vm1739_vm7, %v9112_v48, %v1718_v26  ;;  %v1745_v53 = vsel %vm1739_vm7, %v1718_v26, %v9113_v20  ;;  %v1434_v29 = vpop.permute.xlu0 %1433  ;;  %v9118_v26 = vld [vmem:[#allocation25_spill] sm:$0xff]  ;;  %v7427_v20 = vld [vmem:[%s8991_s2] sm:$0xff]  }
 0x152   :  { %v1867_v45 = vmul.f32 %v1802_v28, %v1744_v35  ;;  %v1868_v1 = vmul.f32 %v1806_v52, %v1745_v53  ;;  %v1460_v56 = vsel %vm1455_vm6, %v9114_v30, %v1434_v29  ;;  %v1461_v18 = vsel %vm1455_vm6, %v1434_v29, %v9115_v14  ;;  %v9116_v28 = vld [vmem:[#allocation24_spill] sm:$0xff]  ;;  %v9119_v48 = vld [vmem:[#allocation9_spill] sm:$0xff] }
 0x153   :  { %v1583_v58 = vmul.f32 %v1518_v41, %v1460_v56  ;;  %v1584_v34 = vmul.f32 %v1522_v6, %v1461_v18  ;;  %5780 = vmatprep.subr.msk.bf16.mxu1 %vm2394_vm8, %v6203_v31  ;;  %v2438_v27 = vsel %vm2394_vm8, %v6202_v11, 0  ;;  %v626_v43 = vrot.slane %v6993_v33, %v7018_v38  ;;  %v9121_v18 = vld [vmem:[#allocation13_spill] sm:$0xff] }
 0x154   :  { %2753 = vmatpush1.bf16.msra.mxu1 %v2438_v27  ;;  %v247_v13 = vpop.permute.xlu1 %246  ;;  %v6192_v41 = vpack.c.bf16 %v1867_v45, %v1867_v45  ;;  %v6193_v6 = vpack.c.bf16 %v1868_v1, %v1868_v1  ;;  %v794_v53 = vrot.slane %v6997_v5, %v7059_v21  ;;  %v9120_v45 = vld [vmem:[#allocation28_spill] sm:$0xff]  ;;  %v622_v1 = vrot.slane %v6993_v33, %v7059_v21  ;;  %v9123_v27 = vld [vmem:[#allocation29_spill] sm:$0xff] }
 0x155   :  { %v6176_v17 = vpack.c.bf16 %v1583_v58, %v1411_v9  ;;  %v269_v0 = vsel %vm260_vm0, %v247_v13, %v9116_v28  ;;  %v76_v52 = vpop.permute.xlu0 %75  ;;  %v6177_v47 = vpack.c.bf16 %v1584_v34, %v1412_v25  ;;  %v268_v15 = vsel %vm260_vm0, %v9117_v60, %v247_v13  ;;  %v9122_v58 = vld [vmem:[#allocation12_spill] sm:$0xff] }
 0x156   :  { %v98_v11 = vsel %vm89_vm1, %v76_v52, %v9118_v26  ;;  %v392_v31 = vmul.f32 %v342_v32, %v269_v0  ;;  %v97_v9 = vsel %vm89_vm1, %v9119_v48, %v76_v52  ;;  %v391_v32 = vmul.f32 %v338_v55, %v268_v15  ;;  %v9124_v26 = vld [vmem:[#allocation31_spill] sm:$0xff]  ;;  %v9125_v48 = vld [vmem:[#allocation14_spill] sm:$0xff] }
 0x157   :  { %v220_v35 = vmul.f32 %v170_v12, %v98_v11  ;;  %2535 = vmatprep.subr.bf16.mxu0 %v6177_v47  ;;  %5781 = vmatmul.mubr.msk.bf16.vlgmr.msra.gmra.mrb[12].mxu1 %vm2390_vm9, %v7427_v20  ;;  %v1082_v56 = vrot.slane %v7050_v42, %v7018_v38  ;;  %v219_v14 = vmul.f32 %v166_v10, %v97_v9  ;;  %v2408_v28 = vsel %vm2394_vm8, %v6192_v41, 0 }
 0x158   :  { %2536 = vmatpush1.bf16.msra.mxu0 %v6176_v17  ;;  %v703_v29 = vpop.permute.xlu1 %702  ;;  %5276 = vmatprep.mubr.bf16.mxu1 %v9097_v51  ;;  %v1078_v15 = vrot.slane %v7050_v42, %v7059_v21  ;;  %v1366_v9 = vrot.slane %v7123_v40, %v7018_v38 }
 0x159   :  { %v725_v12 = vsel %vm716_vm3, %v703_v29, %v9120_v45  ;;  %5770 = vmatprep.subr.msk.bf16.mxu0 %vm2394_vm8, %v6193_v6  ;;  %v531_v30 = vpop.permute.xlu0 %530  ;;  %v724_v25 = vsel %vm716_vm3, %v9121_v18, %v703_v29  ;;  %v6133_v0 = vpack.c.bf16 %v392_v31, %v220_v35  ;;  %v6132_v60 = vpack.c.bf16 %v391_v32, %v219_v14 }
 0x15a   :  { %v552_v34 = vsel %vm544_vm2, %v9122_v58, %v531_v30  ;;  %v553_v55 = vsel %vm544_vm2, %v531_v30, %v9123_v27  ;;  %v848_v13 = vmul.f32 %v798_v50, %v725_v12  ;;  %v847_v47 = vmul.f32 %v794_v53, %v724_v25  ;;  %v9127_v58 = vld [vmem:[#allocation18_spill] sm:$0xff] }
 0x15b   :  { %v676_v17 = vmul.f32 %v626_v43, %v553_v55  ;;  %v675_v6 = vmul.f32 %v622_v1, %v552_v34  ;;  %v1538_v31 = vrot.slane %v7127_v7, %v7018_v38  ;;  %v1818_v29 = vrot.slane %v7170_v3, %v7059_v21  ;;  %v6300_v55 = vld [vmem:[%s8990_s0 + $0x48] sm:$0xff] }
 0x15c   :  { %2538 = vmatpush1.bf16.msra.mxu0 %v2408_v28  ;;  %v1270_v52 = vpop.permute.xlu1 %1269  ;;  %v1822_v32 = vrot.slane %v7170_v3, %v7018_v38  ;;  %v1534_v45 = vrot.slane %v7127_v7, %v7059_v21  ;;  %v9128_v28 = vld [vmem:[#allocation16_spill] sm:$0xff] }
 0x15d   :  { %2615 = vmatprep.subr.bf16.mxu0 %v6133_v0  ;;  %v986_v10 = vpop.permute.xlu0 %985  ;;  %v6149_v41 = vpack.c.bf16 %v848_v13, %v676_v17  ;;  %v6148_v53 = vpack.c.bf16 %v847_v47, %v675_v6  ;;  %v1293_v1 = vsel %vm1283_vm5, %v1270_v52, %v7152_v16  ;;  %v1362_v16 = vrot.slane %v7123_v40, %v7059_v21  ;;  %v6301_v47 = vld [vmem:[%s8990_s0 + $0x40] sm:$0xff] }
 0x15e   :  { %v1009_v11 = vsel %vm999_vm4, %v986_v10, %v9124_v26  ;;  %v1008_v50 = vsel %vm999_vm4, %v9125_v48, %v986_v10  ;;  %v1416_v0 = vmul.f32 %v1366_v9, %v1293_v1  ;;  %v358_v26 = vrot.slane %v6940_v37, %v7271_v4 }
 0x15f   :  { %v1132_v43 = vmul.f32 %v1082_v56, %v1009_v11  ;;  %5771 = vmatmul.mubr.msk.bf16.vlgmr.msra.gmra.mrb[4].mxu0 %vm2390_vm9, %v7427_v20  ;;  %v1131_v30 = vmul.f32 %v1078_v15, %v1008_v50  ;;  %v9126_v56 = vld [vmem:[#allocation21_spill] sm:$0xff]  ;;  %v186_v11 = vrot.slane %v6936_v36, %v7271_v4  ;;  %v814_v9 = vrot.slane %v6997_v5, %v7271_v4 }
 0x160   :  { %2616 = vmatpush1.bf16.msra.mxu0 %v6132_v60  ;;  %v1726_v35 = vpop.permute.xlu1 %1725  ;;  %2647 = vmatprep.mubr.bf16.mxu0 %v9097_v51 }
 0x161   :  { %2617 = vmatprep.subr.bf16.mxu0 %v6149_v41  ;;  %v1442_v12 = vpop.permute.xlu0 %1441  ;;  %v1748_v14 = vsel %vm1739_vm7, %v9126_v56, %v1726_v35  ;;  %v1749_v25 = vsel %vm1739_vm7, %v1726_v35, %v7185_v62  ;;  %v6165_v13 = vpack.c.bf16 %v1132_v43, %v6300_v55  ;;  %v6164_v6 = vpack.c.bf16 %v1131_v30, %v6301_v47 }
 0x162   :  { %v1465_v18 = vsel %vm1455_vm6, %v1442_v12, %v7176_v57  ;;  %v1464_v34 = vsel %vm1455_vm6, %v9127_v58, %v1442_v12  ;;  %v1292_v57 = vsel %vm1283_vm5, %v9128_v28, %v1270_v52  ;;  %v1871_v10 = vmul.f32 %v1818_v29, %v1748_v14 }
 0x163   :  { %v1588_v27 = vmul.f32 %v1538_v31, %v1465_v18  ;;  %v1872_v60 = vmul.f32 %v1822_v32, %v1749_v25  ;;  %v1587_v15 = vmul.f32 %v1534_v45, %v1464_v34  ;;  %v1415_v50 = vmul.f32 %v1362_v16, %v1292_v57 }
 0x164   :  { %2618 = vmatpush1.bf16.msra.mxu0 %v6148_v53  ;;  %v255_v17 = vpop.permute.xlu1 %254  ;;  %v354_v41 = vrot.slane %v6940_v37, %v7268_v44  ;;  %v182_v31 = vrot.slane %v6936_v36, %v7268_v44  ;;  %v6196_v29 = vpack.c.bf16 %v1871_v10, %v1871_v10  ;;  %v9130_v37 = vld [vmem:[#allocation22_spill] sm:$0xff]  ;;  %v810_v18 = vrot.slane %v6997_v5, %v7268_v44 }
 0x165   :  { %2619 = vmatprep.subr.bf16.mxu0 %v6165_v13  ;;  %v84_v62 = vpop.permute.xlu0 %83  ;;  %v6181_v48 = vpack.c.bf16 %v1588_v27, %v1416_v0  ;;  %v273_v52 = vsel %vm260_vm0, %v255_v17, %v7226_v8  ;;  %v6197_v32 = vpack.c.bf16 %v1872_v60, %v1872_v60  ;;  %v6180_v45 = vpack.c.bf16 %v1587_v15, %v1415_v50  ;;  %v9131_v13 = vld [vmem:[#allocation27_spill] sm:$0xff]  ;;  %v9133_v15 = vld [vmem:[#allocation30_spill] sm:$0xff] }
 0x166   :  { %v102_v43 = vsel %vm89_vm1, %v84_v62, %v7231_v22  ;;  %v642_v8 = vrot.slane %v6993_v33, %v7271_v4  ;;  %v9129_v22 = vld [vmem:[#allocation23_spill] sm:$0xff]  ;;  %v396_v1 = vmul.f32 %v358_v26, %v273_v52  ;;  %v101_v30 = vsel %vm89_vm1, %v9130_v37, %v84_v62  ;;  %v6303_v37 = vld [vmem:[%s8990_s0 + $0x60] sm:$0xff] }
 0x167   :  { %v272_v12 = vsel %vm260_vm0, %v9129_v22, %v255_v17  ;;  %v224_v36 = vmul.f32 %v186_v11, %v102_v43  ;;  %v638_v25 = vrot.slane %v6993_v33, %v7268_v44  ;;  %v1098_v58 = vrot.slane %v7050_v42, %v7271_v4  ;;  %v9132_v17 = vld [vmem:[#allocation26_spill] sm:$0xff] }
 0x168   :  { %2620 = vmatpush1.bf16.msra.mxu0 %v6164_v6  ;;  %v711_v35 = vpop.permute.xlu1 %710  ;;  %v395_v27 = vmul.f32 %v354_v41, %v272_v12  ;;  %v223_v55 = vmul.f32 %v182_v31, %v101_v30  ;;  %v1094_v60 = vrot.slane %v7050_v42, %v7268_v44  ;;  %v1382_v42 = vrot.slane %v7123_v40, %v7271_v4 }
 0x169   :  { %2621 = vmatprep.subr.bf16.mxu0 %v6181_v48  ;;  %v539_v53 = vpop.permute.xlu0 %538  ;;  %v729_v56 = vsel %vm716_vm3, %v711_v35, %v7275_v39  ;;  %v728_v39 = vsel %vm716_vm3, %v9131_v13, %v711_v35  ;;  %v6137_v33 = vpack.c.bf16 %v396_v1, %v224_v36  ;;  %v1554_v48 = vrot.slane %v7127_v7, %v7271_v4 }
 0x16a   :  { %v557_v14 = vsel %vm544_vm2, %v539_v53, %v7279_v61  ;;  %v2420_v61 = vsel %vm2394_vm8, %v6196_v29, 0  ;;  %v852_v16 = vmul.f32 %v814_v9, %v729_v56  ;;  %v556_v5 = vsel %vm544_vm2, %v9132_v17, %v539_v53  ;;  %v9134_v53 = vld [vmem:[#allocation33_spill] sm:$0xff] }
 0x16b   :  { %v680_v28 = vmul.f32 %v642_v8, %v557_v14  ;;  %v6136_v47 = vpack.c.bf16 %v395_v27, %v223_v55  ;;  %v851_v6 = vmul.f32 %v810_v18, %v728_v39  ;;  %v679_v10 = vmul.f32 %v638_v25, %v556_v5 }
 0x16c   :  { %2622 = vmatpush1.bf16.msra.mxu0 %v6180_v45  ;;  %v1278_v57 = vpop.permute.xlu1 %1277  ;;  %v1834_v52 = vrot.slane %v7170_v3, %v7268_v44  ;;  %v1550_v35 = vrot.slane %v7127_v7, %v7268_v44  ;;  %v6302_v45 = vld [vmem:[%s8990_s0 + $0x68] sm:$0xff]  ;;  %v1378_v22 = vrot.slane %v7123_v40, %v7268_v44 }
 0x16d   :  { %5774 = vmatprep.subr.msk.bf16.mxu0 %vm2394_vm8, %v6197_v32  ;;  %v994_v34 = vpop.permute.xlu0 %993  ;;  %v6152_v41 = vpack.c.bf16 %v851_v6, %v679_v10  ;;  %v1297_v31 = vsel %vm1283_vm5, %v1278_v57, %v7350_v59 }
 0x16e   :  { %v1013_v0 = vsel %vm999_vm4, %v994_v34, %v7307_v46  ;;  %v1012_v26 = vsel %vm999_vm4, %v9133_v15, %v994_v34  ;;  %v6153_v46 = vpack.c.bf16 %v852_v16, %v680_v28  ;;  %v1420_v1 = vmul.f32 %v1382_v42, %v1297_v31 }
 0x16f   :  { %v1136_v11 = vmul.f32 %v1098_v58, %v1013_v0  ;;  %v1135_v9 = vmul.f32 %v1094_v60, %v1012_v26 }
 0x170   :  { %2624 = vmatpush1.bf16.msra.mxu0 %v2420_v61  ;;  %v1734_v43 = vpop.permute.xlu1 %1733 }
 0x171   :  { %2701 = vmatprep.subr.bf16.mxu0 %v6137_v33  ;;  %v1450_v62 = vpop.permute.xlu0 %1449  ;;  %v6169_v8 = vpack.c.bf16 %v1136_v11, %v6302_v45  ;;  %v1752_v59 = vsel %vm1739_vm7, %v7197_v2, %v1734_v43  ;;  %v1753_v7 = vsel %vm1739_vm7, %v1734_v43, %v7358_v49  ;;  %v6168_v30 = vpack.c.bf16 %v1135_v9, %v6303_v37 }
 0x172   :  { %v1469_v50 = vsel %vm1455_vm6, %v1450_v62, %v7346_v24  ;;  %v1838_v24 = vrot.slane %v7170_v3, %v7271_v4  ;;  %v1468_v29 = vsel %vm1455_vm6, %v9134_v53, %v1450_v62  ;;  %v9135_v3 = vld [vmem:[#allocation32_spill] sm:$0xff]  ;;  %v1875_v56 = vmul.f32 %v1834_v52, %v1752_v59 }
 0x173   :  { %5775 = vmatmul.mubr.msk.bf16.vlgmr.msra.gmra.mrb[8].mxu0 %vm2390_vm9, %v7427_v20  ;;  %v1592_v32 = vmul.f32 %v1554_v48, %v1469_v50  ;;  %v1296_v12 = vsel %vm1283_vm5, %v9135_v3, %v1278_v57  ;;  %v1591_v36 = vmul.f32 %v1550_v35, %v1468_v29 }
 0x174   :  { %2702 = vmatpush1.bf16.msra.mxu0 %v6136_v47  ;;  %2733 = vmatprep.mubr.bf16.mxu0 %v9097_v51  ;;  %v1876_v40 = vmul.f32 %v1838_v24, %v1753_v7  ;;  %v1419_v18 = vmul.f32 %v1378_v22, %v1296_v12  ;;  %v6200_v58 = vpack.c.bf16 %v1875_v56, %v1875_v56 }
 0x175   :  { %2703 = vmatprep.subr.bf16.mxu0 %v6153_v46  ;;  %v6185_v14 = vpack.c.bf16 %v1592_v32, %v1420_v1 }
 0x176   :  { %v6184_v49 = vpack.c.bf16 %v1591_v36, %v1419_v18  ;;  %v6201_v34 = vpack.c.bf16 %v1876_v40, %v1876_v40  ;;  %v2432_v13 = vsel %vm2394_vm8, %v6200_v58, 0 }
 0x178   :  { %2704 = vmatpush1.bf16.msra.mxu0 %v6152_v41 }
 0x179   :  { %2705 = vmatprep.subr.bf16.mxu0 %v6169_v8 }
 0x17c   :  { %2706 = vmatpush1.bf16.msra.mxu0 %v6168_v30 }
 0x17d   :  { %2707 = vmatprep.subr.bf16.mxu0 %v6185_v14  ;;  %v2520_v2 = vpop.f32.mrb[0].mxu1 }
 0x17e   :  { %v2522_v25 = vpop.f32.mrb[1].mxu1 }
 0x17f   :  { %v7562_v27 = vpop.f32.mrb[2].mxu1 }
 0x180   :  { %9136 = vst [vmem:[#allocation4_spill] sm:$0xff] %v7562_v27  ;;  %2708 = vmatpush1.bf16.msra.mxu0 %v6184_v49  ;;  %v7564_v55 = vpop.f32.mrb[3].mxu1 }
 0x181   :  { %9137 = vst [vmem:[#allocation15_spill] sm:$0xff] %v7564_v55  ;;  %5778 = vmatprep.subr.msk.bf16.mxu0 %vm2394_vm8, %v6201_v34 }
 0x182   :  { %v7568_v39 = vpop.permute.xlu0 %2790 }
 0x183   :  { %v2795_v61 = vadd.f32 %v7568_v39, %v2520_v2  ;;  %v2796_v46 = vadd.f32 %v7568_v39, %v2522_v25 }
 0x184   :  { %2710 = vmatpush1.bf16.msra.mxu0 %v2432_v13 }
 0x185   :  { %v7574_v16 = vmax.f32 %v2795_v61, 0.0  ;;  %v7629_v50 = vmax.f32 %v2796_v46, 0.0  ;;  %v2907_v46 = vld [vmem:[%s8992_s1] ss:$8 sm:$0xf0] }
 0x187   :  { %5779 = vmatmul.mubr.msk.bf16.vlgmr.msra.gmra.mrb[12].mxu0 %vm2390_vm9, %v7427_v20  ;;  %2848 = vrot.lane.b32.xlu0 %v7574_v16, %s6306_s24 }
 0x188   :  { %5235 = vmatprep.mubr.bf16.mxu0 %v9097_v51 }
 0x1ad   :  { %v7578_v17 = vpop.f32.mrb[4].mxu1 }
 0x1ae   :  { %v7580_v5 = vpop.f32.mrb[5].mxu1  ;;  %v2799_v59 = vadd.f32 %v7568_v39, %v7578_v17 }
 0x1af   :  { %v7582_v28 = vpop.f32.mrb[6].mxu1  ;;  %v2800_v56 = vadd.f32 %v7568_v39, %v7580_v5 }
 0x1b0   :  { %9138 = vst [vmem:[#allocation5_spill] sm:$0xff] %v7582_v28  ;;  %v7584_v57 = vpop.f32.mrb[7].mxu1  ;;  %v7698_v7 = vmax.f32 %v2799_v59, 0.0 }
 0x1b1   :  { %9139 = vst [vmem:[#allocation17_spill] sm:$0xff] %v7584_v57  ;;  %v7733_v40 = vmax.f32 %v2800_v56, 0.0 }
 0x1f2   :  { %v7586_v33 = vpop.f32.mrb[8].mxu1 }
 0x1f3   :  { %v7588_v20 = vpop.f32.mrb[9].mxu1  ;;  %v2803_v17 = vadd.f32 %v7568_v39, %v7586_v33  ;;  %v2906_v33 = vld [vmem:[%s8992_s1] ss:$8 sm:$0xf] }
 0x1f4   :  { %v7590_v0 = vpop.f32.mrb[10].mxu1 }
 0x1f5   :  { %9140 = vst [vmem:[#allocation7_spill] sm:$0xff] %v7590_v0  ;;  %v7592_v62 = vpop.f32.mrb[11].mxu1 }
 0x1f6   :  { %9141 = vst [vmem:[#allocation19_spill] sm:$0xff] %v7592_v62 }
 0x1f9   :  { %v7759_v14 = vpop.permute.xlu0 %2848 }
 0x20a   :  { %v2477_v47 = vpop.f32.mrb[0].mxu0 }
 0x20b   :  { %v2793_v6 = vadd.f32 %v7568_v39, %v2477_v47  ;;  %v2479_v10 = vpop.f32.mrb[1].mxu0 }
 0x20c   :  { %v7595_v60 = vpop.f32.mrb[2].mxu0  ;;  %v2794_v11 = vadd.f32 %v7568_v39, %v2479_v10 }
 0x20d   :  { %9142 = vst [vmem:[#allocation6_spill] sm:$0xff] %v7595_v60  ;;  %v7597_v15 = vmax.f32 %v2793_v6, 0.0  ;;  %v7599_v26 = vpop.f32.mrb[3].mxu0  ;;  %v7800_v6 = vmax.f32 %v2803_v17, 0.0 }
 0x20e   :  { %9144 = vst [vmem:[#allocation24_spill] sm:$0xff] %v7599_v26  ;;  %v7622_v48 = vmax.f32 %v2794_v11, 0.0 }
 0x20f   :  { %9143 = vst [vmem:[#allocation20_spill] sm:$0xff] %v7597_v15  ;;  %3013 = vrot.lane.b32.xlu0 %v7597_v15, %s6305_s23  ;;  %2844 = vrot.lane.b32.xlu1 %v7597_v15, %s6306_s24  ;;  %9163 = vst [vmem:[#allocation32_spill] sm:$0xff] %v7800_v6 }
 0x210   :  { %9145 = vst [vmem:[#allocation11_spill] sm:$0xff] %v7622_v48 }
 0x213   :  { %3017 = vrot.lane.b32.xlu0 %v7574_v16, %s6305_s23  ;;  %3745 = vrot.lane.b32.xlu1 %v7574_v16, %s6309_s9 }
 0x217   :  { %3294 = vrot.lane.b32.xlu0 %v7597_v15, %s6307_s29  ;;  %4022 = vrot.lane.b32.xlu1 %v7597_v15, %s6310_s10 }
 0x21b   :  { %3298 = vrot.lane.b32.xlu0 %v7574_v16, %s6307_s29  ;;  %4472 = vrot.lane.b32.xlu1 %v7597_v15, %s6312_s12 }
 0x21f   :  { %3463 = vrot.lane.b32.xlu0 %v7597_v15, %s6308_s30  ;;  %4476 = vrot.lane.b32.xlu1 %v7574_v16, %s6312_s12 }
 0x223   :  { %3467 = vrot.lane.b32.xlu0 %v7574_v16, %s6308_s30  ;;  %2846 = vrot.lane.b32.xlu1 %v7622_v48, %s6306_s24 }
 0x227   :  { %3741 = vrot.lane.b32.xlu0 %v7597_v15, %s6309_s9  ;;  %2850 = vrot.lane.b32.xlu1 %v7629_v50, %s6306_s24 }
 0x22a   :  { %v7635_v42 = vpop.f32.mrb[12].mxu1 }
 0x22b   :  { %v7637_v52 = vpop.f32.mrb[13].mxu1  ;;  %4026 = vrot.lane.b32.xlu0 %v7574_v16, %s6310_s10  ;;  %3015 = vrot.lane.b32.xlu1 %v7622_v48, %s6305_s23 }
 0x22c   :  { %v7643_v43 = vpop.f32.mrb[14].mxu1  ;;  %v2808_v17 = vadd.f32 %v7568_v39, %v7637_v52 }
 0x22d   :  { %9146 = vst [vmem:[#allocation25_spill] sm:$0xff] %v7643_v43  ;;  %v7645_v41 = vpop.f32.mrb[15].mxu1 }
 0x22e   :  { %9147 = vst [vmem:[#allocation9_spill] sm:$0xff] %v7645_v41 }
 0x22f   :  { %4195 = vrot.lane.b32.xlu0 %v7574_v16, %s6311_s11  ;;  %3019 = vrot.lane.b32.xlu1 %v7629_v50, %s6305_s23 }
 0x232   :  { %v2563_v31 = vpop.f32.mrb[4].mxu0 }
 0x233   :  { %v2565_v9 = vpop.f32.mrb[5].mxu0  ;;  %4191 = vrot.lane.b32.xlu0 %v7597_v15, %s6311_s11  ;;  %3296 = vrot.lane.b32.xlu1 %v7622_v48, %s6307_s29  ;;  %v2797_v53 = vadd.f32 %v7568_v39, %v2563_v31  ;;  %v5784_v31 = vld [vmem:[%s8992_s1 + $0x1] ss:$8 sm:$0xf] }
 0x234   :  { %v7655_v35 = vpop.f32.mrb[6].mxu0  ;;  %v2798_v37 = vadd.f32 %v7568_v39, %v2565_v9  ;;  %v5785_v9 = vld [vmem:[%s8992_s1 + $0x1] ss:$8 sm:$0xf0] }
 0x235   :  { %9148 = vst [vmem:[#allocation28_spill] sm:$0xff] %v7655_v35  ;;  %v7657_v24 = vpop.f32.mrb[7].mxu0  ;;  %v7676_v29 = vmax.f32 %v2797_v53, 0.0  ;;  %v7832_v56 = vor.u32 %v5785_v9, %v5784_v31  ;;  %v7856_v9 = vmax.f32 %v2808_v17, 0.0 }
 0x236   :  { %9149 = vst [vmem:[#allocation13_spill] sm:$0xff] %v7657_v24  ;;  %v7725_v36 = vmax.f32 %v2798_v37, 0.0  ;;  %v7826_v37 = vor.u32 %v2907_v46, %v2906_v33 }
 0x237   :  { %3743 = vrot.lane.b32.xlu0 %v7622_v48, %s6309_s9  ;;  %3300 = vrot.lane.b32.xlu1 %v7629_v50, %s6307_s29  ;;  %9150 = vst [vmem:[#allocation12_spill] sm:$0xff] %v7676_v29  ;;  %9169 = vst [vmem:[#allocation39_spill] sm:$0xff] %v7856_v9 }
 0x238   :  { %9155 = vst [vmem:[#allocation18_spill] sm:$0xff] %v7725_v36  ;;  %v2921_v46 = vrot.slane %v7826_v37, %v7018_v38  ;;  %v2925_v24 = vrot.slane %v7826_v37, %v6545_v23 }
 0x23b   :  { %3747 = vrot.lane.b32.xlu0 %v7629_v50, %s6309_s9  ;;  %3465 = vrot.lane.b32.xlu1 %v7622_v48, %s6308_s30 }
 0x23f   :  { %4474 = vrot.lane.b32.xlu0 %v7622_v48, %s6312_s12  ;;  %3469 = vrot.lane.b32.xlu1 %v7629_v50, %s6308_s30 }
 0x243   :  { %4478 = vrot.lane.b32.xlu0 %v7629_v50, %s6312_s12  ;;  %4024 = vrot.lane.b32.xlu1 %v7622_v48, %s6310_s10 }
 0x246   :  { %v2649_v32 = vpop.f32.mrb[8].mxu0 }
 0x247   :  { %v7678_v45 = vpop.f32.mrb[9].mxu0  ;;  %4030 = vrot.lane.b32.xlu0 %v7676_v29, %s6310_s10  ;;  %4028 = vrot.lane.b32.xlu1 %v7629_v50, %s6310_s10  ;;  %v2801_v49 = vadd.f32 %v7568_v39, %v2649_v32 }
 0x248   :  { %v7684_v8 = vpop.f32.mrb[10].mxu0  ;;  %v2802_v53 = vadd.f32 %v7568_v39, %v7678_v45 }
 0x249   :  { %9151 = vst [vmem:[#allocation29_spill] sm:$0xff] %v7684_v8  ;;  %v7686_v22 = vpop.f32.mrb[11].mxu0  ;;  %v7780_v34 = vmax.f32 %v2801_v49, 0.0  ;;  %v2804_v49 = vadd.f32 %v7568_v39, %v7588_v20  ;;  %v3090_v20 = vrot.slane %v7832_v56, %v7018_v38 }
 0x24a   :  { %9152 = vst [vmem:[#allocation31_spill] sm:$0xff] %v7686_v22  ;;  %v7838_v45 = vmax.f32 %v2802_v53, 0.0 }
 0x24b   :  { %4199 = vrot.lane.b32.xlu0 %v7676_v29, %s6311_s11  ;;  %4193 = vrot.lane.b32.xlu1 %v7622_v48, %s6311_s11  ;;  %9159 = vst [vmem:[#allocation27_spill] sm:$0xff] %v7780_v34  ;;  %v7854_v31 = vmax.f32 %v2804_v49, 0.0  ;;  %v3098_v49 = vrot.slane %v7832_v56, %v6540_v19 }
 0x24c   :  { %9166 = vst [vmem:[#allocation36_spill] sm:$0xff] %v7838_v45 }
 0x24d   :  { %9168 = vst [vmem:[#allocation38_spill] sm:$0xff] %v7854_v31 }
 0x24f   :  { %2852 = vrot.lane.b32.xlu0 %v7676_v29, %s6306_s24  ;;  %4197 = vrot.lane.b32.xlu1 %v7629_v50, %s6311_s11 }
 0x253   :  { %2856 = vrot.lane.b32.xlu0 %v7698_v7, %s6306_s24  ;;  %3749 = vrot.lane.b32.xlu1 %v7676_v29, %s6309_s9 }
 0x257   :  { %3021 = vrot.lane.b32.xlu0 %v7676_v29, %s6305_s23  ;;  %4480 = vrot.lane.b32.xlu1 %v7676_v29, %s6312_s12 }
 0x25a   :  { %v7708_v3 = vpop.f32.mrb[12].mxu0 }
 0x25b   :  { %v7710_v12 = vpop.f32.mrb[13].mxu0  ;;  %3025 = vrot.lane.b32.xlu0 %v7698_v7, %s6305_s23  ;;  %3753 = vrot.lane.b32.xlu1 %v7698_v7, %s6309_s9 }
 0x25c   :  { %v7716_v1 = vpop.f32.mrb[14].mxu0 }
 0x25d   :  { %9153 = vst [vmem:[#allocation14_spill] sm:$0xff] %v7716_v1  ;;  %v7719_v30 = vpop.f32.mrb[15].mxu0  ;;  %v3094_v1 = vrot.slane %v7832_v56, %v6545_v23 }
 0x25e   :  { %9154 = vst [vmem:[#allocation21_spill] sm:$0xff] %v7719_v30  ;;  %v2929_v30 = vrot.slane %v7826_v37, %v6540_v19 }
 0x25f   :  { %3302 = vrot.lane.b32.xlu0 %v7676_v29, %s6307_s29  ;;  %4034 = vrot.lane.b32.xlu1 %v7698_v7, %s6310_s10 }
 0x263   :  { %3306 = vrot.lane.b32.xlu0 %v7698_v7, %s6307_s29  ;;  %2854 = vrot.lane.b32.xlu1 %v7725_v36, %s6306_s24 }
 0x267   :  { %3471 = vrot.lane.b32.xlu0 %v7676_v29, %s6308_s30  ;;  %2858 = vrot.lane.b32.xlu1 %v7733_v40, %s6306_s24 }
 0x26b   :  { %3475 = vrot.lane.b32.xlu0 %v7698_v7, %s6308_s30  ;;  %3023 = vrot.lane.b32.xlu1 %v7725_v36, %s6305_s23 }
 0x26f   :  { %3751 = vrot.lane.b32.xlu0 %v7725_v36, %s6309_s9  ;;  %3027 = vrot.lane.b32.xlu1 %v7733_v40, %s6305_s23 }
 0x273   :  { %3755 = vrot.lane.b32.xlu0 %v7733_v40, %s6309_s9  ;;  %3304 = vrot.lane.b32.xlu1 %v7725_v36, %s6307_s29 }
 0x277   :  { %4032 = vrot.lane.b32.xlu0 %v7725_v36, %s6310_s10  ;;  %3308 = vrot.lane.b32.xlu1 %v7733_v40, %s6307_s29 }
 0x27b   :  { %4036 = vrot.lane.b32.xlu0 %v7733_v40, %s6310_s10  ;;  %3473 = vrot.lane.b32.xlu1 %v7725_v36, %s6308_s30 }
 0x27f   :  { %4201 = vrot.lane.b32.xlu0 %v7725_v36, %s6311_s11  ;;  %3477 = vrot.lane.b32.xlu1 %v7733_v40, %s6308_s30 }
 0x281   :  { %v7765_v18 = vpop.permute.xlu0 %3013  ;;  %v7767_v2 = vpop.permute.xlu1 %2844 }
 0x282   :  { %9156 = vst [vmem:[#allocation16_spill] sm:$0xff] %v7765_v18  ;;  %9157 = vst [vmem:[#allocation23_spill] sm:$0xff] %v7767_v2 }
 0x283   :  { %4205 = vrot.lane.b32.xlu0 %v7733_v40, %s6311_s11  ;;  %4203 = vrot.lane.b32.xlu1 %v7698_v7, %s6311_s11 }
 0x285   :  { %v3018_v25 = vpop.permute.xlu0 %3017  ;;  %v7774_v58 = vpop.permute.xlu1 %3745 }
 0x286   :  { %9158 = vst [vmem:[#allocation22_spill] sm:$0xff] %v7774_v58 }
 0x287   :  { %4482 = vrot.lane.b32.xlu0 %v7725_v36, %s6312_s12  ;;  %4484 = vrot.lane.b32.xlu1 %v7698_v7, %s6312_s12 }
 0x289   :  { %v7782_v13 = vpop.permute.xlu0 %3294  ;;  %v7784_v61 = vpop.permute.xlu1 %4022 }
 0x28a   :  { %9160 = vst [vmem:[#allocation26_spill] sm:$0xff] %v7782_v13  ;;  %9161 = vst [vmem:[#allocation30_spill] sm:$0xff] %v7784_v61 }
 0x28b   :  { %4486 = vrot.lane.b32.xlu0 %v7733_v40, %s6312_s12  ;;  %3757 = vrot.lane.b32.xlu1 %v7780_v34, %s6309_s9 }
 0x28d   :  { %v7792_v5 = vpop.permute.xlu0 %3298  ;;  %v7794_v47 = vpop.permute.xlu1 %4472 }
 0x28e   :  { %9162 = vst [vmem:[#allocation33_spill] sm:$0xff] %v7794_v47 }
 0x28f   :  { %2860 = vrot.lane.b32.xlu0 %v7780_v34, %s6306_s24  ;;  %4038 = vrot.lane.b32.xlu1 %v7780_v34, %s6310_s10 }
 0x291   :  { %v7802_v10 = vpop.permute.xlu0 %3463  ;;  %v7804_v11 = vpop.permute.xlu1 %4476 }
 0x292   :  { %9164 = vst [vmem:[#allocation34_spill] sm:$0xff] %v7802_v10  ;;  %9165 = vst [vmem:[#allocation35_spill] sm:$0xff] %v7804_v11 }
 0x293   :  { %2864 = vrot.lane.b32.xlu0 %v7800_v6, %s6306_s24  ;;  %4207 = vrot.lane.b32.xlu1 %v7780_v34, %s6311_s11 }
 0x295   :  { %v7824_v32 = vpop.permute.xlu0 %3467  ;;  %v2847_v59 = vpop.permute.xlu1 %2846 }
 0x296   :  { %v2874_v52 = vsel %vm89_vm1, %v7767_v2, %v2847_v59 }
 0x297   :  { %3029 = vrot.lane.b32.xlu0 %v7780_v34, %s6305_s23  ;;  %4488 = vrot.lane.b32.xlu1 %v7780_v34, %s6312_s12  ;;  %v2995_v8 = vmul.f32 %v2921_v46, %v2874_v52  ;;  %v2875_v52 = vsel %vm89_vm1, %v2847_v59, %v7759_v14 }
 0x299   :  { %v7840_v41 = vpop.permute.xlu0 %3741  ;;  %v7842_v33 = vpop.permute.xlu1 %2850 }
 0x29a   :  { %9167 = vst [vmem:[#allocation37_spill] sm:$0xff] %v7840_v41  ;;  %v2876_v17 = vsel %vm89_vm1, %v7759_v14, %v7842_v33 }
 0x29b   :  { %3033 = vrot.lane.b32.xlu0 %v7800_v6, %s6305_s23  ;;  %2862 = vrot.lane.b32.xlu1 %v7838_v45, %s6306_s24  ;;  %v2997_v26 = vmul.f32 %v2929_v30, %v2876_v17 }
 0x29d   :  { %v7858_v53 = vpop.permute.xlu0 %4026  ;;  %v3016_v43 = vpop.permute.xlu1 %3015 }
 0x29e   :  { %v3043_v22 = vsel %vm260_vm0, %v7765_v18, %v3016_v43  ;;  %v3044_v0 = vsel %vm260_vm0, %v3016_v43, %v3018_v25  ;;  %v2996_v43 = vmul.f32 %v2925_v24, %v2875_v52  ;;  %v3102_v18 = vrot.slane %v7832_v56, %v7268_v44 }
 0x29f   :  { %v3164_v62 = vmul.f32 %v3090_v20, %v3043_v22  ;;  %2826 = vrot.lane.b32.xlu0 %v7856_v9, %s6306_s24  ;;  %2866 = vrot.lane.b32.xlu1 %v7854_v31, %s6306_s24  ;;  %v3165_v60 = vmul.f32 %v3094_v1, %v3044_v0  ;;  %v5808_v0 = vld [vmem:[%s8992_s1 + $0x3] ss:$8 sm:$0xf] }
 0x2a1   :  { %v7878_v46 = vpop.permute.xlu0 %4195  ;;  %v7880_v22 = vpop.permute.xlu1 %3019  ;;  %v6205_v20 = vpack.c.bf16 %v3164_v62, %v2995_v8  ;;  %v6206_v14 = vpack.c.bf16 %v3165_v60, %v2996_v43  ;;  %v5804_v60 = vld [vmem:[%s8992_s1 + $0x2] ss:$8 sm:$0xf] }
 0x2a2   :  { %9170 = vst [vmem:[#allocation40_spill] sm:$0xff] %v7878_v46  ;;  %v3045_v35 = vsel %vm260_vm0, %v3018_v25, %v7880_v22 }
 0x2a3   :  { %v3166_v57 = vmul.f32 %v3098_v49, %v3045_v35  ;;  %3291 = vrot.lane.b32.xlu0 %v7856_v9, %s6307_s29  ;;  %3031 = vrot.lane.b32.xlu1 %v7838_v45, %s6305_s23  ;;  %v5809_v35 = vld [vmem:[%s8992_s1 + $0x3] ss:$8 sm:$0xf0] }
 0x2a4   :  { %5203 = vmatprep.subr.bf16.mxu0 %v6205_v20  ;;  %v7918_v1 = vor.u32 %v5809_v35, %v5808_v0 }
 0x2a5   :  { %v7890_v28 = vpop.permute.xlu0 %4191  ;;  %v7892_v62 = vpop.permute.xlu1 %3296  ;;  %v6207_v8 = vpack.c.bf16 %v3166_v57, %v2997_v26  ;;  %v5805_v26 = vld [vmem:[%s8992_s1 + $0x2] ss:$8 sm:$0xf0] }
 0x2a6   :  { %9171 = vst [vmem:[#allocation41_spill] sm:$0xff] %v7890_v28  ;;  %9172 = vst [vmem:[#allocation42_spill] sm:$0xff] %v7892_v62  ;;  %v7920_v30 = vor.u32 %v5805_v26, %v5804_v60  ;;  %v3544_v17 = vrot.slane %v7918_v1, %v6545_v23  ;;  %v3548_v20 = vrot.slane %v7918_v1, %v6540_v19 }
 0x2a7   :  { %3310 = vrot.lane.b32.xlu0 %v7780_v34, %s6307_s29  ;;  %3035 = vrot.lane.b32.xlu1 %v7854_v31, %s6305_s23  ;;  %v3325_v35 = vsel %vm544_vm2, %v7892_v62, %v7792_v5 }
 0x2a8   :  { %5244 = vmatprep.subr.bf16.mxu1 %v6207_v8  ;;  %v3379_v49 = vrot.slane %v7920_v30, %v6540_v19  ;;  %v3375_v8 = vrot.slane %v7920_v30, %v6545_v23 }
 0x2a9   :  { %5245 = vmatpush1.bf16.msra.mxu1 %v6206_v14  ;;  %v7904_v24 = vpop.permute.xlu0 %3743  ;;  %v7906_v57 = vpop.permute.xlu1 %3300 }
 0x2aa   :  { %9173 = vst [vmem:[#allocation43_spill] sm:$0xff] %v7904_v24  ;;  %v3326_v52 = vsel %vm544_vm2, %v7792_v5, %v7906_v57 }
 0x2ab   :  { %3314 = vrot.lane.b32.xlu0 %v7800_v6, %s6307_s29  ;;  %3010 = vrot.lane.b32.xlu1 %v7856_v9, %s6305_s23  ;;  %v3447_v26 = vmul.f32 %v3379_v49, %v3326_v52  ;;  %v5853_v52 = vld [vmem:[%s8992_s1 + $0x7] ss:$8 sm:$0xf0] }
 0x2ad   :  { %v7922_v25 = vpop.permute.xlu0 %3747  ;;  %v7924_v59 = vpop.permute.xlu1 %3465 }
 0x2ae   :  { %v3494_v43 = vsel %vm716_vm3, %v7924_v59, %v7824_v32  ;;  %v3775_v61 = vsel %vm999_vm4, %v7774_v58, %v7922_v25 }
 0x2af   :  { %3479 = vrot.lane.b32.xlu0 %v7780_v34, %s6308_s30  ;;  %3460 = vrot.lane.b32.xlu1 %v7856_v9, %s6308_s30  ;;  %v3615_v55 = vmul.f32 %v3544_v17, %v3494_v43  ;;  %v3446_v34 = vmul.f32 %v3375_v8, %v3325_v35  ;;  %v5872_v43 = vld [vmem:[%s8992_s1 + $0x80] ss:$8 sm:$0xf]  ;;  %v2805_v35 = vadd.f32 %v7568_v39, %v7708_v3 }
 0x2b0   :  { %v5873_v8 = vld [vmem:[%s8992_s1 + $0x80] ss:$8 sm:$0xf0] }
 0x2b1   :  { %v7944_v14 = vpop.permute.xlu0 %4474  ;;  %v7946_v0 = vpop.permute.xlu1 %3469  ;;  %v6222_v5 = vpack.c.bf16 %v3615_v55, %v3446_v34  ;;  %v5829_v55 = vld [vmem:[%s8992_s1 + $0x5] ss:$8 sm:$0xf0]  ;;  %v8017_v3 = vor.u32 %v5873_v8, %v5872_v43 }
 0x2b2   :  { %9174 = vst [vmem:[#allocation44_spill] sm:$0xff] %v7944_v14  ;;  %v3495_v60 = vsel %vm716_vm3, %v7824_v32, %v7946_v0 }
 0x2b3   :  { %v3616_v27 = vmul.f32 %v3548_v20, %v3495_v60  ;;  %3483 = vrot.lane.b32.xlu0 %v7800_v6, %s6308_s30  ;;  %3312 = vrot.lane.b32.xlu1 %v7838_v45, %s6307_s29  ;;  %v5852_v20 = vld [vmem:[%s8992_s1 + $0x7] ss:$8 sm:$0xf] }
 0x2b4   :  { %v8015_v47 = vor.u32 %v5853_v52, %v5852_v20  ;;  %v4556_v52 = vrot.slane %v8017_v3, %v6545_v23 }
 0x2b5   :  { %v7958_v29 = vpop.permute.xlu0 %4478  ;;  %v7960_v36 = vpop.permute.xlu1 %4024  ;;  %v6223_v15 = vpack.c.bf16 %v3616_v27, %v3447_v26  ;;  %v5828_v27 = vld [vmem:[%s8992_s1 + $0x5] ss:$8 sm:$0xf]  ;;  %v5848_v26 = vld [vmem:[%s8992_s1 + $0x6] ss:$8 sm:$0xf] }
 0x2b6   :  { %9175 = vst [vmem:[#allocation45_spill] sm:$0xff] %v7960_v36  ;;  %v7982_v17 = vor.u32 %v5829_v55, %v5828_v27  ;;  %v4279_v28 = vrot.slane %v8015_v47, %v6540_v19  ;;  %v8029_v36 = vmax.f32 %v2805_v35, 0.0  ;;  %v4275_v35 = vrot.slane %v8015_v47, %v6545_v23 }
 0x2b7   :  { %3759 = vrot.lane.b32.xlu0 %v7838_v45, %s6309_s9  ;;  %3316 = vrot.lane.b32.xlu1 %v7854_v31, %s6307_s29  ;;  %v4506_v13 = vsel %vm1739_vm7, %v7804_v11, %v7958_v29 }
 0x2b8   :  { %5246 = vmatprep.subr.bf16.mxu1 %v6223_v15  ;;  %v3825_v60 = vrot.slane %v7982_v17, %v6545_v23  ;;  %v3829_v14 = vrot.slane %v7982_v17, %v6540_v19  ;;  %9177 = vst [vmem:[#allocation47_spill] sm:$0xff] %v8029_v36 }
 0x2b9   :  { %5247 = vmatpush1.bf16.msra.mxu1 %v6222_v5  ;;  %v7966_v32 = vpop.permute.xlu0 %4030  ;;  %v4029_v49 = vpop.permute.xlu1 %4028  ;;  %v5849_v5 = vld [vmem:[%s8992_s1 + $0x6] ss:$8 sm:$0xf0] }
 0x2ba   :  { %v8025_v48 = vor.u32 %v5849_v5, %v5848_v26  ;;  %v3896_v20 = vmul.f32 %v3825_v60, %v3775_v61  ;;  %v2933_v5 = vrot.slane %v7826_v37, %v7268_v44  ;;  %v4057_v60 = vsel %vm1283_vm5, %v4029_v49, %v7966_v32 }
 0x2bb   :  { %3763 = vrot.lane.b32.xlu0 %v7854_v31, %s6309_s9  ;;  %3481 = vrot.lane.b32.xlu1 %v7838_v45, %s6308_s30 }
 0x2bc   :  { %v4110_v26 = vrot.slane %v8025_v48, %v6540_v19  ;;  %v4106_v62 = vrot.slane %v8025_v48, %v6545_v23 }
 0x2bd   :  { %v7978_v34 = vpop.permute.xlu0 %4199  ;;  %v7980_v15 = vpop.permute.xlu1 %4193 }
 0x2be   :  { %9176 = vst [vmem:[#allocation46_spill] sm:$0xff] %v7980_v15 }
 0x2bf   :  { %4040 = vrot.lane.b32.xlu0 %v7838_v45, %s6310_s10  ;;  %3485 = vrot.lane.b32.xlu1 %v7854_v31, %s6308_s30 }
 0x2c1   :  { %v8010_v27 = vpop.permute.xlu0 %2852  ;;  %v4198_v55 = vpop.permute.xlu1 %4197 }
 0x2c2   :  { %v4226_v43 = vsel %vm1455_vm6, %v4198_v55, %v7978_v34  ;;  %v2877_v24 = vsel %vm89_vm1, %v7842_v33, %v8010_v27 }
 0x2c3   :  { %4044 = vrot.lane.b32.xlu0 %v7854_v31, %s6310_s10  ;;  %3761 = vrot.lane.b32.xlu1 %v7800_v6, %s6309_s9  ;;  %v4347_v58 = vmul.f32 %v4279_v28, %v4226_v43  ;;  %v4056_v28 = vsel %vm1283_vm5, %v7858_v53, %v4029_v49  ;;  %v8082_v43 = vmul.f32 %v2933_v5, %v2877_v24 }
 0x2c4   :  { %v2807_v5 = vadd.f32 %v7568_v39, %v7635_v42  ;;  %v3552_v42 = vrot.slane %v7918_v1, %v7268_v44 }
 0x2c5   :  { %v8035_v8 = vpop.permute.xlu0 %2856  ;;  %v8037_v15 = vpop.permute.xlu1 %3749  ;;  %9178 = vst [vmem:[#allocation48_spill] sm:$0xff] %v8082_v43 }
 0x2c6   :  { %v3776_v61 = vsel %vm999_vm4, %v7922_v25, %v8037_v15  ;;  %v4225_v25 = vsel %vm1455_vm6, %v7878_v46, %v4198_v55  ;;  %v4178_v55 = vmul.f32 %v4110_v26, %v4057_v60 }
 0x2c7   :  { %v3897_v41 = vmul.f32 %v3829_v14, %v3776_v61  ;;  %4209 = vrot.lane.b32.xlu0 %v7838_v45, %s6311_s11  ;;  %3765 = vrot.lane.b32.xlu1 %v8029_v36, %s6309_s9  ;;  %v4560_v14 = vrot.slane %v8017_v3, %v6540_v19  ;;  %v6238_v61 = vpack.c.bf16 %v3896_v20, %v7574_v16 }
 0x2c8   :  { %v4346_v11 = vmul.f32 %v4275_v35, %v4225_v25  ;;  %v6255_v49 = vpack.c.bf16 %v4347_v58, %v4178_v55  ;;  %v8115_v25 = vld [vmem:[%s8994_s4] sm:$0xf] }
 0x2c9   :  { %v8069_v2 = vpop.permute.xlu0 %3021  ;;  %v8071_v10 = vpop.permute.xlu1 %4480  ;;  %v6239_v33 = vpack.c.bf16 %v3897_v41, %v7629_v50  ;;  %v4627_v50 = vmul.f32 %v4556_v52, %v4506_v13 }
 0x2ca   :  { %v3046_v16 = vsel %vm260_vm0, %v7880_v22, %v8069_v2  ;;  %v4507_v20 = vsel %vm1739_vm7, %v7958_v29, %v8071_v10  ;;  %v4177_v22 = vmul.f32 %v4106_v62, %v4056_v28  ;;  %v2806_v28 = vadd.f32 %v7568_v39, %v7710_v12 }
 0x2cb   :  { %v8084_v46 = vmul.f32 %v3102_v18, %v3046_v16  ;;  %4213 = vrot.lane.b32.xlu0 %v7854_v31, %s6311_s11  ;;  %4042 = vrot.lane.b32.xlu1 %v7800_v6, %s6310_s10  ;;  %v4628_v41 = vmul.f32 %v4560_v14, %v4507_v20  ;;  %v6270_v13 = vpack.c.bf16 %v4627_v50, %v4627_v50 }
 0x2cc   :  { %5248 = vmatprep.subr.bf16.mxu1 %v6239_v33  ;;  %v6254_v18 = vpack.c.bf16 %v4346_v11, %v4177_v22  ;;  %v2937_v20 = vrot.slane %v7826_v37, %v7271_v4  ;;  %v3106_v39 = vrot.slane %v7832_v56, %v7271_v4  ;;  %v8153_v12 = vmax.f32 %v2806_v28, 0.0 }
 0x2cd   :  { %9179 = vst [vmem:[#allocation49_spill] sm:$0xff] %v8084_v46  ;;  %5249 = vmatpush1.bf16.msra.mxu1 %v6238_v61  ;;  %v3026_v29 = vpop.permute.xlu0 %3025  ;;  %v8092_v24 = vpop.permute.xlu1 %3753  ;;  %v6271_v52 = vpack.c.bf16 %v4628_v41, %v4628_v41  ;;  %v5162_v11 = vsel %vm2394_vm8, %v6270_v13, 0  ;;  %v3383_v61 = vrot.slane %v7920_v30, %v7268_v44  ;;  %v3110_v13 = vrot.slane %v7832_v56, %v6767_v63 }
 0x2ce   :  { %5250 = vmatprep.subr.bf16.mxu1 %v6255_v49  ;;  %9183 = vst [vmem:[#allocation53_spill] sm:$0xff] %v8153_v12 }
 0x2cf   :  { %4490 = vrot.lane.b32.xlu0 %v7838_v45, %s6312_s12  ;;  %4046 = vrot.lane.b32.xlu1 %v8029_v36, %s6310_s10 }
 0x2d1   :  { %5251 = vmatpush1.bf16.msra.mxu1 %v6254_v18  ;;  %v8098_v58 = vpop.permute.xlu0 %3302  ;;  %v8100_v62 = vpop.permute.xlu1 %4034  ;;  %v2945_v18 = vrot.slane %v7826_v37, %v6755_v54 }
 0x2d2   :  { %5966 = vmatprep.subr.msk.bf16.mxu1 %vm2394_vm8, %v6271_v52  ;;  %v3327_v33 = vsel %vm544_vm2, %v7906_v57, %v8098_v58 }
 0x2d3   :  { %4494 = vrot.lane.b32.xlu0 %v7854_v31, %s6312_s12  ;;  %4211 = vrot.lane.b32.xlu1 %v7800_v6, %s6311_s11  ;;  %v8143_v57 = vmul.f32 %v3383_v61, %v3327_v33  ;;  %v3114_v61 = vrot.slane %v7832_v56, %v6755_v54  ;;  %v4287_v31 = vrot.slane %v8015_v47, %v7271_v4 }
 0x2d5   :  { %5253 = vmatpush1.bf16.msra.mxu1 %v5162_v11  ;;  %v8110_v35 = vpop.permute.xlu0 %3306  ;;  %v2855_v60 = vpop.permute.xlu1 %2854  ;;  %9181 = vst [vmem:[#allocation51_spill] sm:$0xff] %v8143_v57 }
 0x2d6   :  { %v2878_v14 = vsel %vm89_vm1, %v8010_v27, %v2855_v60  ;;  %v8132_v27 = vmax.f32 %v2807_v5, 0.0 }
 0x2d7   :  { %2868 = vrot.lane.b32.xlu0 %v8029_v36, %s6306_s24  ;;  %4215 = vrot.lane.b32.xlu1 %v8029_v36, %s6311_s11  ;;  %v8165_v11 = vmul.f32 %v2937_v20, %v2878_v14 }
 0x2d8   :  { %5967 = vmatmul.mubr.msk.bf16.vlgmr.msra.gmra.mrb[16].mxu1 %vm2390_vm9, %v8115_v25  ;;  %9180 = vst [vmem:[#allocation50_spill] sm:$0xff] %v8132_v27 }
 0x2d9   :  { %v3472_v55 = vpop.permute.xlu0 %3471  ;;  %v8136_v16 = vpop.permute.xlu1 %2858  ;;  %5358 = vmatprep.mubr.bf16.mxu1 %v9097_v51 }
 0x2da   :  { %v3496_v50 = vsel %vm716_vm3, %v7946_v0, %v3472_v55 }
 0x2db   :  { %v8145_v41 = vmul.f32 %v3552_v42, %v3496_v50  ;;  %2872 = vrot.lane.b32.xlu0 %v8132_v27, %s6306_s24  ;;  %4492 = vrot.lane.b32.xlu1 %v7800_v6, %s6312_s12  ;;  %v2880_v42 = vsel %vm89_vm1, %v8035_v8, %v8136_v16  ;;  %v2879_v50 = vsel %vm89_vm1, %v2855_v60, %v8035_v8 }
 0x2dc   :  { %v3001_v49 = vmul.f32 %v2945_v18, %v2880_v42  ;;  %v3560_v42 = vrot.slane %v7918_v1, %v6767_v63 }
 0x2dd   :  { %9182 = vst [vmem:[#allocation52_spill] sm:$0xff] %v8145_v41  ;;  %v8157_v22 = vpop.permute.xlu0 %3475  ;;  %v3024_v0 = vpop.permute.xlu1 %3023 }
 0x2de   :  { %v3047_v52 = vsel %vm260_vm0, %v8069_v2, %v3024_v0  ;;  %v3048_v33 = vsel %vm260_vm0, %v3024_v0, %v3026_v29  ;;  %v2941_v2 = vrot.slane %v7826_v37, %v6767_v63 }
 0x2df   :  { %v8167_v5 = vmul.f32 %v3106_v39, %v3047_v52  ;;  %3039 = vrot.lane.b32.xlu0 %v8153_v12, %s6305_s23  ;;  %4496 = vrot.lane.b32.xlu1 %v8029_v36, %s6312_s12  ;;  %v3169_v26 = vmul.f32 %v3110_v13, %v3048_v33 }
 0x2e0   :  { %v3000_v8 = vmul.f32 %v2941_v2, %v2879_v50  ;;  %v4283_v2 = vrot.slane %v8015_v47, %v7268_v44 }
 0x2e1   :  { %v3752_v14 = vpop.permute.xlu0 %3751  ;;  %v8181_v28 = vpop.permute.xlu1 %3027 }
 0x2e2   :  { %v8189_v39 = vsel %vm999_vm4, %v8037_v15, %v3752_v14  ;;  %v8193_v52 = vsel %vm999_vm4, %v3752_v14, %v8092_v24  ;;  %v3049_v0 = vsel %vm260_vm0, %v3026_v29, %v8181_v28  ;;  %v6210_v6 = vpack.c.bf16 %v3169_v26, %v3000_v8 }
 0x2e3   :  { %9184 = vst [vmem:[#allocation54_spill] sm:$0xff] %v8189_v39  ;;  %v3170_v45 = vmul.f32 %v3114_v61, %v3049_v0  ;;  %3318 = vrot.lane.b32.xlu0 %v8029_v36, %s6307_s29  ;;  %2870 = vrot.lane.b32.xlu1 %v8153_v12, %s6306_s24  ;;  %v3387_v26 = vrot.slane %v7920_v30, %v7271_v4 }
 0x2e5   :  { %v8201_v60 = vpop.permute.xlu0 %3755  ;;  %v3305_v15 = vpop.permute.xlu1 %3304  ;;  %v6211_v20 = vpack.c.bf16 %v3170_v45, %v3001_v49 }
 0x2e6   :  { %v3328_v14 = vsel %vm544_vm2, %v8098_v58, %v3305_v15  ;;  %v4114_v58 = vrot.slane %v8025_v48, %v7268_v44 }
 0x2e7   :  { %3322 = vrot.lane.b32.xlu0 %v8132_v27, %s6307_s29  ;;  %3037 = vrot.lane.b32.xlu1 %v8029_v36, %s6305_s23  ;;  %v8236_v50 = vmul.f32 %v3387_v26, %v3328_v14  ;;  %v3329_v14 = vsel %vm544_vm2, %v3305_v15, %v8110_v35  ;;  %v4118_v26 = vrot.slane %v8025_v48, %v7271_v4 }
 0x2e8   :  { %5326 = vmatprep.subr.bf16.mxu1 %v6211_v20  ;;  %v3564_v20 = vrot.slane %v7918_v1, %v6755_v54 }
 0x2e9   :  { %5327 = vmatpush1.bf16.msra.mxu1 %v6210_v6  ;;  %v4033_v29 = vpop.permute.xlu0 %4032  ;;  %v8209_v18 = vpop.permute.xlu1 %3308  ;;  %v3556_v6 = vrot.slane %v7918_v1, %v7271_v4 }
 0x2ea   :  { %v4058_v13 = vsel %vm1283_vm5, %v7966_v32, %v4033_v29  ;;  %v4059_v45 = vsel %vm1283_vm5, %v4033_v29, %v8100_v62  ;;  %v3395_v32 = vrot.slane %v7920_v30, %v6755_v54  ;;  %v3330_v0 = vsel %vm544_vm2, %v8110_v35, %v8209_v18 }
 0x2eb   :  { %3489 = vrot.lane.b32.xlu0 %v8153_v12, %s6308_s30  ;;  %3041 = vrot.lane.b32.xlu1 %v8132_v27, %s6305_s23  ;;  %v8261_v41 = vmul.f32 %v4114_v58, %v4058_v13  ;;  %v4295_v58 = vrot.slane %v8015_v47, %v6755_v54 }
 0x2ec   :  { %v3451_v39 = vmul.f32 %v3395_v32, %v3330_v0 }
 0x2ed   :  { %v8227_v49 = vpop.permute.xlu0 %4036  ;;  %v3474_v61 = vpop.permute.xlu1 %3473  ;;  %9185 = vst [vmem:[#allocation55_spill] sm:$0xff] %v8261_v41 }
 0x2ee   :  { %v3497_v33 = vsel %vm716_vm3, %v3472_v55, %v3474_v61  ;;  %v3391_v55 = vrot.slane %v7920_v30, %v6767_v63  ;;  %v3498_v29 = vsel %vm716_vm3, %v3474_v61, %v8157_v22 }
 0x2ef   :  { %v8241_v8 = vmul.f32 %v3556_v6, %v3497_v33  ;;  %3767 = vrot.lane.b32.xlu0 %v8153_v12, %s6309_s9  ;;  %3320 = vrot.lane.b32.xlu1 %v8153_v12, %s6307_s29  ;;  %v3619_v15 = vmul.f32 %v3560_v42, %v3498_v29 }
 0x2f0   :  { %v3450_v13 = vmul.f32 %v3391_v55, %v3329_v14 }
 0x2f1   :  { %v4202_v6 = vpop.permute.xlu0 %4201  ;;  %v8255_v33 = vpop.permute.xlu1 %3477 }
 0x2f2   :  { %v4227_v61 = vsel %vm1455_vm6, %v7978_v34, %v4202_v6  ;;  %v3499_v35 = vsel %vm716_vm3, %v8157_v22, %v8255_v33  ;;  %v8277_v22 = vmul.f32 %v4118_v26, %v4059_v45  ;;  %v6226_v42 = vpack.c.bf16 %v3619_v15, %v3450_v13 }
 0x2f3   :  { %v8268_v43 = vmul.f32 %v4283_v2, %v4227_v61  ;;  %v3620_v46 = vmul.f32 %v3564_v20, %v3499_v35  ;;  %3771 = vrot.lane.b32.xlu0 %v7856_v9, %s6309_s9  ;;  %3487 = vrot.lane.b32.xlu1 %v8029_v36, %s6308_s30  ;;  %v3845_v45 = vrot.slane %v7982_v17, %v6755_v54  ;;  %v5783_v61 = vld [vmem:[%s8992_s1 + $0x40] ss:$8 sm:$0xf0] }
 0x2f4   :  { %9187 = vst [vmem:[#allocation57_spill] sm:$0xff] %v8277_v22  ;;  %v4291_v13 = vrot.slane %v8015_v47, %v6767_v63  ;;  %v3536_v22 = vrot.slane %v7918_v1, %v7059_v21 }
 0x2f5   :  { %9186 = vst [vmem:[#allocation56_spill] sm:$0xff] %v8268_v43  ;;  %v4206_v32 = vpop.permute.xlu0 %4205  ;;  %v4204_v34 = vpop.permute.xlu1 %4203  ;;  %v6227_v0 = vpack.c.bf16 %v3620_v46, %v3451_v39 }
 0x2f6   :  { %v4228_v57 = vsel %vm1455_vm6, %v4202_v6, %v4204_v34  ;;  %v5782_v6 = vld [vmem:[%s8992_s1 + $0x40] ss:$8 sm:$0xf] }
 0x2f7   :  { %v8279_v2 = vmul.f32 %v4287_v31, %v4228_v57  ;;  %4050 = vrot.lane.b32.xlu0 %v8132_v27, %s6310_s10  ;;  %3491 = vrot.lane.b32.xlu1 %v8132_v27, %s6308_s30  ;;  %v3841_v57 = vrot.slane %v7982_v17, %v6767_v63 }
 0x2f8   :  { %5328 = vmatprep.subr.bf16.mxu1 %v6227_v0  ;;  %v4572_v0 = vrot.slane %v8017_v3, %v6767_v63 }
 0x2f9   :  { %5329 = vmatpush1.bf16.msra.mxu1 %v6226_v42  ;;  %v4483_v20 = vpop.permute.xlu0 %4482  ;;  %v4485_v55 = vpop.permute.xlu1 %4484  ;;  %v8330_v42 = vor.u32 %v5783_v61, %v5782_v6  ;;  %v4229_v61 = vsel %vm1455_vm6, %v4204_v34, %v4206_v32  ;;  %v4060_v34 = vsel %vm1283_vm5, %v8100_v62, %v8227_v49 }
 0x2fa   :  { %v8289_v39 = vsel %vm1739_vm7, %v8071_v10, %v4483_v20  ;;  %v8292_v31 = vsel %vm1739_vm7, %v4483_v20, %v4485_v55  ;;  %v3779_v10 = vsel %vm999_vm4, %v8092_v24, %v8201_v60  ;;  %v5786_v24 = vld [vmem:[%s8992_s1 + $0x41] ss:$8 sm:$0xf] }
 0x2fb   :  { %4217 = vrot.lane.b32.xlu0 %v8153_v12, %s6311_s11  ;;  %3769 = vrot.lane.b32.xlu1 %v8132_v27, %s6309_s9  ;;  %v3900_v35 = vmul.f32 %v3841_v57, %v3779_v10 }
 0x2fd   :  { %v4487_v29 = vpop.permute.xlu0 %4486  ;;  %v8305_v14 = vpop.permute.xlu1 %3757  ;;  %v6242_v6 = vpack.c.bf16 %v3900_v35, %v7698_v7  ;;  %v4786_v7 = vld [vmem:[%s8995_s5] sm:$0xff] }
 0x2fe   :  { %9188 = vst [vmem:[#allocation58_spill] sm:$0xff] %v8305_v14  ;;  %v3780_v26 = vsel %vm999_vm4, %v8201_v60, %v8305_v14  ;;  %v5787_v60 = vld [vmem:[%s8992_s1 + $0x41] ss:$8 sm:$0xf0]  ;;  %v4510_v36 = vsel %vm1739_vm7, %v4485_v55, %v4487_v29  ;;  %v2949_v55 = vrot.slane %v8330_v42, %v7059_v21 }
 0x2ff   :  { %v3901_v15 = vmul.f32 %v3845_v45, %v3780_v26  ;;  %4221 = vrot.lane.b32.xlu0 %v7856_v9, %s6311_s11  ;;  %4048 = vrot.lane.b32.xlu1 %v8153_v12, %s6310_s10  ;;  %v4126_v26 = vrot.slane %v8025_v48, %v6755_v54  ;;  %v8344_v46 = vor.u32 %v5787_v60, %v5786_v24 }
 0x300   :  { %v4350_v24 = vmul.f32 %v4291_v13, %v4229_v61  ;;  %v4631_v60 = vmul.f32 %v4572_v0, %v4510_v36 }
 0x301   :  { %v8332_v20 = vpop.permute.xlu0 %2860  ;;  %v8334_v57 = vpop.permute.xlu1 %4038  ;;  %v6243_v45 = vpack.c.bf16 %v3901_v15, %v7733_v40  ;;  %v4122_v40 = vrot.slane %v8025_v48, %v6767_v63  ;;  %v4576_v63 = vrot.slane %v8017_v3, %v6755_v54  ;;  %v3118_v62 = vrot.slane %v8344_v46, %v7059_v21 }
 0x302   :  { %9189 = vst [vmem:[#allocation59_spill] sm:$0xff] %v8332_v20  ;;  %v2881_v10 = vsel %vm89_vm1, %v8136_v16, %v8332_v20  ;;  %v4061_v16 = vsel %vm1283_vm5, %v8227_v49, %v8334_v57 }
 0x303   :  { %4500 = vrot.lane.b32.xlu0 %v8132_v27, %s6312_s12  ;;  %4052 = vrot.lane.b32.xlu1 %v7856_v9, %s6310_s10  ;;  %v4182_v14 = vmul.f32 %v4126_v26, %v4061_v16  ;;  %v4181_v49 = vmul.f32 %v4122_v40, %v4060_v34  ;;  %v8385_v61 = vmul.f32 %v2949_v55, %v2881_v10 }
 0x304   :  { %5330 = vmatprep.subr.bf16.mxu1 %v6243_v45 }
 0x305   :  { %5331 = vmatpush1.bf16.msra.mxu1 %v6242_v6  ;;  %v2865_v35 = vpop.permute.xlu0 %2864  ;;  %v8366_v15 = vpop.permute.xlu1 %4207  ;;  %v6258_v0 = vpack.c.bf16 %v4350_v24, %v4181_v49  ;;  %9191 = vst [vmem:[#allocation61_spill] sm:$0xff] %v8385_v61  ;;  %v3126_v24 = vrot.slane %v8344_v46, %v6545_v23 }
 0x306   :  { %v4230_v45 = vsel %vm1455_vm6, %v4206_v32, %v8366_v15  ;;  %v6274_v32 = vpack.c.bf16 %v4631_v60, %v4631_v60  ;;  %v5806_v60 = vld [vmem:[%s8992_s1 + $0x42] ss:$8 sm:$0xf] }
 0x307   :  { %v4351_v41 = vmul.f32 %v4295_v58, %v4230_v45  ;;  %4789 = vperm.xlu0 %6293, %v4786_v7   ;;  %4219 = vrot.lane.b32.xlu1 %v8132_v27, %s6311_s11  ;;  %v5807_v45 = vld [vmem:[%s8992_s1 + $0x42] ss:$8 sm:$0xf0]  ;;  %v2917_v27 = vrot.slane %v7826_v37, %v7059_v21  ;;  %v3821_v37 = vrot.slane %v7982_v17, %v7018_v38 }
 0x309   :  { %v8376_v6 = vpop.permute.xlu0 %3029  ;;  %v8378_v13 = vpop.permute.xlu1 %4488  ;;  %v6259_v36 = vpack.c.bf16 %v4351_v41, %v4182_v14 }
 0x30a   :  { %9190 = vst [vmem:[#allocation60_spill] sm:$0xff] %v8378_v13  ;;  %v3050_v26 = vsel %vm260_vm0, %v8181_v28, %v8376_v6  ;;  %v4511_v58 = vsel %vm1739_vm7, %v4487_v29, %v8378_v13  ;;  %v5174_v28 = vsel %vm2394_vm8, %v6274_v32, 0  ;;  %v9198_v13 = vld [vmem:[#allocation34_spill] sm:$0xff] }
 0x30b   :  { %v8387_v16 = vmul.f32 %v3118_v62, %v3050_v26  ;;  %v4632_v7 = vmul.f32 %v4576_v63, %v4511_v58  ;;  %4498 = vrot.lane.b32.xlu1 %v8153_v12, %s6312_s12  ;;  %5332 = vmatprep.subr.bf16.mxu1 %v6259_v36  ;;  %v2961_v62 = vrot.slane %v8330_v42, %v6540_v19  ;;  %v5810_v26 = vld [vmem:[%s8992_s1 + $0x43] ss:$8 sm:$0xf] }
 0x30c   :  { %5333 = vmatpush1.bf16.msra.mxu1 %v6258_v0  ;;  %v3130_v36 = vrot.slane %v8344_v46, %v6540_v19  ;;  %v2957_v0 = vrot.slane %v8330_v42, %v6545_v23  ;;  %v5811_v58 = vld [vmem:[%s8992_s1 + $0x43] ss:$8 sm:$0xf0] }
 0x30d   :  { %9192 = vst [vmem:[#allocation62_spill] sm:$0xff] %v8387_v16  ;;  %v6275_v14 = vpack.c.bf16 %v4632_v7, %v4632_v7  ;;  %v3034_v40 = vpop.permute.xlu0 %3033  ;;  %v8393_v34 = vpop.permute.xlu1 %2862  ;;  %v3540_v7 = vrot.slane %v7918_v1, %v7018_v38  ;;  %v8453_v61 = vor.u32 %v5811_v58, %v5810_v26  ;;  %v3371_v16 = vrot.slane %v7920_v30, %v7018_v38  ;;  %v9203_v26 = vld [vmem:[#allocation43_spill] sm:$0xff] }
 0x30e   :  { %9193 = vst [vmem:[#allocation63_spill] sm:$0xff] %v8393_v34  ;;  %v4271_v1 = vrot.slane %v8015_v47, %v7018_v38 }
 0x30f   :  { %4502 = vrot.lane.b32.xlu1 %v7856_v9, %s6312_s12  ;;  %5970 = vmatprep.subr.msk.bf16.mxu1 %vm2394_vm8, %v6275_v14  ;;  %v2883_v14 = vsel %vm89_vm1, %v8393_v34, %v2865_v35  ;;  %v3568_v34 = vrot.slane %v8453_v61, %v7059_v21 }
 0x310   :  { %5335 = vmatpush1.bf16.msra.mxu1 %v5174_v28  ;;  %v8438_v28 = vor.u32 %v5807_v45, %v5806_v60 }
 0x311   :  { %v8399_v63 = vpop.permute.xlu0 %2826  ;;  %v8401_v29 = vpop.permute.xlu1 %2866 }
 0x312   :  { %9194 = vst [vmem:[#allocation64_spill] sm:$0xff] %v8399_v63  ;;  %9195 = vst [vmem:[#allocation65_spill] sm:$0xff] %v8401_v29  ;;  %v2884_v32 = vsel %vm89_vm1, %v2865_v35, %v8401_v29  ;;  %v3086_v29 = vrot.slane %v7832_v56, %v7059_v21  ;;  %v3493_v35 = vsel %vm716_vm3, %v9198_v13, %v7924_v59  ;;  %v9200_v56 = vld [vmem:[#allocation42_spill] sm:$0xff] }
 0x313   :  { %5971 = vmatmul.mubr.msk.bf16.vlgmr.msra.gmra.mrb[20].mxu1 %vm2390_vm9, %v8115_v25  ;;  %v3005_v60 = vmul.f32 %v2961_v62, %v2884_v32  ;;  %v3399_v59 = vrot.slane %v8438_v28, %v7059_v21 }
 0x314   :  { %5440 = vmatprep.mubr.bf16.mxu1 %v9097_v51 }
 0x315   :  { %v8406_v10 = vpop.permute.xlu0 %3291  ;;  %v8408_v55 = vpop.permute.xlu1 %3031 }
 0x316   :  { %9196 = vst [vmem:[#allocation66_spill] sm:$0xff] %v8406_v10  ;;  %v3052_v49 = vsel %vm260_vm0, %v8408_v55, %v3034_v40 }
 0x317   :  { %v3173_v9 = vmul.f32 %v3126_v24, %v3052_v49  ;;  %v3004_v24 = vmul.f32 %v2957_v0, %v2883_v14  ;;  %v9199_v49 = vld [vmem:[#allocation23_spill] sm:$0xff]  ;;  %v9202_v0 = vld [vmem:[#allocation22_spill] sm:$0xff]  ;;  %v3614_v14 = vmul.f32 %v3540_v7, %v3493_v35 }
 0x318   :  { %v3774_v58 = vsel %vm999_vm4, %v9203_v26, %v9202_v0 }
 0x319   :  { %v8440_v41 = vpop.permute.xlu0 %3310  ;;  %v8442_v12 = vpop.permute.xlu1 %3035  ;;  %v3895_v7 = vmul.f32 %v3821_v37, %v3774_v58 }
 0x31a   :  { %9197 = vst [vmem:[#allocation67_spill] sm:$0xff] %v8442_v12  ;;  %v3053_v54 = vsel %vm260_vm0, %v3034_v40, %v8442_v12  ;;  %v2905_v40 = vsel %vm89_vm1, %v8399_v63, %v9199_v49  ;;  %v9201_v12 = vld [vmem:[#allocation26_spill] sm:$0xff]  ;;  %v6214_v49 = vpack.c.bf16 %v3173_v9, %v3004_v24  ;;  %v9204_v63 = vld [vmem:[#allocation16_spill] sm:$0xff] }
 0x31b   :  { %v3174_v45 = vmul.f32 %v3130_v36, %v3053_v54  ;;  %v3324_v43 = vsel %vm544_vm2, %v9201_v12, %v9200_v56  ;;  %v3367_v54 = vrot.slane %v7920_v30, %v7059_v21  ;;  %v2994_v20 = vmul.f32 %v2917_v27, %v2905_v40  ;;  %v9207_v24 = vld [vmem:[#allocation40_spill] sm:$0xff] }
 0x31c   :  { %v3355_v9 = vsel %vm544_vm2, %v8406_v10, %v9201_v12  ;;  %v3331_v27 = vsel %vm544_vm2, %v8209_v18, %v8440_v41  ;;  %v9208_v12 = vld [vmem:[#allocation46_spill] sm:$0xff]  ;;  %v9217_v10 = vpack.c.bf16 %v8167_v5, %v8165_v11  ;;  %v9218_v11 = vld [vmem:[#allocation49_spill] sm:$0xff]  ;;  %v9219_v5 = vld [vmem:[#allocation48_spill] sm:$0xff] }
 0x31d   :  { %v8469_v62 = vpop.permute.xlu0 %3314  ;;  %v8471_v36 = vpop.permute.xlu1 %3010  ;;  %v6215_v32 = vpack.c.bf16 %v3174_v45, %v3005_v60  ;;  %v3445_v60 = vmul.f32 %v3371_v16, %v3324_v43  ;;  %v3817_v45 = vrot.slane %v7982_v17, %v7059_v21  ;;  %v4224_v40 = vsel %vm1455_vm6, %v9208_v12, %v9207_v24  ;;  %v9213_v24 = vld [vmem:[#allocation33_spill] sm:$0xff] }
 0x31e   :  { %v3074_v56 = vsel %vm260_vm0, %v8471_v36, %v9204_v63  ;;  %v9205_v63 = vld [vmem:[#allocation37_spill] sm:$0xff]  ;;  %v3444_v0 = vmul.f32 %v3367_v54, %v3355_v9 }
 0x31f   :  { %v3163_v30 = vmul.f32 %v3086_v29, %v3074_v56  ;;  %5408 = vmatprep.subr.bf16.mxu1 %v6215_v32  ;;  %v3773_v29 = vsel %vm999_vm4, %v9205_v63, %v9203_v26  ;;  %v6221_v32 = vpack.c.bf16 %v3614_v14, %v3445_v60  ;;  %v8509_v26 = vmul.f32 %v3399_v59, %v3331_v27  ;;  %v9210_v9 = vld [vmem:[#allocation41_spill] sm:$0xff] }
 0x320   :  { %5409 = vmatpush1.bf16.msra.mxu1 %v6214_v49  ;;  %v4548_v49 = vrot.slane %v8017_v3, %v7059_v21  ;;  %v4102_v56 = vrot.slane %v8025_v48, %v7018_v38  ;;  %v4552_v60 = vrot.slane %v8017_v3, %v7018_v38  ;;  %v4345_v27 = vmul.f32 %v4271_v1, %v4224_v40  ;;  %v9216_v1 = vld [vmem:[#allocation20_spill] sm:$0xff] }
 0x321   :  { %v6204_v43 = vpack.c.bf16 %v3163_v30, %v2994_v20  ;;  %v8496_v16 = vpop.permute.xlu0 %3479  ;;  %v8498_v35 = vpop.permute.xlu1 %3460  ;;  %v3894_v30 = vmul.f32 %v3817_v45, %v3773_v29  ;;  %v9211_v45 = vld [vmem:[#allocation11_spill] sm:$0xff] }
 0x322   :  { %9206 = vst [vmem:[#allocation34_spill] sm:$0xff] %v8498_v35  ;;  %v3500_v18 = vsel %vm716_vm3, %v8255_v33, %v8496_v16  ;;  %v3524_v37 = vsel %vm716_vm3, %v8498_v35, %v9198_v13  ;;  %v4267_v33 = vrot.slane %v8015_v47, %v7059_v21  ;;  %v9209_v13 = vld [vmem:[#allocation45_spill] sm:$0xff]  ;;  %v4223_v47 = vsel %vm1455_vm6, %v9210_v9, %v9208_v12 }
 0x323   :  { %v8511_v20 = vmul.f32 %v3568_v34, %v3500_v18  ;;  %v3613_v58 = vmul.f32 %v3536_v22, %v3524_v37  ;;  %5204 = vmatpush1.bf16.msra.mxu0 %v6204_v43  ;;  %v4055_v54 = vsel %vm1283_vm5, %v9209_v13, %v7858_v53  ;;  %v6237_v29 = vpack.c.bf16 %v3895_v7, %v9211_v45  ;;  %v9212_v43 = vld [vmem:[#allocation44_spill] sm:$0xff]  ;;  %v9214_v18 = vld [vmem:[#allocation35_spill] sm:$0xff] }
 0x324   :  { %5205 = vmatprep.subr.bf16.mxu0 %v6221_v32  ;;  %v4504_v53 = vsel %vm1739_vm7, %v9213_v24, %v9212_v43  ;;  %v4505_v37 = vsel %vm1739_vm7, %v9212_v43, %v9214_v18  ;;  %v4098_v32 = vrot.slane %v8025_v48, %v7059_v21  ;;  %v4176_v12 = vmul.f32 %v4102_v56, %v4055_v54  ;;  %v5850_v54 = vld [vmem:[%s8992_s1 + $0x46] ss:$8 sm:$0xf] }
 0x325   :  { %v6220_v22 = vpack.c.bf16 %v3613_v58, %v3444_v0  ;;  %v3484_v59 = vpop.permute.xlu0 %3483  ;;  %v8524_v14 = vpop.permute.xlu1 %3312  ;;  %v9215_v0 = vld [vmem:[#allocation30_spill] sm:$0xff]  ;;  %v6236_v7 = vpack.c.bf16 %v3894_v30, %v9216_v1  ;;  %v4344_v40 = vmul.f32 %v4267_v33, %v4223_v47  ;;  %v4625_v24 = vmul.f32 %v4548_v49, %v4504_v53 }
 0x326   :  { %v4054_v58 = vsel %vm1283_vm5, %v9215_v0, %v9209_v13  ;;  %v4626_v9 = vmul.f32 %v4552_v60, %v4505_v37  ;;  %v6253_v43 = vpack.c.bf16 %v4345_v27, %v4176_v12  ;;  %v3576_v30 = vrot.slane %v8453_v61, %v6545_v23  ;;  %v5851_v60 = vld [vmem:[%s8992_s1 + $0x46] ss:$8 sm:$0xf0] }
 0x327   :  { %5206 = vmatpush1.bf16.msra.mxu0 %v6220_v22  ;;  %v4175_v18 = vmul.f32 %v4098_v32, %v4054_v58  ;;  %v6268_v13 = vpack.c.bf16 %v4625_v24, %v4625_v24  ;;  %v3411_v33 = vrot.slane %v8438_v28, %v6540_v19  ;;  %v3407_v47 = vrot.slane %v8438_v28, %v6545_v23  ;;  %v5855_v24 = vld [vmem:[%s8992_s1 + $0x47] ss:$8 sm:$0xf0]  ;;  %v5830_v32 = vld [vmem:[%s8992_s1 + $0x45] ss:$8 sm:$0xf] }
 0x328   :  { %5207 = vmatprep.subr.bf16.mxu0 %v6237_v29  ;;  %v6269_v56 = vpack.c.bf16 %v4626_v9, %v4626_v9  ;;  %v3580_v9 = vrot.slane %v8453_v61, %v6540_v19  ;;  %v5854_v29 = vld [vmem:[%s8992_s1 + $0x47] ss:$8 sm:$0xf]  ;;  %v3837_v53 = vrot.slane %v7982_v17, %v7271_v4  ;;  %v3333_v37 = vsel %vm544_vm2, %v8524_v14, %v8469_v62  ;;  %v5831_v58 = vld [vmem:[%s8992_s1 + $0x45] ss:$8 sm:$0xf0] }
 0x329   :  { %v8544_v45 = vpop.permute.xlu0 %3759  ;;  %v8546_v34 = vpop.permute.xlu1 %3316  ;;  %v6252_v48 = vpack.c.bf16 %v4344_v40, %v4175_v18  ;;  %v8591_v40 = vor.u32 %v5851_v60, %v5850_v54  ;;  %v3454_v0 = vmul.f32 %v3407_v47, %v3333_v37  ;;  %v8598_v63 = vor.u32 %v5831_v58, %v5830_v32 }
 0x32a   :  { %v3334_v27 = vsel %vm544_vm2, %v8469_v62, %v8546_v34  ;;  %v5156_v62 = vsel %vm2394_vm8, %v6268_v13, 0  ;;  %v4568_v37 = vrot.slane %v8017_v3, %v7271_v4 }
 0x32b   :  { %5208 = vmatpush1.bf16.msra.mxu0 %v6236_v7  ;;  %v3455_v18 = vmul.f32 %v3411_v33, %v3334_v27  ;;  %v3899_v33 = vmul.f32 %v3837_v53, %v8193_v52  ;;  %v4130_v60 = vrot.slane %v8591_v40, %v7059_v21  ;;  %v9221_v27 = vpack.c.bf16 %v8241_v8, %v8236_v50 }
 0x32c   :  { %5209 = vmatprep.subr.bf16.mxu0 %v6253_v43  ;;  %v4564_v53 = vrot.slane %v8017_v3, %v7268_v44 }
 0x32d   :  { %v3764_v22 = vpop.permute.xlu0 %3763  ;;  %v8548_v35 = vpop.permute.xlu1 %3481 }
 0x32e   :  { %v3502_v49 = vsel %vm716_vm3, %v8548_v35, %v3484_v59 }
 0x32f   :  { %5210 = vmatpush1.bf16.msra.mxu0 %v6252_v48  ;;  %v3623_v7 = vmul.f32 %v3576_v30, %v3502_v49  ;;  %v3833_v30 = vrot.slane %v7982_v17, %v7268_v44 }
 0x330   :  { %5964 = vmatprep.subr.msk.bf16.mxu0 %vm2394_vm8, %v6269_v56  ;;  %v8596_v56 = vor.u32 %v5855_v24, %v5854_v29  ;;  %v9222_v29 = vld [vmem:[#allocation54_spill] sm:$0xff] }
 0x331   :  { %v8587_v12 = vpop.permute.xlu0 %4040  ;;  %v8589_v1 = vpop.permute.xlu1 %3485  ;;  %v6230_v54 = vpack.c.bf16 %v3623_v7, %v3454_v0  ;;  %v3861_v0 = vrot.slane %v8598_v63, %v6540_v19  ;;  %v3898_v24 = vmul.f32 %v3833_v30, %v9222_v29  ;;  %v9223_v7 = vld [vmem:[#allocation18_spill] sm:$0xff]  ;;  %v9225_v30 = vld [vmem:[#allocation51_spill] sm:$0xff]  ;;  %v9230_v29 = vld [vmem:[#allocation57_spill] sm:$0xff] }
 0x332   :  { %v3503_v43 = vsel %vm716_vm3, %v3484_v59, %v8589_v1  ;;  %v4299_v52 = vrot.slane %v8596_v56, %v7059_v21  ;;  %v4062_v47 = vsel %vm1283_vm5, %v8334_v57, %v8587_v12 }
 0x333   :  { %v3624_v48 = vmul.f32 %v3580_v9, %v3503_v43  ;;  %5212 = vmatpush1.bf16.msra.mxu0 %v5156_v62  ;;  %v3857_v9 = vrot.slane %v8598_v63, %v6545_v23  ;;  %v6241_v43 = vpack.c.bf16 %v3899_v33, %v9223_v7  ;;  %v8647_v62 = vmul.f32 %v4130_v60, %v4062_v47  ;;  %v9234_v7 = vld [vmem:[#allocation56_spill] sm:$0xff] }
 0x334   :  { %5285 = vmatprep.subr.bf16.mxu0 %v9217_v10  ;;  %v9220_v10 = vpack.c.bf16 %v9218_v11, %v9219_v5  ;;  %v4629_v60 = vmul.f32 %v4564_v53, %v8289_v39  ;;  %v4630_v5 = vmul.f32 %v4568_v37, %v8292_v31  ;;  %v3051_v47 = vsel %vm260_vm0, %v8376_v6, %v8408_v55  ;;  %v9232_v39 = vld [vmem:[#allocation63_spill] sm:$0xff] }
 0x335   :  { %v8605_v49 = vpop.permute.xlu0 %4044  ;;  %v8607_v59 = vpop.permute.xlu1 %3761  ;;  %v6231_v13 = vpack.c.bf16 %v3624_v48, %v3455_v18  ;;  %v9224_v48 = vld [vmem:[#allocation52_spill] sm:$0xff]  ;;  %v9233_v31 = vld [vmem:[#allocation59_spill] sm:$0xff] }
 0x336   :  { %5965 = vmatmul.mubr.msk.bf16.vlgmr.msra.gmra.mrb[16].mxu0 %vm2390_vm9, %v8115_v25  ;;  %v3783_v17 = vsel %vm999_vm4, %v8607_v59, %v3764_v22  ;;  %v2882_v53 = vsel %vm89_vm1, %v9233_v31, %v9232_v39  ;;  %v6273_v6 = vpack.c.bf16 %v4630_v5, %v4630_v5  ;;  %v3782_v5 = vsel %vm999_vm4, %v8544_v45, %v8607_v59 }
 0x337   :  { %5286 = vmatpush1.bf16.msra.mxu0 %v9220_v10  ;;  %5410 = vmatprep.subr.bf16.mxu1 %v6231_v13  ;;  %v3904_v57 = vmul.f32 %v3857_v9, %v3783_v17  ;;  %v9226_v13 = vpack.c.bf16 %v9224_v48, %v9225_v30  ;;  %v3122_v10 = vrot.slane %v8344_v46, %v7018_v38 }
 0x338   :  { %5287 = vmatprep.subr.bf16.mxu0 %v9221_v27  ;;  %5411 = vmatpush1.bf16.msra.mxu1 %v6230_v54  ;;  %v9227_v54 = vld [vmem:[#allocation12_spill] sm:$0xff]  ;;  %v2953_v27 = vrot.slane %v8330_v42, %v7018_v38  ;;  %v3403_v30 = vrot.slane %v8438_v28, %v7018_v38  ;;  %v4138_v59 = vrot.slane %v8591_v40, %v6545_v23 }
 0x339   :  { %v8636_v32 = vpop.permute.xlu0 %4209  ;;  %v8638_v58 = vpop.permute.xlu1 %3765  ;;  %5317 = vmatprep.mubr.bf16.mxu0 %v9097_v51  ;;  %v6240_v9 = vpack.c.bf16 %v3898_v24, %v9227_v54  ;;  %v9231_v24 = vpack.c.bf16 %v8279_v2, %v9230_v29  ;;  %v3172_v55 = vmul.f32 %v3122_v10, %v3051_v47  ;;  %v3501_v2 = vsel %vm716_vm3, %v8496_v16, %v8548_v35  ;;  %v5875_v54 = vld [vmem:[%s8992_s1 + $0xc0] ss:$8 sm:$0xf0] }
 0x33a   :  { %v4231_v50 = vsel %vm1455_vm6, %v8366_v15, %v8636_v32  ;;  %v3784_v8 = vsel %vm999_vm4, %v3764_v22, %v8638_v58  ;;  %v9228_v22 = vld [vmem:[#allocation38_spill] sm:$0xff]  ;;  %v3003_v48 = vmul.f32 %v2953_v27, %v2882_v53  ;;  %v3332_v16 = vsel %vm544_vm2, %v8440_v41, %v8524_v14 }
 0x33b   :  { %v8649_v18 = vmul.f32 %v4299_v52, %v4231_v50  ;;  %v3905_v3 = vmul.f32 %v3861_v0, %v3784_v8  ;;  %5288 = vmatpush1.bf16.msra.mxu0 %v9226_v13  ;;  %v9229_v52 = vld [vmem:[#allocation32_spill] sm:$0xff]  ;;  %v6272_v50 = vpack.c.bf16 %v4629_v60, %v4629_v60  ;;  %v3572_v8 = vrot.slane %v8453_v61, %v7018_v38 }
 0x33c   :  { %5289 = vmatprep.subr.bf16.mxu0 %v6241_v43  ;;  %v6246_v0 = vpack.c.bf16 %v3904_v57, %v9229_v52  ;;  %v9235_v43 = vld [vmem:[#allocation55_spill] sm:$0xff]  ;;  %v3853_v35 = vrot.slane %v8598_v63, %v7018_v38  ;;  %v6213_v52 = vpack.c.bf16 %v3172_v55, %v3003_v48  ;;  %v4142_v41 = vrot.slane %v8591_v40, %v6540_v19 }
 0x33d   :  { %v6260_v15 = vpack.c.bf16 %v8649_v18, %v8647_v62  ;;  %v4214_v17 = vpop.permute.xlu0 %4213  ;;  %v8657_v11 = vpop.permute.xlu1 %4042  ;;  %v6247_v33 = vpack.c.bf16 %v3905_v3, %v9228_v22  ;;  %v9236_v3 = vpack.c.bf16 %v9234_v7, %v9235_v43  ;;  %v5874_v13 = vld [vmem:[%s8992_s1 + $0xc0] ss:$8 sm:$0xf]  ;;  %v4307_v22 = vrot.slane %v8596_v56, %v6545_v23 }
 0x33e   :  { %v3622_v60 = vmul.f32 %v3572_v8, %v3501_v2  ;;  %v5168_v10 = vsel %vm2394_vm8, %v6272_v50, 0  ;;  %v4311_v47 = vrot.slane %v8596_v56, %v6540_v19  ;;  %v3453_v27 = vmul.f32 %v3403_v30, %v3332_v16  ;;  %v9237_v8 = vld [vmem:[#allocation58_spill] sm:$0xff] }
 0x33f   :  { %5290 = vmatpush1.bf16.msra.mxu0 %v6240_v9  ;;  %5412 = vmatprep.subr.bf16.mxu1 %v6247_v33  ;;  %v3849_v29 = vrot.slane %v8598_v63, %v7059_v21  ;;  %v3903_v39 = vmul.f32 %v3853_v35, %v3782_v5  ;;  %v4064_v31 = vsel %vm1283_vm5, %v8657_v11, %v8605_v49  ;;  %v9247_v62 = vld [vmem:[#allocation10_spill] sm:$0xff] }
 0x340   :  { %5291 = vmatprep.subr.bf16.mxu0 %v9231_v24  ;;  %5413 = vmatpush1.bf16.msra.mxu1 %v6246_v0  ;;  %v8708_v0 = vor.u32 %v5875_v54, %v5874_v13  ;;  %v4303_v53 = vrot.slane %v8596_v56, %v7018_v38  ;;  %v3781_v2 = vsel %vm999_vm4, %v9237_v8, %v8544_v45  ;;  %v9238_v13 = vld [vmem:[#allocation62_spill] sm:$0xff]  ;;  %v9239_v54 = vld [vmem:[#allocation61_spill] sm:$0xff] }
 0x341   :  { %v8676_v37 = vpop.permute.xlu0 %4490  ;;  %v8678_v57 = vpop.permute.xlu1 %4046  ;;  %v4134_v45 = vrot.slane %v8591_v40, %v7018_v38  ;;  %v4185_v16 = vmul.f32 %v4138_v59, %v4064_v31  ;;  %v2973_v18 = vrot.slane %v8330_v42, %v9247_v62 }
 0x342   :  { %v4065_v24 = vsel %vm1283_vm5, %v8605_v49, %v8678_v57  ;;  %v4588_v55 = vrot.slane %v8708_v0, %v6545_v23  ;;  %v6229_v49 = vpack.c.bf16 %v3622_v60, %v3453_v27  ;;  %v9240_v23 = vpack.c.bf16 %v9238_v13, %v9239_v54  ;;  %v9245_v13 = vld [vmem:[#allocation65_spill] sm:$0xff] }
 0x343   :  { %5292 = vmatpush1.bf16.msra.mxu0 %v9236_v3  ;;  %v4186_v3 = vmul.f32 %v4142_v41, %v4065_v24  ;;  %v4584_v35 = vrot.slane %v8708_v0, %v7018_v38  ;;  %v9242_v41 = vld [vmem:[#allocation60_spill] sm:$0xff]  ;;  %v9244_v24 = vld [vmem:[#allocation27_spill] sm:$0xff] }
 0x344   :  { %5968 = vmatprep.subr.msk.bf16.mxu0 %vm2394_vm8, %v6273_v6 }
 0x345   :  { %v4495_v9 = vpop.permute.xlu0 %4494  ;;  %v4212_v33 = vpop.permute.xlu1 %4211 }
 0x346   :  { %v4233_v14 = vsel %vm1455_vm6, %v4212_v33, %v4214_v17  ;;  %v4232_v48 = vsel %vm1455_vm6, %v8636_v32, %v4212_v33  ;;  %v4063_v32 = vsel %vm1283_vm5, %v8587_v12, %v8657_v11  ;;  %v9243_v12 = vpack.c.bf16 %v8511_v20, %v8509_v26 }
 0x347   :  { %5294 = vmatpush1.bf16.msra.mxu0 %v5168_v10  ;;  %v4354_v7 = vmul.f32 %v4307_v22, %v4233_v14  ;;  %v3902_v22 = vmul.f32 %v3849_v29, %v3781_v2  ;;  %v9241_v10 = vld [vmem:[#allocation36_spill] sm:$0xff]  ;;  %v4512_v14 = vsel %vm1739_vm7, %v9242_v41, %v8676_v37  ;;  %v4592_v11 = vrot.slane %v8708_v0, %v6540_v19  ;;  %v9249_v41 = vld [vmem:[#allocation67_spill] sm:$0xff] }
 0x348   :  { %5367 = vmatprep.subr.bf16.mxu0 %v6213_v52  ;;  %v6245_v52 = vpack.c.bf16 %v3903_v39, %v9241_v10  ;;  %v4184_v59 = vmul.f32 %v4134_v45, %v4063_v32  ;;  %v3138_v45 = vrot.slane %v8344_v46, %v7271_v4 }
 0x349   :  { %v2869_v50 = vpop.permute.xlu0 %2868  ;;  %v8727_v6 = vpop.permute.xlu1 %4215  ;;  %v6244_v39 = vpack.c.bf16 %v3902_v22, %v9244_v24 }
 0x34a   :  { %v4234_v43 = vsel %vm1455_vm6, %v4214_v17, %v8727_v6  ;;  %5969 = vmatmul.mubr.msk.bf16.vlgmr.msra.gmra.mrb[20].mxu0 %vm2390_vm9, %v8115_v25  ;;  %v4580_v17 = vrot.slane %v8708_v0, %v7059_v21  ;;  %v6262_v21 = vpack.c.bf16 %v4354_v7, %v4185_v16  ;;  %v2885_v54 = vsel %vm89_vm1, %v9245_v13, %v2869_v50  ;;  %v9246_v16 = vld [vmem:[#allocation8_spill] sm:$0xff] }
 0x34b   :  { %v4355_v30 = vmul.f32 %v4311_v47, %v4234_v43  ;;  %5368 = vmatpush1.bf16.msra.mxu0 %v9240_v23  ;;  %5399 = vmatprep.mubr.bf16.mxu0 %v9097_v51  ;;  %v4353_v47 = vmul.f32 %v4303_v53, %v4232_v48  ;;  %v3134_v23 = vrot.slane %v8344_v46, %v7268_v44 }
 0x34c   :  { %5369 = vmatprep.subr.bf16.mxu0 %v6229_v49  ;;  %v4633_v31 = vmul.f32 %v4580_v17, %v4512_v14  ;;  %v2977_v17 = vrot.slane %v8330_v42, %v9246_v16  ;;  %v3592_v13 = vrot.slane %v8453_v61, %v9247_v62 }
 0x34d   :  { %v2873_v33 = vpop.permute.xlu0 %2872  ;;  %v4493_v60 = vpop.permute.xlu1 %4492  ;;  %v6263_v5 = vpack.c.bf16 %v4355_v30, %v4186_v3  ;;  %v2965_v3 = vrot.slane %v8330_v42, %v7268_v44  ;;  %v2969_v30 = vrot.slane %v8330_v42, %v7271_v4 }
 0x34e   :  { %v4514_v27 = vsel %vm1739_vm7, %v4493_v60, %v4495_v9  ;;  %v4513_v38 = vsel %vm1739_vm7, %v8676_v37, %v4493_v60  ;;  %v6276_v7 = vpack.c.bf16 %v4633_v31, %v4633_v31  ;;  %v3142_v60 = vrot.slane %v8344_v46, %v9247_v62 }
 0x34f   :  { %v4635_v29 = vmul.f32 %v4588_v55, %v4514_v27  ;;  %5370 = vmatpush1.bf16.msra.mxu0 %v9243_v12  ;;  %5414 = vmatprep.subr.bf16.mxu1 %v6263_v5  ;;  %v4634_v2 = vmul.f32 %v4584_v35, %v4513_v38  ;;  %v6261_v55 = vpack.c.bf16 %v4353_v47, %v4184_v59 }
 0x350   :  { %5371 = vmatprep.subr.bf16.mxu0 %v6245_v52  ;;  %5415 = vmatpush1.bf16.msra.mxu1 %v6262_v21  ;;  %v5180_v32 = vsel %vm2394_vm8, %v6276_v7, 0  ;;  %v3146_v5 = vrot.slane %v8344_v46, %v9246_v16  ;;  %v3006_v10 = vmul.f32 %v2965_v3, %v2885_v54  ;;  %v9248_v52 = vld [vmem:[#allocation64_spill] sm:$0xff]  ;;  %v3584_v7 = vrot.slane %v8453_v61, %v7268_v44 }
 0x351   :  { %v3040_v53 = vpop.permute.xlu0 %3039  ;;  %v8766_v8 = vpop.permute.xlu1 %4496  ;;  %v6278_v26 = vpack.c.bf16 %v4635_v29, %v4635_v29  ;;  %v6277_v48 = vpack.c.bf16 %v4634_v2, %v4634_v2  ;;  %v3423_v3 = vrot.slane %v8438_v28, %v9247_v62 }
 0x352   :  { %v4515_v37 = vsel %vm1739_vm7, %v4495_v9, %v8766_v8 }
 0x353   :  { %v4636_v20 = vmul.f32 %v4592_v11, %v4515_v37  ;;  %5372 = vmatpush1.bf16.msra.mxu0 %v6244_v39  ;;  %v5186_v9 = vsel %vm2394_vm8, %v6278_v26, 0 }
 0x354   :  { %5373 = vmatprep.subr.bf16.mxu0 %v6261_v55 }
 0x355   :  { %v6279_v19 = vpack.c.bf16 %v4636_v20, %v4636_v20  ;;  %v3319_v43 = vpop.permute.xlu0 %3318  ;;  %v2871_v49 = vpop.permute.xlu1 %2870 }
 0x356   :  { %v2886_v35 = vsel %vm89_vm1, %v2869_v50, %v2871_v49  ;;  %v2888_v50 = vsel %vm89_vm1, %v2873_v33, %v9248_v52  ;;  %v2887_v38 = vsel %vm89_vm1, %v2871_v49, %v2873_v33  ;;  %v3427_v49 = vrot.slane %v8438_v28, %v9246_v16 }
 0x357   :  { %5374 = vmatpush1.bf16.msra.mxu0 %v6260_v15  ;;  %5974 = vmatprep.subr.msk.bf16.mxu1 %vm2394_vm8, %v6279_v19  ;;  %v3007_v42 = vmul.f32 %v2969_v30, %v2886_v35  ;;  %v3009_v59 = vmul.f32 %v2977_v17, %v2888_v50  ;;  %v3008_v31 = vmul.f32 %v2973_v18, %v2887_v38 }
 0x358   :  { %5972 = vmatprep.subr.msk.bf16.mxu0 %vm2394_vm8, %v6277_v48  ;;  %5417 = vmatpush1.bf16.msra.mxu1 %v5186_v9 }
 0x359   :  { %v3323_v15 = vpop.permute.xlu0 %3322  ;;  %v3038_v22 = vpop.permute.xlu1 %3037 }
 0x35a   :  { %v3054_v14 = vsel %vm260_vm0, %v9249_v41, %v3038_v22  ;;  %v3055_v47 = vsel %vm260_vm0, %v3038_v22, %v3040_v53  ;;  %v3865_v22 = vrot.slane %v8598_v63, %v7268_v44  ;;  %v3873_v41 = vrot.slane %v8598_v63, %v9247_v62 }
 0x35b   :  { %v3175_v21 = vmul.f32 %v3134_v23, %v3054_v14  ;;  %v3176_v27 = vmul.f32 %v3138_v45, %v3055_v47  ;;  %5376 = vmatpush1.bf16.msra.mxu0 %v5180_v32  ;;  %5975 = vmatmul.mubr.msk.bf16.vlgmr.msra.gmra.mrb[24].mxu1 %vm2390_vm9, %v8115_v25  ;;  %v3596_v23 = vrot.slane %v8453_v61, %v9246_v16  ;;  %v9250_v45 = vld [vmem:[#allocation66_spill] sm:$0xff] }
 0x35c   :  { %5522 = vmatprep.mubr.bf16.mxu1 %v9097_v51 }
 0x35d   :  { %v6216_v46 = vpack.c.bf16 %v3175_v21, %v3006_v10  ;;  %v3490_v29 = vpop.permute.xlu0 %3489  ;;  %v3042_v12 = vpop.permute.xlu1 %3041  ;;  %v6217_v11 = vpack.c.bf16 %v3176_v27, %v3007_v42 }
 0x35e   :  { %v3056_v24 = vsel %vm260_vm0, %v3040_v53, %v3042_v12  ;;  %v3057_v39 = vsel %vm260_vm0, %v3042_v12, %v8471_v36  ;;  %5973 = vmatmul.mubr.msk.bf16.vlgmr.msra.gmra.mrb[24].mxu0 %vm2390_vm9, %v8115_v25  ;;  %v3415_v53 = vrot.slane %v8438_v28, %v7268_v44  ;;  %v3335_v36 = vsel %vm544_vm2, %v8546_v34, %v3319_v43 }
 0x35f   :  { %v3177_v2 = vmul.f32 %v3142_v60, %v3056_v24  ;;  %v3178_v37 = vmul.f32 %v3146_v5, %v3057_v39  ;;  %5449 = vmatprep.subr.bf16.mxu0 %v6217_v11  ;;  %5481 = vmatprep.mubr.bf16.mxu0 %v9097_v51  ;;  %v3419_v25 = vrot.slane %v8438_v28, %v7271_v4  ;;  %v9251_v60 = vld [vmem:[#allocation37_spill] sm:$0xff] }
 0x360   :  { %5450 = vmatpush1.bf16.msra.mxu0 %v6216_v46  ;;  %v3588_v51 = vrot.slane %v8453_v61, %v7271_v4  ;;  %v3877_v34 = vrot.slane %v8598_v63, %v9246_v16  ;;  %v3456_v54 = vmul.f32 %v3415_v53, %v3335_v36  ;;  %v3338_v28 = vsel %vm544_vm2, %v3323_v15, %v9250_v45 }
 0x361   :  { %v6218_v33 = vpack.c.bf16 %v3177_v2, %v3008_v31  ;;  %v3768_v55 = vpop.permute.xlu0 %3767  ;;  %v3321_v26 = vpop.permute.xlu1 %3320  ;;  %v6219_v20 = vpack.c.bf16 %v3178_v37, %v3009_v59  ;;  %v3869_v61 = vrot.slane %v8598_v63, %v7271_v4  ;;  %v3459_v14 = vmul.f32 %v3427_v49, %v3338_v28  ;;  %v9253_v37 = vld [vmem:[#allocation39_spill] sm:$0xff] }
 0x362   :  { %v3336_v19 = vsel %vm544_vm2, %v3319_v43, %v3321_v26  ;;  %v3337_v32 = vsel %vm544_vm2, %v3321_v26, %v3323_v15  ;;  %v3785_v47 = vsel %vm999_vm4, %v8638_v58, %v3768_v55  ;;  %v9252_v15 = vld [vmem:[#allocation34_spill] sm:$0xff]  ;;  %v4158_v49 = vrot.slane %v8591_v40, %v9246_v16 }
 0x363   :  { %5490 = vmatprep.subr.bf16.mxu1 %v6219_v20  ;;  %v3457_v17 = vmul.f32 %v3419_v25, %v3336_v19  ;;  %v3458_v27 = vmul.f32 %v3423_v3, %v3337_v32  ;;  %v3906_v63 = vmul.f32 %v3865_v22, %v3785_v47  ;;  %v9254_v26 = vld [vmem:[#allocation50_spill] sm:$0xff]  ;;  %v9255_v25 = vld [vmem:[#allocation53_spill] sm:$0xff] }
 0x364   :  { %5491 = vmatpush1.bf16.msra.mxu1 %v6218_v33  ;;  %v9257_v3 = vld [vmem:[#allocation41_spill] sm:$0xff] }
 0x365   :  { %v3772_v48 = vpop.permute.xlu0 %3771  ;;  %v3488_v30 = vpop.permute.xlu1 %3487 }
 0x366   :  { %v3504_v9 = vsel %vm716_vm3, %v8589_v1, %v3488_v30  ;;  %v3505_v43 = vsel %vm716_vm3, %v3488_v30, %v3490_v29  ;;  %v3805_v5 = vsel %vm999_vm4, %v3772_v48, %v9251_v60 }
 0x367   :  { %v3625_v35 = vmul.f32 %v3584_v7, %v3504_v9  ;;  %v3626_v18 = vmul.f32 %v3588_v51, %v3505_v43  ;;  %v3909_v38 = vmul.f32 %v3877_v34, %v3805_v5  ;;  %v9256_v51 = vld [vmem:[#allocation47_spill] sm:$0xff]  ;;  %v9258_v9 = vld [vmem:[#allocation30_spill] sm:$0xff] }
 0x368   :  { %v6248_v19 = vpack.c.bf16 %v3906_v63, %v9256_v51 }
 0x369   :  { %v6232_v1 = vpack.c.bf16 %v3625_v35, %v3456_v54  ;;  %v4051_v10 = vpop.permute.xlu0 %4050  ;;  %v3492_v52 = vpop.permute.xlu1 %3491  ;;  %v6233_v50 = vpack.c.bf16 %v3626_v18, %v3457_v17  ;;  %v6251_v33 = vpack.c.bf16 %v3909_v38, %v9253_v37  ;;  %v4154_v54 = vrot.slane %v8591_v40, %v9247_v62 }
 0x36a   :  { %v3506_v42 = vsel %vm716_vm3, %v3490_v29, %v3492_v52  ;;  %v3507_v21 = vsel %vm716_vm3, %v3492_v52, %v9252_v15  ;;  %v4323_v35 = vrot.slane %v8596_v56, %v9247_v62  ;;  %v4315_v18 = vrot.slane %v8596_v56, %v7268_v44 }
 0x36b   :  { %v3627_v46 = vmul.f32 %v3592_v13, %v3506_v42  ;;  %v3628_v12 = vmul.f32 %v3596_v23, %v3507_v21  ;;  %5451 = vmatprep.subr.bf16.mxu0 %v6233_v50  ;;  %v4150_v13 = vrot.slane %v8591_v40, %v7271_v4  ;;  %v4319_v23 = vrot.slane %v8596_v56, %v7271_v4 }
 0x36c   :  { %5452 = vmatpush1.bf16.msra.mxu0 %v6232_v1  ;;  %v4596_v1 = vrot.slane %v8708_v0, %v7268_v44 }
 0x36d   :  { %v6234_v11 = vpack.c.bf16 %v3627_v46, %v3458_v27  ;;  %v4218_v59 = vpop.permute.xlu0 %4217  ;;  %v3770_v24 = vpop.permute.xlu1 %3769  ;;  %v6235_v39 = vpack.c.bf16 %v3628_v12, %v3459_v14  ;;  %v4604_v46 = vrot.slane %v8708_v0, %v9247_v62 }
 0x36e   :  { %v3786_v31 = vsel %vm999_vm4, %v3768_v55, %v3770_v24  ;;  %v3787_v58 = vsel %vm999_vm4, %v3770_v24, %v3772_v48  ;;  %v4327_v55 = vrot.slane %v8596_v56, %v9246_v16  ;;  %v4146_v48 = vrot.slane %v8591_v40, %v7268_v44 }
 0x36f   :  { %v3907_v2 = vmul.f32 %v3869_v61, %v3786_v31  ;;  %v3908_v29 = vmul.f32 %v3873_v41, %v3787_v58  ;;  %5492 = vmatprep.subr.bf16.mxu1 %v6235_v39  ;;  %v4235_v32 = vsel %vm1455_vm6, %v8727_v6, %v4218_v59  ;;  %v4600_v56 = vrot.slane %v8708_v0, %v7271_v4  ;;  %v9259_v31 = vld [vmem:[#allocation33_spill] sm:$0xff] }
 0x370   :  { %5493 = vmatpush1.bf16.msra.mxu1 %v6234_v11  ;;  %v4356_v47 = vmul.f32 %v4315_v18, %v4235_v32  ;;  %v4608_v11 = vrot.slane %v8708_v0, %v9246_v16  ;;  %v6304_v0 = vld [vmem:[%s8994_s4] sm:$0xf] }
 0x371   :  { %v6250_v20 = vpack.c.bf16 %v3908_v29, %v9254_v26  ;;  %v4222_v53 = vpop.permute.xlu0 %4221  ;;  %5494 = vmatprep.subr.bf16.mxu1 %v6251_v33  ;;  %v4049_v36 = vpop.permute.xlu1 %4048  ;;  %v6249_v7 = vpack.c.bf16 %v3907_v2, %v9255_v25 }
 0x372   :  { %v4255_v34 = vsel %vm1455_vm6, %v4222_v53, %v9257_v3  ;;  %v4066_v28 = vsel %vm1283_vm5, %v8678_v57, %v4049_v36  ;;  %v4067_v22 = vsel %vm1283_vm5, %v4049_v36, %v4051_v10 }
 0x373   :  { %5453 = vmatprep.subr.bf16.mxu0 %v6249_v7  ;;  %v4359_v45 = vmul.f32 %v4327_v55, %v4255_v34  ;;  %v4187_v57 = vmul.f32 %v4146_v48, %v4066_v28  ;;  %v4188_v61 = vmul.f32 %v4150_v13, %v4067_v22  ;;  %v9260_v7 = vld [vmem:[#allocation4_spill] sm:$0xff]  ;;  %v9261_v55 = vld [vmem:[#allocation15_spill] sm:$0xff]  ;;  %v9263_v28 = vld [vmem:[#allocation17_spill] sm:$0xff] }
 0x374   :  { %5454 = vmatpush1.bf16.msra.mxu0 %v6248_v19  ;;  %5495 = vmatpush1.bf16.msra.mxu1 %v6250_v20 }
 0x375   :  { %v4053_v30 = vpop.permute.xlu1 %4052  ;;  %v4501_v6 = vpop.permute.xlu0 %4500  ;;  %v6264_v27 = vpack.c.bf16 %v4356_v47, %v4187_v57 }
 0x376   :  { %v4086_v43 = vsel %vm1283_vm5, %v4053_v30, %v9258_v9  ;;  %v4068_v40 = vsel %vm1283_vm5, %v4051_v10, %v4053_v30 }
 0x377   :  { %v4190_v17 = vmul.f32 %v4158_v49, %v4086_v43  ;;  %v4189_v41 = vmul.f32 %v4154_v54, %v4068_v40  ;;  %v9262_v43 = vld [vmem:[#allocation5_spill] sm:$0xff] }
 0x379   :  { %v4220_v60 = vpop.permute.xlu1 %4219  ;;  %v6267_v5 = vpack.c.bf16 %v4359_v45, %v4190_v17 }
 0x37a   :  { %v4236_v52 = vsel %vm1455_vm6, %v4218_v59, %v4220_v60  ;;  %v4237_v50 = vsel %vm1455_vm6, %v4220_v60, %v4222_v53 }
 0x37b   :  { %v4357_v14 = vmul.f32 %v4319_v23, %v4236_v52  ;;  %v4358_v10 = vmul.f32 %v4323_v35, %v4237_v50  ;;  %5496 = vmatprep.subr.bf16.mxu1 %v6267_v5  ;;  %v9265_v50 = vld [vmem:[#allocation24_spill] sm:$0xff] }
 0x37d   :  { %v6266_v42 = vpack.c.bf16 %v4358_v10, %v4189_v41  ;;  %v4499_v15 = vpop.permute.xlu1 %4498  ;;  %v6265_v21 = vpack.c.bf16 %v4357_v14, %v4188_v61 }
 0x37e   :  { %v4516_v44 = vsel %vm1739_vm7, %v8766_v8, %v4499_v15  ;;  %v4517_v38 = vsel %vm1739_vm7, %v4499_v15, %v4501_v6  ;;  %v9266_v15 = vld [vmem:[#allocation28_spill] sm:$0xff] }
 0x37f   :  { %v4637_v4 = vmul.f32 %v4596_v1, %v4516_v44  ;;  %v4638_v12 = vmul.f32 %v4600_v56, %v4517_v38  ;;  %5455 = vmatprep.subr.bf16.mxu0 %v6265_v21  ;;  %5497 = vmatpush1.bf16.msra.mxu1 %v6266_v42  ;;  %v9264_v1 = vld [vmem:[#allocation6_spill] sm:$0xff]  ;;  %v9267_v44 = vld [vmem:[#allocation13_spill] sm:$0xff] }
 0x380   :  { %5456 = vmatpush1.bf16.msra.mxu0 %v6264_v27 }
 0x381   :  { %v6280_v59 = vpack.c.bf16 %v4637_v4, %v4637_v4  ;;  %v6281_v24 = vpack.c.bf16 %v4638_v12, %v4638_v12  ;;  %v4503_v39 = vpop.permute.xlu1 %4502 }
 0x382   :  { %v4518_v63 = vsel %vm1739_vm7, %v4501_v6, %v4503_v39  ;;  %v4536_v8 = vsel %vm1739_vm7, %v4503_v39, %v9259_v31 }
 0x383   :  { %v4639_v58 = vmul.f32 %v4604_v46, %v4518_v63  ;;  %v4640_v2 = vmul.f32 %v4608_v11, %v4536_v8  ;;  %5976 = vmatprep.subr.msk.bf16.mxu0 %vm2394_vm8, %v6281_v24  ;;  %v5192_v62 = vsel %vm2394_vm8, %v6280_v59, 0  ;;  %v9268_v63 = vld [vmem:[#allocation7_spill] sm:$0xff] }
 0x384   :  { %5458 = vmatpush1.bf16.msra.mxu0 %v5192_v62 }
 0x385   :  { %v6282_v29 = vpack.c.bf16 %v4639_v58, %v4639_v58  ;;  %v6283_v37 = vpack.c.bf16 %v4640_v2, %v4640_v2  ;;  %v9269_v2 = vld [vmem:[#allocation19_spill] sm:$0xff] }
 0x386   :  { %v8908_v33 = vpop.permute.xlu0 %4789 }
 0x387   :  { %5977 = vmatmul.mubr.msk.bf16.vlgmr.msra.gmra.mrb[28].mxu0 %vm2390_vm9, %v6304_v0  ;;  %5978 = vmatprep.subr.msk.bf16.mxu1 %vm2394_vm8, %v6283_v37  ;;  %v5198_v16 = vsel %vm2394_vm8, %v6282_v29, 0 }
 0x388   :  { %5499 = vmatpush1.bf16.msra.mxu1 %v5198_v16 }
 0x38b   :  { %5979 = vmatmul.mubr.msk.bf16.vlgmr.msra.gmra.mrb[28].mxu1 %vm2390_vm9, %v6304_v0 }
 0x3ab   :  { %v5278_v26 = vpop.f32.mrb[16].mxu1 }
 0x3ac   :  { %v5279_v20 = vadd.f32 %v5278_v26, %v8908_v33  ;;  %v5280_v53 = vpop.f32.mrb[17].mxu1 }
 0x3ad   :  { %v5281_v36 = vadd.f32 %v5280_v53, %v8908_v33  ;;  %v5282_v25 = vpop.f32.mrb[18].mxu1  ;;  %v9270_v53 = vld [vmem:[#allocation29_spill] sm:$0xff] }
 0x3ae   :  { %v5533_v51 = vadd.f32 %v5279_v20, %v9260_v7  ;;  %v5283_v19 = vpop.f32.mrb[19].mxu1  ;;  %v9271_v7 = vld [vmem:[#allocation31_spill] sm:$0xff] }
 0x3af   :  { %v5534_v49 = vadd.f32 %v5281_v36, %v9261_v55 }
 0x3b0   :  { %v5549_v3 = vmax.f32 %v5533_v51, 0.0 }
 0x3b1   :  { %v5550_v34 = vmax.f32 %v5534_v49, 0.0 }
 0x3b2   :  { %5565 = vst [vmem:[%s8996_s6 + $0x10] sm:$0xff] %v5549_v3 }
 0x3b3   :  { %5566 = vst [vmem:[%s8996_s6 + $0x18] sm:$0xff] %v5550_v34 }
 0x3e6   :  { %v5360_v48 = vpop.f32.mrb[20].mxu1 }
 0x3e7   :  { %v5361_v30 = vadd.f32 %v5360_v48, %v8908_v33  ;;  %v5362_v13 = vpop.f32.mrb[21].mxu1 }
 0x3e8   :  { %v5363_v54 = vadd.f32 %v5362_v13, %v8908_v33  ;;  %v5364_v9 = vpop.f32.mrb[22].mxu1  ;;  %v9272_v13 = vld [vmem:[#allocation14_spill] sm:$0xff] }
 0x3e9   :  { %v5537_v23 = vadd.f32 %v5361_v30, %v9262_v43  ;;  %v5365_v45 = vpop.f32.mrb[23].mxu1  ;;  %v9273_v43 = vld [vmem:[#allocation21_spill] sm:$0xff] }
 0x3ea   :  { %v5538_v17 = vadd.f32 %v5363_v54, %v9263_v28 }
 0x3eb   :  { %v5553_v35 = vmax.f32 %v5537_v23, 0.0 }
 0x3ec   :  { %v5554_v18 = vmax.f32 %v5538_v17, 0.0 }
 0x3ed   :  { %5569 = vst [vmem:[%s8996_s6 + $0x30] sm:$0xff] %v5553_v35 }
 0x3ee   :  { %5570 = vst [vmem:[%s8996_s6 + $0x38] sm:$0xff] %v5554_v18 }
 0x409   :  { %v5237_v22 = vpop.f32.mrb[16].mxu0 }
 0x40a   :  { %v5238_v40 = vadd.f32 %v5237_v22, %v8908_v33  ;;  %v5239_v32 = vpop.f32.mrb[17].mxu0 }
 0x40b   :  { %v5240_v60 = vadd.f32 %v5239_v32, %v8908_v33  ;;  %v5241_v5 = vpop.f32.mrb[18].mxu0  ;;  %v9274_v32 = vld [vmem:[#allocation25_spill] sm:$0xff] }
 0x40c   :  { %v5531_v57 = vadd.f32 %v5238_v40, %v9264_v1  ;;  %v5242_v52 = vpop.f32.mrb[19].mxu0  ;;  %v9275_v1 = vld [vmem:[#allocation9_spill] sm:$0xff] }
 0x40d   :  { %v5532_v56 = vadd.f32 %v5240_v60, %v9265_v50 }
 0x40e   :  { %v5547_v61 = vmax.f32 %v5531_v57, 0.0 }
 0x40f   :  { %v5548_v41 = vmax.f32 %v5532_v56, 0.0 }
 0x410   :  { %5563 = vst [vmem:[%s8996_s6] sm:$0xff] %v5547_v61 }
 0x411   :  { %5564 = vst [vmem:[%s8996_s6 + $0x8] sm:$0xff] %v5548_v41 }
 0x41d   :  { %v5319_v14 = vpop.f32.mrb[20].mxu0 }
 0x41e   :  { %v5320_v10 = vadd.f32 %v5319_v14, %v8908_v33  ;;  %v5321_v47 = vpop.f32.mrb[21].mxu0 }
 0x41f   :  { %v5322_v6 = vadd.f32 %v5321_v47, %v8908_v33  ;;  %v5323_v42 = vpop.f32.mrb[22].mxu0 }
 0x420   :  { %v5535_v21 = vadd.f32 %v5320_v10, %v9266_v15  ;;  %v5324_v27 = vpop.f32.mrb[23].mxu0 }
 0x421   :  { %v5536_v38 = vadd.f32 %v5322_v6, %v9267_v44 }
 0x422   :  { %v5551_v46 = vmax.f32 %v5535_v21, 0.0 }
 0x423   :  { %v5552_v4 = vmax.f32 %v5536_v38, 0.0 }
 0x424   :  { %5567 = vst [vmem:[%s8996_s6 + $0x20] sm:$0xff] %v5551_v46 }
 0x425   :  { %5568 = vst [vmem:[%s8996_s6 + $0x28] sm:$0xff] %v5552_v4 }
 0x42e   :  { %v5442_v12 = vpop.f32.mrb[24].mxu1 }
 0x42f   :  { %v5443_v11 = vadd.f32 %v5442_v12, %v8908_v33  ;;  %v5444_v59 = vpop.f32.mrb[25].mxu1 }
 0x430   :  { %v5445_v24 = vadd.f32 %v5444_v59, %v8908_v33  ;;  %v5446_v39 = vpop.f32.mrb[26].mxu1 }
 0x431   :  { %v5541_v31 = vadd.f32 %v5443_v11, %v9268_v63  ;;  %v5401_v8 = vpop.f32.mrb[24].mxu0  ;;  %v5447_v58 = vpop.f32.mrb[27].mxu1 }
 0x432   :  { %v5542_v62 = vadd.f32 %v5445_v24, %v9269_v2  ;;  %v5402_v29 = vadd.f32 %v5401_v8, %v8908_v33  ;;  %v5403_v37 = vpop.f32.mrb[25].mxu0 }
 0x433   :  { %v5557_v0 = vmax.f32 %v5541_v31, 0.0  ;;  %v5404_v16 = vadd.f32 %v5403_v37, %v8908_v33  ;;  %v5405_v26 = vpop.f32.mrb[26].mxu0 }
 0x434   :  { %v5558_v20 = vmax.f32 %v5542_v62, 0.0  ;;  %v5539_v36 = vadd.f32 %v5402_v29, %v9270_v53  ;;  %v5406_v25 = vpop.f32.mrb[27].mxu0 }
 0x435   :  { %5573 = vst [vmem:[%s8996_s6 + $0x50] sm:$0xff] %v5557_v0  ;;  %v5540_v51 = vadd.f32 %v5404_v16, %v9271_v7 }
 0x436   :  { %5574 = vst [vmem:[%s8996_s6 + $0x58] sm:$0xff] %v5558_v20  ;;  %v5555_v19 = vmax.f32 %v5539_v36, 0.0 }
 0x437   :  { %v5556_v55 = vmax.f32 %v5540_v51, 0.0 }
 0x438   :  { %5571 = vst [vmem:[%s8996_s6 + $0x40] sm:$0xff] %v5555_v19 }
 0x439   :  { %5572 = vst [vmem:[%s8996_s6 + $0x48] sm:$0xff] %v5556_v55 }
 0x45a   :  { %v5483_v49 = vpop.f32.mrb[28].mxu0 }
 0x45b   :  { %v5484_v3 = vadd.f32 %v5483_v49, %v8908_v33  ;;  %v5485_v34 = vpop.f32.mrb[29].mxu0 }
 0x45c   :  { %v5486_v48 = vadd.f32 %v5485_v34, %v8908_v33  ;;  %v5487_v30 = vpop.f32.mrb[30].mxu0 }
 0x45d   :  { %v5543_v54 = vadd.f32 %v5484_v3, %v9272_v13  ;;  %v5488_v9 = vpop.f32.mrb[31].mxu0 }
 0x45e   :  { %v5544_v23 = vadd.f32 %v5486_v48, %v9273_v43  ;;  %v5524_v45 = vpop.f32.mrb[28].mxu1 }
 0x45f   :  { %v5559_v28 = vmax.f32 %v5543_v54, 0.0  ;;  %v5525_v17 = vadd.f32 %v5524_v45, %v8908_v33  ;;  %v5526_v35 = vpop.f32.mrb[29].mxu1 }
 0x460   :  { %v5560_v18 = vmax.f32 %v5544_v23, 0.0  ;;  %v5527_v22 = vadd.f32 %v5526_v35, %v8908_v33  ;;  %v5528_v40 = vpop.f32.mrb[30].mxu1 }
 0x461   :  { %5575 = vst [vmem:[%s8996_s6 + $0x60] sm:$0xff] %v5559_v28  ;;  %v5545_v60 = vadd.f32 %v5525_v17, %v9274_v32  ;;  %v5529_v5 = vpop.f32.mrb[31].mxu1 }
 0x462   :  { %5576 = vst [vmem:[%s8996_s6 + $0x68] sm:$0xff] %v5560_v18  ;;  %v5546_v57 = vadd.f32 %v5527_v22, %v9275_v1 }
 0x463   :  { %v5561_v52 = vmax.f32 %v5545_v60, 0.0 }
 0x464   :  { %v5562_v50 = vmax.f32 %v5546_v57, 0.0 }
 0x465   :  { %5577 = vst [vmem:[%s8996_s6 + $0x70] sm:$0xff] %v5561_v52 }
 0x466   :  { %5578 = vst [vmem:[%s8996_s6 + $0x78] sm:$0xff] %v5562_v50 }

</bundles_post_ra>
